<compile_context>
chip_gen: v5e
topology: v5e:2x2
jax: 0.10.0
libtpu: 0.0.40
codegen_flags: <defaults>
</compile_context>

<pallas_src>
import functools

import jax
import jax.numpy as jnp
from jax.experimental import pallas as pl
from jax.experimental.pallas import tpu as pltpu

_VMEM_LIMIT = 32 * 1024 * 1024  # explicit, safe on v5e/v6e/v7x (v7x has only 64 MiB VMEM)


def _round_up(x, m):
    return (x + m - 1) // m * m


def _pick_tile(size, max_tile, align):
    """Pick (tile, padded_size): tile % align == 0, padded % tile == 0, tile <= max_tile.

    Prefers the largest tile in [max_tile/2, max_tile] that divides the aligned size
    exactly (no pad waste); falls back to an even split with padding."""
    sp = _round_up(size, align)
    if sp <= max_tile:
        return sp, sp
    t = (max_tile // align) * align
    lo = max(align, (max_tile // 2 // align) * align)
    while t >= lo:
        if sp % t == 0:
            return t, sp
        t -= align
    n = -(-sp // max_tile)
    t = _round_up(-(-sp // n), align)
    return t, _round_up(sp, t)


def _pad2d(x, rows, cols):
    r, c = x.shape
    if r == rows and c == cols:
        return x
    return jnp.pad(x, ((0, rows - r), (0, cols - c)))


def _apply_act(y, act):
    if act == "relu":
        return jnp.maximum(y, 0.0)
    if act == "tanh":
        return jnp.tanh(y)
    return y


# ----------------------------------------------------------------------------
# Pallas MXU matmul with BN batch statistics fused into the epilogue.
#   y[M,N] = A @ B            (bf16 operands, f32 VMEM accumulator)
#   also emits per-M-tile column sum / sum-of-squares (f32), reduced in JAX.
# ----------------------------------------------------------------------------
def _matmul_stats_kernel(a_ref, b_ref, o_ref, sum_ref, sq_ref, acc_ref):
    @pl.when(pl.program_id(2) == 0)
    def _init():
        acc_ref[...] = jnp.zeros_like(acc_ref)

    acc_ref[...] += jnp.dot(a_ref[...], b_ref[...], preferred_element_type=jnp.float32)

    @pl.when(pl.program_id(2) == pl.num_programs(2) - 1)
    def _finalize():
        y = acc_ref[...]
        col_s = jnp.sum(y, axis=0, keepdims=True)           # (1, TN) f32
        col_q = jnp.sum(y * y, axis=0, keepdims=True)
        sum_ref[...] = col_s.reshape(1, 1, col_s.shape[1])
        sq_ref[...] = col_q.reshape(1, 1, col_q.shape[1])
        o_ref[...] = y.astype(o_ref.dtype)


def pallas_matmul_stats(a, b, out_dtype=jnp.bfloat16):
    """Returns (A @ B as out_dtype, column sum (f32), column sum-of-squares (f32))."""
    M, K = a.shape
    K2, N = b.shape
    assert K == K2

    TM, Mp = _pick_tile(M, 512, 16)     # 16-aligned M for bf16 sublane packing
    TN, Np = _pick_tile(N, 256, 128)
    TK, Kp = _pick_tile(K, 1024, 128)   # divisor-preferring: no zero K padding when possible
    gm = Mp // TM

    a_p = _pad2d(a.astype(jnp.bfloat16), Mp, Kp)
    b_p = _pad2d(b.astype(jnp.bfloat16), Kp, Np)

    y, s, q = pl.pallas_call(
        _matmul_stats_kernel,
        out_shape=(jax.ShapeDtypeStruct((Mp, Np), out_dtype),
                   jax.ShapeDtypeStruct((gm, 1, Np), jnp.float32),
                   jax.ShapeDtypeStruct((gm, 1, Np), jnp.float32)),
        grid=(gm, Np // TN, Kp // TK),
        in_specs=[
            pl.BlockSpec((TM, TK), lambda i, j, k: (i, k)),
            pl.BlockSpec((TK, TN), lambda i, j, k: (k, j)),
        ],
        out_specs=(pl.BlockSpec((TM, TN), lambda i, j, k: (i, j)),
                   pl.BlockSpec((1, 1, TN), lambda i, j, k: (i, 0, j)),
                   pl.BlockSpec((1, 1, TN), lambda i, j, k: (i, 0, j))),
        scratch_shapes=[pltpu.VMEM((TM, TN), jnp.float32)],
        compiler_params=pltpu.CompilerParams(
            dimension_semantics=("parallel", "parallel", "arbitrary"),
            vmem_limit_bytes=_VMEM_LIMIT,
        ),
    )(a_p, b_p)

    col_sum = s.reshape(gm, Np).sum(axis=0)[:N]      # zero-padded rows/cols contribute 0
    col_sq = q.reshape(gm, Np).sum(axis=0)[:N]
    if not (Mp == M and Np == N):
        y = y[:M, :N]
    return y, col_sum, col_sq


# ----------------------------------------------------------------------------
# Pallas MXU matmul with fused per-channel affine + activation epilogue
# (used for the final conv: bias + tanh).
# ----------------------------------------------------------------------------
def _matmul_affine_kernel(a_ref, b_ref, s_ref, t_ref, o_ref, acc_ref, *, act):
    @pl.when(pl.program_id(2) == 0)
    def _init():
        acc_ref[...] = jnp.zeros_like(acc_ref)

    acc_ref[...] += jnp.dot(a_ref[...], b_ref[...], preferred_element_type=jnp.float32)

    @pl.when(pl.program_id(2) == pl.num_programs(2) - 1)
    def _finalize():
        y = acc_ref[...] * s_ref[...] + t_ref[...]
        o_ref[...] = _apply_act(y, act).astype(o_ref.dtype)


def pallas_matmul_affine(a, b, scale=None, shift=None, act="none", out_dtype=jnp.float32):
    M, K = a.shape
    K2, N = b.shape
    assert K == K2
    if scale is None:
        scale = jnp.ones((N,), jnp.float32)
    if shift is None:
        shift = jnp.zeros((N,), jnp.float32)

    TM, Mp = _pick_tile(M, 512, 16)
    TN, Np = _pick_tile(N, 256, 128)
    TK, Kp = _pick_tile(K, 1024, 128)

    a_p = _pad2d(a.astype(jnp.bfloat16), Mp, Kp)
    b_p = _pad2d(b.astype(jnp.bfloat16), Kp, Np)
    s_p = _pad2d(scale.astype(jnp.float32).reshape(1, N), 1, Np)
    t_p = _pad2d(shift.astype(jnp.float32).reshape(1, N), 1, Np)

    out = pl.pallas_call(
        functools.partial(_matmul_affine_kernel, act=act),
        out_shape=jax.ShapeDtypeStruct((Mp, Np), out_dtype),
        grid=(Mp // TM, Np // TN, Kp // TK),
        in_specs=[
            pl.BlockSpec((TM, TK), lambda i, j, k: (i, k)),
            pl.BlockSpec((TK, TN), lambda i, j, k: (k, j)),
            pl.BlockSpec((1, TN), lambda i, j, k: (0, j)),
            pl.BlockSpec((1, TN), lambda i, j, k: (0, j)),
        ],
        out_specs=pl.BlockSpec((TM, TN), lambda i, j, k: (i, j)),
        scratch_shapes=[pltpu.VMEM((TM, TN), jnp.float32)],
        compiler_params=pltpu.CompilerParams(
            dimension_semantics=("parallel", "parallel", "arbitrary"),
            vmem_limit_bytes=_VMEM_LIMIT,
        ),
    )(a_p, b_p, s_p, t_p)
    if Mp == M and Np == N:
        return out
    return out[:M, :N]


# ----------------------------------------------------------------------------
# Pallas fused per-channel affine + activation (+ optional residual add).
#   y = act(x * scale + shift [+ residual]);  f32 math, bf16 in/out.
# ----------------------------------------------------------------------------
def _affine_act_kernel(x_ref, s_ref, t_ref, o_ref, *, act):
    y = x_ref[...].astype(jnp.float32) * s_ref[...] + t_ref[...]
    o_ref[...] = _apply_act(y, act).astype(o_ref.dtype)


def _affine_act_res_kernel(x_ref, r_ref, s_ref, t_ref, o_ref, *, act):
    y = (x_ref[...].astype(jnp.float32) * s_ref[...] + t_ref[...]
         + r_ref[...].astype(jnp.float32))
    o_ref[...] = _apply_act(y, act).astype(o_ref.dtype)


def pallas_affine_act(x2d, scale, shift, act="none", residual=None,
                      out_dtype=jnp.bfloat16):
    M, C = x2d.shape
    TM, Mp = _pick_tile(M, 2048, 16)    # pure HBM streaming: big row tiles
    Cp = _round_up(C, 128)
    x_p = _pad2d(x2d, Mp, Cp)
    s_p = _pad2d(scale.astype(jnp.float32).reshape(1, C), 1, Cp)
    t_p = _pad2d(shift.astype(jnp.float32).reshape(1, C), 1, Cp)

    in_specs = [pl.BlockSpec((TM, Cp), lambda i: (i, 0))]
    args = [x_p]
    if residual is not None:
        r_p = _pad2d(residual, Mp, Cp)
        in_specs.append(pl.BlockSpec((TM, Cp), lambda i: (i, 0)))
        args.append(r_p)
        kern = functools.partial(_affine_act_res_kernel, act=act)
    else:
        kern = functools.partial(_affine_act_kernel, act=act)
    in_specs += [pl.BlockSpec((1, Cp), lambda i: (0, 0)),
                 pl.BlockSpec((1, Cp), lambda i: (0, 0))]
    args += [s_p, t_p]

    out = pl.pallas_call(
        kern,
        out_shape=jax.ShapeDtypeStruct((Mp, Cp), out_dtype),
        grid=(Mp // TM,),
        in_specs=in_specs,
        out_specs=pl.BlockSpec((TM, Cp), lambda i: (i, 0)),
        compiler_params=pltpu.CompilerParams(
            dimension_semantics=("parallel",),
            vmem_limit_bytes=_VMEM_LIMIT,
        ),
    )(*args)
    if Mp == M and Cp == C:
        return out
    return out[:M, :C]


# ----------------------------------------------------------------------------
# BatchNorm (training-mode forward: batch statistics, biased variance).
# Stats come from the fused matmul epilogue; only scale/shift derivation here (f32).
# TODO(synk): eval-mode parity would use running_mean/running_var instead of batch stats.
# ----------------------------------------------------------------------------
def _bn_scale_shift(col_sum, col_sq, gamma, beta, count, eps=1e-5):
    mean = col_sum / count
    var = jnp.maximum(col_sq / count - mean * mean, 0.0)
    scale = gamma / jnp.sqrt(var + eps)
    shift = beta - mean * scale
    return scale, shift


# ----------------------------------------------------------------------------
# Conv layers via im2col (glue, bf16) + Pallas matmul (compute)
# ----------------------------------------------------------------------------
def _conv_im2col_reflect(x, w, pad):
    """stride-1 Conv2d with ReflectionPad2d(pad). x NHWC (bf16), w (cout,cin,k,k)."""
    n, h, wd, cin = x.shape
    cout, _, k, _ = w.shape
    xp = jnp.pad(x, ((0, 0), (pad, pad), (pad, pad), (0, 0)), mode="reflect")
    cols = [xp[:, kh:kh + h, kw:kw + wd, :] for kh in range(k) for kw in range(k)]
    patches = jnp.stack(cols, axis=3).reshape(n * h * wd, k * k * cin)   # stays bf16
    wmat = jnp.transpose(w, (2, 3, 1, 0)).reshape(k * k * cin, cout)
    return patches, wmat


def resnet_block_forward(x, p):
    """out = x + BN(conv3x3(ReLU(BN(conv3x3(reflectpad(x)))))), reflect pads, no conv bias."""
    n, h, wd, c = x.shape
    M = n * h * wd
    # conv1 (stats fused into matmul epilogue) + BN-apply + ReLU (one fused pass)
    pt1, wm1 = _conv_im2col_reflect(x, p["w1"], pad=1)
    y1, s1, q1 = pallas_matmul_stats(pt1, wm1)
    sc1, sh1 = _bn_scale_shift(s1, q1, p["g1"], p["b1"], M)
    a1 = pallas_affine_act(y1, sc1, sh1, act="relu").reshape(n, h, wd, c)
    # conv2 + BN with the residual add fused into the BN-apply pass
    pt2, wm2 = _conv_im2col_reflect(a1, p["w2"], pad=1)
    y2, s2, q2 = pallas_matmul_stats(pt2, wm2)
    sc2, sh2 = _bn_scale_shift(s2, q2, p["g2"], p["b2"], M)
    out = pallas_affine_act(y2, sc2, sh2, act="none", residual=x.reshape(M, c))
    return out.reshape(n, h, wd, c)


def upconv_bn_relu(x, w, gamma, beta, eps=1e-5):
    """ConvTranspose2d(k=3, s=2, p=1, output_padding=1, bias=False) + BN + ReLU.

    Phase decomposition: each of the 4 output-pixel parities only sees a 1x1/1x2/2x1/2x2
    subset of the 3x3 kernel, so we run ONE matmul of a 2x2 im2col (4*cin columns, read
    once) against a phase-blocked (4*cin, 4*cout) weight matrix — no zero-dilated patches.
    x: (N,H,W,Cin) NHWC bf16; w: PyTorch layout (Cin, Cout, 3, 3)."""
    n, h, wd, cin = x.shape
    cout = w.shape[1]
    M = n * h * wd

    xp = jnp.pad(x, ((0, 0), (0, 1), (0, 1), (0, 0)))      # one zero row/col bottom/right
    c_a = xp[:, 1:, 1:, :]      # x[m+1, p+1]
    c_b = xp[:, 1:, :wd, :]     # x[m+1, p]
    c_c = xp[:, :h, 1:, :]      # x[m,   p+1]
    c_d = x                     # x[m,   p]
    patches = jnp.concatenate([c_a, c_b, c_c, c_d], axis=-1).reshape(M, 4 * cin)

    # Phase-blocked weights: columns = [phase(0,0), (0,1), (1,0), (1,1)] x cout each.
    B = jnp.zeros((4 * cin, 4 * cout), jnp.float32)

    def put(mat, rb, cb, kh, kw):
        return mat.at[rb * cin:(rb + 1) * cin, cb * cout:(cb + 1) * cout].set(w[:, :, kh, kw])

    B = put(B, 3, 0, 1, 1)                                   # out[2m,   2p]
    B = put(B, 2, 1, 1, 0); B = put(B, 3, 1, 1, 2)           # out[2m,   2p+1]
    B = put(B, 1, 2, 0, 1); B = put(B, 3, 2, 2, 1)           # out[2m+1, 2p]
    B = put(B, 0, 3, 0, 0); B = put(B, 1, 3, 0, 2)           # out[2m+1, 2p+1]
    B = put(B, 2, 3, 2, 0); B = put(B, 3, 3, 2, 2)

    y, s4, q4 = pallas_matmul_stats(patches, B)              # (M, 4*cout) bf16 + f32 stats

    # BN statistics over the FULL (2H x 2W) output: sum the per-phase partials.
    s = s4.reshape(4, cout).sum(axis=0)
    q = q4.reshape(4, cout).sum(axis=0)
    scale, shift = _bn_scale_shift(s, q, gamma, beta, 4 * M, eps)
    a = pallas_affine_act(y, jnp.tile(scale, 4), jnp.tile(shift, 4), act="relu")

    # Interleave phases into the full-resolution NHWC output (bf16 -> half the traffic).
    a = a.reshape(n, h, wd, 2, 2, cout)
    a = jnp.transpose(a, (0, 1, 3, 2, 4, 5)).reshape(n, 2 * h, 2 * wd, cout)
    return a


def output_layer_forward(x, w, b):
    """ReflectionPad2d(3) + Conv2d(k=7, bias=True) + Tanh, bias+tanh fused in matmul epilogue."""
    n, h, wd, _ = x.shape
    cout = w.shape[0]
    pt, wm = _conv_im2col_reflect(x, w, pad=3)
    y = pallas_matmul_affine(pt, wm, scale=jnp.ones((cout,), jnp.float32),
                             shift=b, act="tanh", out_dtype=jnp.float32)
    return y.reshape(n, h, wd, cout)


# ----------------------------------------------------------------------------
# Parameter construction mirroring ResnetDecoder.__init__
# (BatchNorm2d => use_bias=False for all convs except the final 7x7 conv)
# ----------------------------------------------------------------------------
def init_resnet_decoder_params(key, input_nc, output_nc, ngf=64, n_downsampling=2,
                               n_blocks=6, start=0, end=2, output_layer=True):
    n_ups = end - start
    keys = iter(jax.random.split(key, 2 * n_blocks + n_ups + 4))

    def conv_w(cout, cin, k):
        return 0.02 * jax.random.normal(next(keys), (cout, cin, k, k), jnp.float32)

    def convt_w(cin, cout, k):
        return 0.02 * jax.random.normal(next(keys), (cin, cout, k, k), jnp.float32)

    dim = ngf * 2 ** n_downsampling
    params = {"blocks": [], "ups": [], "out": None}
    for _ in range(n_blocks):
        params["blocks"].append({
            "w1": conv_w(dim, dim, 3),
            "g1": jnp.ones((dim,), jnp.float32), "b1": jnp.zeros((dim,), jnp.float32),
            "w2": conv_w(dim, dim, 3),
            "g2": jnp.ones((dim,), jnp.float32), "b2": jnp.zeros((dim,), jnp.float32),
        })
    for i in range(start, end):
        mult = 2 ** (n_downsampling - i)
        cin, cout = ngf * mult, ngf * mult // 2
        params["ups"].append({
            "w": convt_w(cin, cout, 3),
            "g": jnp.ones((cout,), jnp.float32), "b": jnp.zeros((cout,), jnp.float32),
        })
    if output_layer:
        params["out"] = {
            "w": conv_w(output_nc, ngf, 7),
            "b": 0.02 * jax.random.normal(next(keys), (output_nc,), jnp.float32),
        }
    return params


# ----------------------------------------------------------------------------
# Forward (mirrors ResnetDecoder.forward / nn.Sequential)
# ----------------------------------------------------------------------------
def resnet_decoder_forward(params, x_nchw):
    # NCHW -> NHWC (lane-dense channels); bf16 inter-layer activations.
    x = jnp.transpose(x_nchw, (0, 2, 3, 1)).astype(jnp.bfloat16)
    for bp in params["blocks"]:
        x = resnet_block_forward(x, bp)
    for up in params["ups"]:
        x = upconv_bn_relu(x, up["w"], up["g"], up["b"])
    if params["out"] is not None:
        x = output_layer_forward(x, params["out"]["w"], params["out"]["b"])
    return jnp.transpose(x, (0, 3, 1, 2)).astype(jnp.float32)   # back to NCHW, f32 result


if __name__ == "__main__":
    # ResnetDecoder(input_nc=3, output_nc=3, ngf=8, n_downsampling=2, n_blocks=2)
    input_nc, output_nc, ngf = 3, 3, 8
    n_downsampling, n_blocks = 2, 2
    batch, spatial = 2, 8
    in_ch = ngf * 2 ** n_downsampling          # decoder input channels = ngf * 4 = 32

    key = jax.random.PRNGKey(0)
    k_params, k_x = jax.random.split(key)
    params = init_resnet_decoder_params(k_params, input_nc, output_nc, ngf,
                                        n_downsampling, n_blocks)
    x = jax.random.normal(k_x, (batch, in_ch, spatial, spatial), jnp.float32)

    fwd = jax.jit(resnet_decoder_forward)
    out = jax.block_until_ready(fwd(params, x))

    assert out.shape == (batch, output_nc, spatial * 4, spatial * 4), out.shape
    assert bool(jnp.all(jnp.isfinite(out)))
    assert bool(jnp.all(jnp.abs(out) <= 1.0))  # tanh output range
    print("KERNEL_OK")
</pallas_src>

<mosaic_0001>
module attributes {stable_mosaic.version = 11 : i64} {
  func.func @_matmul_stats_kernel(%arg0: i32, %arg1: i32, %arg2: i32, %arg3: memref<128x384xbf16, #tpu.memory_space<vmem>>, %arg4: memref<384x128xbf16, #tpu.memory_space<vmem>>, %arg5: memref<128x128xbf16, #tpu.memory_space<vmem>>, %arg6: memref<1x1x128xf32, #tpu.memory_space<vmem>>, %arg7: memref<1x1x128xf32, #tpu.memory_space<vmem>>, %arg8: memref<128x128xf32, #tpu.memory_space<vmem>>) attributes {dimension_semantics = [#tpu.dimension_semantics<parallel>, #tpu.dimension_semantics<parallel>, #tpu.dimension_semantics<arbitrary>], iteration_bounds = array<i64: 1, 1, 1>, scalar_prefetch = 0 : i64, scratch_operands = 1 : i64, tpu.core_type = #tpu.core_type<tc>, window_params = [{transform_indices = @transform_0, window_bounds = array<i64: 128, 384>}, {transform_indices = @transform_1, window_bounds = array<i64: 384, 128>}, {transform_indices = @transform_2, window_bounds = array<i64: 128, 128>}, {transform_indices = @transform_3, window_bounds = array<i64: 1, 1, 128>}, {transform_indices = @transform_4, window_bounds = array<i64: 1, 1, 128>}]} {
    %c0_i32 = arith.constant 0 : i32
    %0 = arith.cmpi eq, %arg2, %c0_i32 : i32
    %1 = arith.extui %0 : i1 to i32
    %c0_i32_0 = arith.constant 0 : i32
    %2 = arith.cmpi ne, %1, %c0_i32_0 : i32
    scf.if %2 {
      %cst_10 = arith.constant 0.000000e+00 : f32
      %12 = vector.broadcast %cst_10 : f32 to vector<128x128xf32>
      %c0_11 = arith.constant 0 : index
      %c0_12 = arith.constant 0 : index
      %13 = vector.load %arg8[%c0_11, %c0_12] : memref<128x128xf32, #tpu.memory_space<vmem>>, vector<128x128xf32>
      tpu.vector_store %arg8[%c0_11, %c0_12], %12 {strides = array<i32>} : memref<128x128xf32, #tpu.memory_space<vmem>>, vector<128x128xf32>,
    } else {
    }
    %c0 = arith.constant 0 : index
    %c0_1 = arith.constant 0 : index
    %3 = vector.load %arg8[%c0, %c0_1] : memref<128x128xf32, #tpu.memory_space<vmem>>, vector<128x128xf32>
    %c0_2 = arith.constant 0 : index
    %c0_3 = arith.constant 0 : index
    %4 = vector.load %arg3[%c0_2, %c0_3] : memref<128x384xbf16, #tpu.memory_space<vmem>>, vector<128x384xbf16>
    %c0_4 = arith.constant 0 : index
    %c0_5 = arith.constant 0 : index
    %5 = vector.load %arg4[%c0_4, %c0_5] : memref<384x128xbf16, #tpu.memory_space<vmem>>, vector<384x128xbf16>
    %cst = arith.constant dense<0.000000e+00> : vector<128x128xf32>
    %6 = tpu.matmul %4, %5, %cst {dimension_numbers = #tpu.dot_dimension_numbers<[1], [0], [0], [1], [0, 0, 1, 1], [], []>} : vector<128x384xbf16>, vector<384x128xbf16>, vector<128x128xf32> -> vector<128x128xf32>
    %7 = arith.addf %3, %6 : vector<128x128xf32>
    %c0_6 = arith.constant 0 : index
    %c0_7 = arith.constant 0 : index
    %8 = vector.load %arg8[%c0_6, %c0_7] : memref<128x128xf32, #tpu.memory_space<vmem>>, vector<128x128xf32>
    tpu.vector_store %arg8[%c0_6, %c0_7], %7 {strides = array<i32>} : memref<128x128xf32, #tpu.memory_space<vmem>>, vector<128x128xf32>,
    %c0_i32_8 = arith.constant 0 : i32
    %9 = arith.cmpi eq, %arg2, %c0_i32_8 : i32
    %10 = arith.extui %9 : i1 to i32
    %c0_i32_9 = arith.constant 0 : i32
    %11 = arith.cmpi ne, %10, %c0_i32_9 : i32
    scf.if %11 {
      %c0_10 = arith.constant 0 : index
      %c0_11 = arith.constant 0 : index
      %12 = vector.load %arg8[%c0_10, %c0_11] : memref<128x128xf32, #tpu.memory_space<vmem>>, vector<128x128xf32>
      %cst_12 = arith.constant dense<0.000000e+00> : vector<128xf32>
      %13 = vector.multi_reduction <add>, %12, %cst_12 [0] : vector<128x128xf32> to vector<128xf32>
      %14 = vector.shape_cast %13 : vector<128xf32> to vector<1x128xf32>
      %15 = arith.mulf %12, %12 : vector<128x128xf32>
      %cst_13 = arith.constant dense<0.000000e+00> : vector<128xf32>
      %16 = vector.multi_reduction <add>, %15, %cst_13 [0] : vector<128x128xf32> to vector<128xf32>
      %17 = vector.shape_cast %16 : vector<128xf32> to vector<1x128xf32>
      %18 = vector.shape_cast %14 : vector<1x128xf32> to vector<1x1x128xf32>
      %c0_14 = arith.constant 0 : index
      %c0_15 = arith.constant 0 : index
      %c0_16 = arith.constant 0 : index
      %19 = vector.load %arg6[%c0_14, %c0_15, %c0_16] : memref<1x1x128xf32, #tpu.memory_space<vmem>>, vector<1x1x128xf32>
      tpu.vector_store %arg6[%c0_14, %c0_15, %c0_16], %18 {strides = array<i32>} : memref<1x1x128xf32, #tpu.memory_space<vmem>>, vector<1x1x128xf32>,
      %20 = vector.shape_cast %17 : vector<1x128xf32> to vector<1x1x128xf32>
      %c0_17 = arith.constant 0 : index
      %c0_18 = arith.constant 0 : index
      %c0_19 = arith.constant 0 : index
      %21 = vector.load %arg7[%c0_17, %c0_18, %c0_19] : memref<1x1x128xf32, #tpu.memory_space<vmem>>, vector<1x1x128xf32>
      tpu.vector_store %arg7[%c0_17, %c0_18, %c0_19], %20 {strides = array<i32>} : memref<1x1x128xf32, #tpu.memory_space<vmem>>, vector<1x1x128xf32>,
      %22 = arith.truncf %12 : vector<128x128xf32> to vector<128x128xbf16>
      %c0_20 = arith.constant 0 : index
      %c0_21 = arith.constant 0 : index
      %23 = vector.load %arg5[%c0_20, %c0_21] : memref<128x128xbf16, #tpu.memory_space<vmem>>, vector<128x128xbf16>
      tpu.vector_store %arg5[%c0_20, %c0_21], %22 {strides = array<i32>} : memref<128x128xbf16, #tpu.memory_space<vmem>>, vector<128x128xbf16>,
    } else {
    }
    return
  }
  func.func @transform_0(%arg0: i32, %arg1: i32, %arg2: i32) -> (i32, i32) {
    %c0_i32 = arith.constant 0 : i32
    return %arg0, %arg2 : i32, i32
  }
  func.func @transform_1(%arg0: i32, %arg1: i32, %arg2: i32) -> (i32, i32) {
    %c0_i32 = arith.constant 0 : i32
    return %arg2, %arg1 : i32, i32
  }
  func.func @transform_2(%arg0: i32, %arg1: i32, %arg2: i32) -> (i32, i32) {
    %c0_i32 = arith.constant 0 : i32
    return %arg0, %arg1 : i32, i32
  }
  func.func @transform_3(%arg0: i32, %arg1: i32, %arg2: i32) -> (i32, i32, i32) {
    %c0_i32 = arith.constant 0 : i32
    %c0_i32_0 = arith.constant 0 : i32
    return %arg0, %c0_i32, %arg1 : i32, i32, i32
  }
  func.func @transform_4(%arg0: i32, %arg1: i32, %arg2: i32) -> (i32, i32, i32) {
    %c0_i32 = arith.constant 0 : i32
    %c0_i32_0 = arith.constant 0 : i32
    return %arg0, %c0_i32, %arg1 : i32, i32, i32
  }
}

module attributes {stable_mosaic.version = 11 : i64} {
  func.func @_affine_act_kernel(%arg0: i32, %arg1: memref<128x128xbf16, #tpu.memory_space<vmem>>, %arg2: memref<1x128xf32, #tpu.memory_space<vmem>>, %arg3: memref<1x128xf32, #tpu.memory_space<vmem>>, %arg4: memref<128x128xbf16, #tpu.memory_space<vmem>>) attributes {dimension_semantics = [#tpu.dimension_semantics<parallel>], iteration_bounds = array<i64: 1>, scalar_prefetch = 0 : i64, scratch_operands = 0 : i64, tpu.core_type = #tpu.core_type<tc>, window_params = [{transform_indices = @transform_0, window_bounds = array<i64: 128, 128>}, {pipeline_mode = #tpu.pipeline_mode<synchronous>, transform_indices = @transform_1, window_bounds = array<i64: 1, 128>}, {pipeline_mode = #tpu.pipeline_mode<synchronous>, transform_indices = @transform_2, window_bounds = array<i64: 1, 128>}, {transform_indices = @transform_3, window_bounds = array<i64: 128, 128>}]} {
    %c0 = arith.constant 0 : index
    %c0_0 = arith.constant 0 : index
    %0 = vector.load %arg1[%c0, %c0_0] : memref<128x128xbf16, #tpu.memory_space<vmem>>, vector<128x128xbf16>
    %1 = arith.extf %0 : vector<128x128xbf16> to vector<128x128xf32>
    %c0_1 = arith.constant 0 : index
    %c0_2 = arith.constant 0 : index
    %2 = vector.load %arg2[%c0_1, %c0_2] : memref<1x128xf32, #tpu.memory_space<vmem>>, vector<1x128xf32>
    %3 = vector.broadcast %2 : vector<1x128xf32> to vector<128x128xf32>
    %4 = arith.mulf %1, %3 : vector<128x128xf32>
    %c0_3 = arith.constant 0 : index
    %c0_4 = arith.constant 0 : index
    %5 = vector.load %arg3[%c0_3, %c0_4] : memref<1x128xf32, #tpu.memory_space<vmem>>, vector<1x128xf32>
    %6 = vector.broadcast %5 : vector<1x128xf32> to vector<128x128xf32>
    %7 = arith.addf %4, %6 : vector<128x128xf32>
    %cst = arith.constant 0.000000e+00 : f32
    %8 = vector.broadcast %cst : f32 to vector<128x128xf32>
    %9 = arith.maximumf %7, %8 : vector<128x128xf32>
    %10 = arith.truncf %9 : vector<128x128xf32> to vector<128x128xbf16>
    %c0_5 = arith.constant 0 : index
    %c0_6 = arith.constant 0 : index
    %11 = vector.load %arg4[%c0_5, %c0_6] : memref<128x128xbf16, #tpu.memory_space<vmem>>, vector<128x128xbf16>
    tpu.vector_store %arg4[%c0_5, %c0_6], %10 {strides = array<i32>} : memref<128x128xbf16, #tpu.memory_space<vmem>>, vector<128x128xbf16>,
    return
  }
  func.func @transform_0(%arg0: i32) -> (i32, i32) {
    %c0_i32 = arith.constant 0 : i32
    %c0_i32_0 = arith.constant 0 : i32
    return %arg0, %c0_i32 : i32, i32
  }
  func.func @transform_1(%arg0: i32) -> (i32, i32) {
    %c0_i32 = arith.constant 0 : i32
    %c0_i32_0 = arith.constant 0 : i32
    %c0_i32_1 = arith.constant 0 : i32
    return %c0_i32, %c0_i32_0 : i32, i32
  }
  func.func @transform_2(%arg0: i32) -> (i32, i32) {
    %c0_i32 = arith.constant 0 : i32
    %c0_i32_0 = arith.constant 0 : i32
    %c0_i32_1 = arith.constant 0 : i32
    return %c0_i32, %c0_i32_0 : i32, i32
  }
  func.func @transform_3(%arg0: i32) -> (i32, i32) {
    %c0_i32 = arith.constant 0 : i32
    %c0_i32_0 = arith.constant 0 : i32
    return %arg0, %c0_i32 : i32, i32
  }
}

module attributes {stable_mosaic.version = 11 : i64} {
  func.func @_affine_act_res_kernel(%arg0: i32, %arg1: memref<128x128xbf16, #tpu.memory_space<vmem>>, %arg2: memref<128x128xbf16, #tpu.memory_space<vmem>>, %arg3: memref<1x128xf32, #tpu.memory_space<vmem>>, %arg4: memref<1x128xf32, #tpu.memory_space<vmem>>, %arg5: memref<128x128xbf16, #tpu.memory_space<vmem>>) attributes {dimension_semantics = [#tpu.dimension_semantics<parallel>], iteration_bounds = array<i64: 1>, scalar_prefetch = 0 : i64, scratch_operands = 0 : i64, tpu.core_type = #tpu.core_type<tc>, window_params = [{transform_indices = @transform_0, window_bounds = array<i64: 128, 128>}, {transform_indices = @transform_1, window_bounds = array<i64: 128, 128>}, {pipeline_mode = #tpu.pipeline_mode<synchronous>, transform_indices = @transform_2, window_bounds = array<i64: 1, 128>}, {pipeline_mode = #tpu.pipeline_mode<synchronous>, transform_indices = @transform_3, window_bounds = array<i64: 1, 128>}, {transform_indices = @transform_4, window_bounds = array<i64: 128, 128>}]} {
    %c0 = arith.constant 0 : index
    %c0_0 = arith.constant 0 : index
    %0 = vector.load %arg1[%c0, %c0_0] : memref<128x128xbf16, #tpu.memory_space<vmem>>, vector<128x128xbf16>
    %1 = arith.extf %0 : vector<128x128xbf16> to vector<128x128xf32>
    %c0_1 = arith.constant 0 : index
    %c0_2 = arith.constant 0 : index
    %2 = vector.load %arg3[%c0_1, %c0_2] : memref<1x128xf32, #tpu.memory_space<vmem>>, vector<1x128xf32>
    %3 = vector.broadcast %2 : vector<1x128xf32> to vector<128x128xf32>
    %4 = arith.mulf %1, %3 : vector<128x128xf32>
    %c0_3 = arith.constant 0 : index
    %c0_4 = arith.constant 0 : index
    %5 = vector.load %arg4[%c0_3, %c0_4] : memref<1x128xf32, #tpu.memory_space<vmem>>, vector<1x128xf32>
    %6 = vector.broadcast %5 : vector<1x128xf32> to vector<128x128xf32>
    %7 = arith.addf %4, %6 : vector<128x128xf32>
    %c0_5 = arith.constant 0 : index
    %c0_6 = arith.constant 0 : index
    %8 = vector.load %arg2[%c0_5, %c0_6] : memref<128x128xbf16, #tpu.memory_space<vmem>>, vector<128x128xbf16>
    %9 = arith.extf %8 : vector<128x128xbf16> to vector<128x128xf32>
    %10 = arith.addf %7, %9 : vector<128x128xf32>
    %11 = arith.truncf %10 : vector<128x128xf32> to vector<128x128xbf16>
    %c0_7 = arith.constant 0 : index
    %c0_8 = arith.constant 0 : index
    %12 = vector.load %arg5[%c0_7, %c0_8] : memref<128x128xbf16, #tpu.memory_space<vmem>>, vector<128x128xbf16>
    tpu.vector_store %arg5[%c0_7, %c0_8], %11 {strides = array<i32>} : memref<128x128xbf16, #tpu.memory_space<vmem>>, vector<128x128xbf16>,
    return
  }
  func.func @transform_0(%arg0: i32) -> (i32, i32) {
    %c0_i32 = arith.constant 0 : i32
    %c0_i32_0 = arith.constant 0 : i32
    return %arg0, %c0_i32 : i32, i32
  }
  func.func @transform_1(%arg0: i32) -> (i32, i32) {
    %c0_i32 = arith.constant 0 : i32
    %c0_i32_0 = arith.constant 0 : i32
    return %arg0, %c0_i32 : i32, i32
  }
  func.func @transform_2(%arg0: i32) -> (i32, i32) {
    %c0_i32 = arith.constant 0 : i32
    %c0_i32_0 = arith.constant 0 : i32
    %c0_i32_1 = arith.constant 0 : i32
    return %c0_i32, %c0_i32_0 : i32, i32
  }
  func.func @transform_3(%arg0: i32) -> (i32, i32) {
    %c0_i32 = arith.constant 0 : i32
    %c0_i32_0 = arith.constant 0 : i32
    %c0_i32_1 = arith.constant 0 : i32
    return %c0_i32, %c0_i32_0 : i32, i32
  }
  func.func @transform_4(%arg0: i32) -> (i32, i32) {
    %c0_i32 = arith.constant 0 : i32
    %c0_i32_0 = arith.constant 0 : i32
    return %arg0, %c0_i32 : i32, i32
  }
}

module attributes {stable_mosaic.version = 11 : i64} {
  func.func @_matmul_stats_kernel(%arg0: i32, %arg1: i32, %arg2: i32, %arg3: memref<128x128xbf16, #tpu.memory_space<vmem>>, %arg4: memref<128x128xbf16, #tpu.memory_space<vmem>>, %arg5: memref<128x128xbf16, #tpu.memory_space<vmem>>, %arg6: memref<1x1x128xf32, #tpu.memory_space<vmem>>, %arg7: memref<1x1x128xf32, #tpu.memory_space<vmem>>, %arg8: memref<128x128xf32, #tpu.memory_space<vmem>>) attributes {dimension_semantics = [#tpu.dimension_semantics<parallel>, #tpu.dimension_semantics<parallel>, #tpu.dimension_semantics<arbitrary>], iteration_bounds = array<i64: 1, 1, 1>, scalar_prefetch = 0 : i64, scratch_operands = 1 : i64, tpu.core_type = #tpu.core_type<tc>, window_params = [{transform_indices = @transform_0, window_bounds = array<i64: 128, 128>}, {transform_indices = @transform_1, window_bounds = array<i64: 128, 128>}, {transform_indices = @transform_2, window_bounds = array<i64: 128, 128>}, {transform_indices = @transform_3, window_bounds = array<i64: 1, 1, 128>}, {transform_indices = @transform_4, window_bounds = array<i64: 1, 1, 128>}]} {
    %c0_i32 = arith.constant 0 : i32
    %0 = arith.cmpi eq, %arg2, %c0_i32 : i32
    %1 = arith.extui %0 : i1 to i32
    %c0_i32_0 = arith.constant 0 : i32
    %2 = arith.cmpi ne, %1, %c0_i32_0 : i32
    scf.if %2 {
      %cst_10 = arith.constant 0.000000e+00 : f32
      %12 = vector.broadcast %cst_10 : f32 to vector<128x128xf32>
      %c0_11 = arith.constant 0 : index
      %c0_12 = arith.constant 0 : index
      %13 = vector.load %arg8[%c0_11, %c0_12] : memref<128x128xf32, #tpu.memory_space<vmem>>, vector<128x128xf32>
      tpu.vector_store %arg8[%c0_11, %c0_12], %12 {strides = array<i32>} : memref<128x128xf32, #tpu.memory_space<vmem>>, vector<128x128xf32>,
    } else {
    }
    %c0 = arith.constant 0 : index
    %c0_1 = arith.constant 0 : index
    %3 = vector.load %arg8[%c0, %c0_1] : memref<128x128xf32, #tpu.memory_space<vmem>>, vector<128x128xf32>
    %c0_2 = arith.constant 0 : index
    %c0_3 = arith.constant 0 : index
    %4 = vector.load %arg3[%c0_2, %c0_3] : memref<128x128xbf16, #tpu.memory_space<vmem>>, vector<128x128xbf16>
    %c0_4 = arith.constant 0 : index
    %c0_5 = arith.constant 0 : index
    %5 = vector.load %arg4[%c0_4, %c0_5] : memref<128x128xbf16, #tpu.memory_space<vmem>>, vector<128x128xbf16>
    %cst = arith.constant dense<0.000000e+00> : vector<128x128xf32>
    %6 = tpu.matmul %4, %5, %cst {dimension_numbers = #tpu.dot_dimension_numbers<[1], [0], [0], [1], [0, 0, 1, 1], [], []>} : vector<128x128xbf16>, vector<128x128xbf16>, vector<128x128xf32> -> vector<128x128xf32>
    %7 = arith.addf %3, %6 : vector<128x128xf32>
    %c0_6 = arith.constant 0 : index
    %c0_7 = arith.constant 0 : index
    %8 = vector.load %arg8[%c0_6, %c0_7] : memref<128x128xf32, #tpu.memory_space<vmem>>, vector<128x128xf32>
    tpu.vector_store %arg8[%c0_6, %c0_7], %7 {strides = array<i32>} : memref<128x128xf32, #tpu.memory_space<vmem>>, vector<128x128xf32>,
    %c0_i32_8 = arith.constant 0 : i32
    %9 = arith.cmpi eq, %arg2, %c0_i32_8 : i32
    %10 = arith.extui %9 : i1 to i32
    %c0_i32_9 = arith.constant 0 : i32
    %11 = arith.cmpi ne, %10, %c0_i32_9 : i32
    scf.if %11 {
      %c0_10 = arith.constant 0 : index
      %c0_11 = arith.constant 0 : index
      %12 = vector.load %arg8[%c0_10, %c0_11] : memref<128x128xf32, #tpu.memory_space<vmem>>, vector<128x128xf32>
      %cst_12 = arith.constant dense<0.000000e+00> : vector<128xf32>
      %13 = vector.multi_reduction <add>, %12, %cst_12 [0] : vector<128x128xf32> to vector<128xf32>
      %14 = vector.shape_cast %13 : vector<128xf32> to vector<1x128xf32>
      %15 = arith.mulf %12, %12 : vector<128x128xf32>
      %cst_13 = arith.constant dense<0.000000e+00> : vector<128xf32>
      %16 = vector.multi_reduction <add>, %15, %cst_13 [0] : vector<128x128xf32> to vector<128xf32>
      %17 = vector.shape_cast %16 : vector<128xf32> to vector<1x128xf32>
      %18 = vector.shape_cast %14 : vector<1x128xf32> to vector<1x1x128xf32>
      %c0_14 = arith.constant 0 : index
      %c0_15 = arith.constant 0 : index
      %c0_16 = arith.constant 0 : index
      %19 = vector.load %arg6[%c0_14, %c0_15, %c0_16] : memref<1x1x128xf32, #tpu.memory_space<vmem>>, vector<1x1x128xf32>
      tpu.vector_store %arg6[%c0_14, %c0_15, %c0_16], %18 {strides = array<i32>} : memref<1x1x128xf32, #tpu.memory_space<vmem>>, vector<1x1x128xf32>,
      %20 = vector.shape_cast %17 : vector<1x128xf32> to vector<1x1x128xf32>
      %c0_17 = arith.constant 0 : index
      %c0_18 = arith.constant 0 : index
      %c0_19 = arith.constant 0 : index
      %21 = vector.load %arg7[%c0_17, %c0_18, %c0_19] : memref<1x1x128xf32, #tpu.memory_space<vmem>>, vector<1x1x128xf32>
      tpu.vector_store %arg7[%c0_17, %c0_18, %c0_19], %20 {strides = array<i32>} : memref<1x1x128xf32, #tpu.memory_space<vmem>>, vector<1x1x128xf32>,
      %22 = arith.truncf %12 : vector<128x128xf32> to vector<128x128xbf16>
      %c0_20 = arith.constant 0 : index
      %c0_21 = arith.constant 0 : index
      %23 = vector.load %arg5[%c0_20, %c0_21] : memref<128x128xbf16, #tpu.memory_space<vmem>>, vector<128x128xbf16>
      tpu.vector_store %arg5[%c0_20, %c0_21], %22 {strides = array<i32>} : memref<128x128xbf16, #tpu.memory_space<vmem>>, vector<128x128xbf16>,
    } else {
    }
    return
  }
  func.func @transform_0(%arg0: i32, %arg1: i32, %arg2: i32) -> (i32, i32) {
    %c0_i32 = arith.constant 0 : i32
    return %arg0, %arg2 : i32, i32
  }
  func.func @transform_1(%arg0: i32, %arg1: i32, %arg2: i32) -> (i32, i32) {
    %c0_i32 = arith.constant 0 : i32
    return %arg2, %arg1 : i32, i32
  }
  func.func @transform_2(%arg0: i32, %arg1: i32, %arg2: i32) -> (i32, i32) {
    %c0_i32 = arith.constant 0 : i32
    return %arg0, %arg1 : i32, i32
  }
  func.func @transform_3(%arg0: i32, %arg1: i32, %arg2: i32) -> (i32, i32, i32) {
    %c0_i32 = arith.constant 0 : i32
    %c0_i32_0 = arith.constant 0 : i32
    return %arg0, %c0_i32, %arg1 : i32, i32, i32
  }
  func.func @transform_4(%arg0: i32, %arg1: i32, %arg2: i32) -> (i32, i32, i32) {
    %c0_i32 = arith.constant 0 : i32
    %c0_i32_0 = arith.constant 0 : i32
    return %arg0, %c0_i32, %arg1 : i32, i32, i32
  }
}

module attributes {stable_mosaic.version = 11 : i64} {
  func.func @_matmul_stats_kernel(%arg0: i32, %arg1: i32, %arg2: i32, %arg3: memref<512x128xbf16, #tpu.memory_space<vmem>>, %arg4: memref<128x128xbf16, #tpu.memory_space<vmem>>, %arg5: memref<512x128xbf16, #tpu.memory_space<vmem>>, %arg6: memref<1x1x128xf32, #tpu.memory_space<vmem>>, %arg7: memref<1x1x128xf32, #tpu.memory_space<vmem>>, %arg8: memref<512x128xf32, #tpu.memory_space<vmem>>) attributes {dimension_semantics = [#tpu.dimension_semantics<parallel>, #tpu.dimension_semantics<parallel>, #tpu.dimension_semantics<arbitrary>], iteration_bounds = array<i64: 1, 1, 1>, scalar_prefetch = 0 : i64, scratch_operands = 1 : i64, tpu.core_type = #tpu.core_type<tc>, window_params = [{transform_indices = @transform_0, window_bounds = array<i64: 512, 128>}, {transform_indices = @transform_1, window_bounds = array<i64: 128, 128>}, {transform_indices = @transform_2, window_bounds = array<i64: 512, 128>}, {transform_indices = @transform_3, window_bounds = array<i64: 1, 1, 128>}, {transform_indices = @transform_4, window_bounds = array<i64: 1, 1, 128>}]} {
    %c0_i32 = arith.constant 0 : i32
    %0 = arith.cmpi eq, %arg2, %c0_i32 : i32
    %1 = arith.extui %0 : i1 to i32
    %c0_i32_0 = arith.constant 0 : i32
    %2 = arith.cmpi ne, %1, %c0_i32_0 : i32
    scf.if %2 {
      %cst_10 = arith.constant 0.000000e+00 : f32
      %12 = vector.broadcast %cst_10 : f32 to vector<512x128xf32>
      %c0_11 = arith.constant 0 : index
      %c0_12 = arith.constant 0 : index
      %13 = vector.load %arg8[%c0_11, %c0_12] : memref<512x128xf32, #tpu.memory_space<vmem>>, vector<512x128xf32>
      tpu.vector_store %arg8[%c0_11, %c0_12], %12 {strides = array<i32>} : memref<512x128xf32, #tpu.memory_space<vmem>>, vector<512x128xf32>,
    } else {
    }
    %c0 = arith.constant 0 : index
    %c0_1 = arith.constant 0 : index
    %3 = vector.load %arg8[%c0, %c0_1] : memref<512x128xf32, #tpu.memory_space<vmem>>, vector<512x128xf32>
    %c0_2 = arith.constant 0 : index
    %c0_3 = arith.constant 0 : index
    %4 = vector.load %arg3[%c0_2, %c0_3] : memref<512x128xbf16, #tpu.memory_space<vmem>>, vector<512x128xbf16>
    %c0_4 = arith.constant 0 : index
    %c0_5 = arith.constant 0 : index
    %5 = vector.load %arg4[%c0_4, %c0_5] : memref<128x128xbf16, #tpu.memory_space<vmem>>, vector<128x128xbf16>
    %cst = arith.constant dense<0.000000e+00> : vector<512x128xf32>
    %6 = tpu.matmul %4, %5, %cst {dimension_numbers = #tpu.dot_dimension_numbers<[1], [0], [0], [1], [0, 0, 1, 1], [], []>} : vector<512x128xbf16>, vector<128x128xbf16>, vector<512x128xf32> -> vector<512x128xf32>
    %7 = arith.addf %3, %6 : vector<512x128xf32>
    %c0_6 = arith.constant 0 : index
    %c0_7 = arith.constant 0 : index
    %8 = vector.load %arg8[%c0_6, %c0_7] : memref<512x128xf32, #tpu.memory_space<vmem>>, vector<512x128xf32>
    tpu.vector_store %arg8[%c0_6, %c0_7], %7 {strides = array<i32>} : memref<512x128xf32, #tpu.memory_space<vmem>>, vector<512x128xf32>,
    %c0_i32_8 = arith.constant 0 : i32
    %9 = arith.cmpi eq, %arg2, %c0_i32_8 : i32
    %10 = arith.extui %9 : i1 to i32
    %c0_i32_9 = arith.constant 0 : i32
    %11 = arith.cmpi ne, %10, %c0_i32_9 : i32
    scf.if %11 {
      %c0_10 = arith.constant 0 : index
      %c0_11 = arith.constant 0 : index
      %12 = vector.load %arg8[%c0_10, %c0_11] : memref<512x128xf32, #tpu.memory_space<vmem>>, vector<512x128xf32>
      %cst_12 = arith.constant dense<0.000000e+00> : vector<128xf32>
      %13 = vector.multi_reduction <add>, %12, %cst_12 [0] : vector<512x128xf32> to vector<128xf32>
      %14 = vector.shape_cast %13 : vector<128xf32> to vector<1x128xf32>
      %15 = arith.mulf %12, %12 : vector<512x128xf32>
      %cst_13 = arith.constant dense<0.000000e+00> : vector<128xf32>
      %16 = vector.multi_reduction <add>, %15, %cst_13 [0] : vector<512x128xf32> to vector<128xf32>
      %17 = vector.shape_cast %16 : vector<128xf32> to vector<1x128xf32>
      %18 = vector.shape_cast %14 : vector<1x128xf32> to vector<1x1x128xf32>
      %c0_14 = arith.constant 0 : index
      %c0_15 = arith.constant 0 : index
      %c0_16 = arith.constant 0 : index
      %19 = vector.load %arg6[%c0_14, %c0_15, %c0_16] : memref<1x1x128xf32, #tpu.memory_space<vmem>>, vector<1x1x128xf32>
      tpu.vector_store %arg6[%c0_14, %c0_15, %c0_16], %18 {strides = array<i32>} : memref<1x1x128xf32, #tpu.memory_space<vmem>>, vector<1x1x128xf32>,
      %20 = vector.shape_cast %17 : vector<1x128xf32> to vector<1x1x128xf32>
      %c0_17 = arith.constant 0 : index
      %c0_18 = arith.constant 0 : index
      %c0_19 = arith.constant 0 : index
      %21 = vector.load %arg7[%c0_17, %c0_18, %c0_19] : memref<1x1x128xf32, #tpu.memory_space<vmem>>, vector<1x1x128xf32>
      tpu.vector_store %arg7[%c0_17, %c0_18, %c0_19], %20 {strides = array<i32>} : memref<1x1x128xf32, #tpu.memory_space<vmem>>, vector<1x1x128xf32>,
      %22 = arith.truncf %12 : vector<512x128xf32> to vector<512x128xbf16>
      %c0_20 = arith.constant 0 : index
      %c0_21 = arith.constant 0 : index
      %23 = vector.load %arg5[%c0_20, %c0_21] : memref<512x128xbf16, #tpu.memory_space<vmem>>, vector<512x128xbf16>
      tpu.vector_store %arg5[%c0_20, %c0_21], %22 {strides = array<i32>} : memref<512x128xbf16, #tpu.memory_space<vmem>>, vector<512x128xbf16>,
    } else {
    }
    return
  }
  func.func @transform_0(%arg0: i32, %arg1: i32, %arg2: i32) -> (i32, i32) {
    %c0_i32 = arith.constant 0 : i32
    return %arg0, %arg2 : i32, i32
  }
  func.func @transform_1(%arg0: i32, %arg1: i32, %arg2: i32) -> (i32, i32) {
    %c0_i32 = arith.constant 0 : i32
    return %arg2, %arg1 : i32, i32
  }
  func.func @transform_2(%arg0: i32, %arg1: i32, %arg2: i32) -> (i32, i32) {
    %c0_i32 = arith.constant 0 : i32
    return %arg0, %arg1 : i32, i32
  }
  func.func @transform_3(%arg0: i32, %arg1: i32, %arg2: i32) -> (i32, i32, i32) {
    %c0_i32 = arith.constant 0 : i32
    %c0_i32_0 = arith.constant 0 : i32
    return %arg0, %c0_i32, %arg1 : i32, i32, i32
  }
  func.func @transform_4(%arg0: i32, %arg1: i32, %arg2: i32) -> (i32, i32, i32) {
    %c0_i32 = arith.constant 0 : i32
    %c0_i32_0 = arith.constant 0 : i32
    return %arg0, %c0_i32, %arg1 : i32, i32, i32
  }
}

module attributes {stable_mosaic.version = 11 : i64} {
  func.func @_affine_act_kernel(%arg0: i32, %arg1: memref<512x128xbf16, #tpu.memory_space<vmem>>, %arg2: memref<1x128xf32, #tpu.memory_space<vmem>>, %arg3: memref<1x128xf32, #tpu.memory_space<vmem>>, %arg4: memref<512x128xbf16, #tpu.memory_space<vmem>>) attributes {dimension_semantics = [#tpu.dimension_semantics<parallel>], iteration_bounds = array<i64: 1>, scalar_prefetch = 0 : i64, scratch_operands = 0 : i64, tpu.core_type = #tpu.core_type<tc>, window_params = [{transform_indices = @transform_0, window_bounds = array<i64: 512, 128>}, {pipeline_mode = #tpu.pipeline_mode<synchronous>, transform_indices = @transform_1, window_bounds = array<i64: 1, 128>}, {pipeline_mode = #tpu.pipeline_mode<synchronous>, transform_indices = @transform_2, window_bounds = array<i64: 1, 128>}, {transform_indices = @transform_3, window_bounds = array<i64: 512, 128>}]} {
    %c0 = arith.constant 0 : index
    %c0_0 = arith.constant 0 : index
    %0 = vector.load %arg1[%c0, %c0_0] : memref<512x128xbf16, #tpu.memory_space<vmem>>, vector<512x128xbf16>
    %1 = arith.extf %0 : vector<512x128xbf16> to vector<512x128xf32>
    %c0_1 = arith.constant 0 : index
    %c0_2 = arith.constant 0 : index
    %2 = vector.load %arg2[%c0_1, %c0_2] : memref<1x128xf32, #tpu.memory_space<vmem>>, vector<1x128xf32>
    %3 = vector.broadcast %2 : vector<1x128xf32> to vector<512x128xf32>
    %4 = arith.mulf %1, %3 : vector<512x128xf32>
    %c0_3 = arith.constant 0 : index
    %c0_4 = arith.constant 0 : index
    %5 = vector.load %arg3[%c0_3, %c0_4] : memref<1x128xf32, #tpu.memory_space<vmem>>, vector<1x128xf32>
    %6 = vector.broadcast %5 : vector<1x128xf32> to vector<512x128xf32>
    %7 = arith.addf %4, %6 : vector<512x128xf32>
    %cst = arith.constant 0.000000e+00 : f32
    %8 = vector.broadcast %cst : f32 to vector<512x128xf32>
    %9 = arith.maximumf %7, %8 : vector<512x128xf32>
    %10 = arith.truncf %9 : vector<512x128xf32> to vector<512x128xbf16>
    %c0_5 = arith.constant 0 : index
    %c0_6 = arith.constant 0 : index
    %11 = vector.load %arg4[%c0_5, %c0_6] : memref<512x128xbf16, #tpu.memory_space<vmem>>, vector<512x128xbf16>
    tpu.vector_store %arg4[%c0_5, %c0_6], %10 {strides = array<i32>} : memref<512x128xbf16, #tpu.memory_space<vmem>>, vector<512x128xbf16>,
    return
  }
  func.func @transform_0(%arg0: i32) -> (i32, i32) {
    %c0_i32 = arith.constant 0 : i32
    %c0_i32_0 = arith.constant 0 : i32
    return %arg0, %c0_i32 : i32, i32
  }
  func.func @transform_1(%arg0: i32) -> (i32, i32) {
    %c0_i32 = arith.constant 0 : i32
    %c0_i32_0 = arith.constant 0 : i32
    %c0_i32_1 = arith.constant 0 : i32
    return %c0_i32, %c0_i32_0 : i32, i32
  }
  func.func @transform_2(%arg0: i32) -> (i32, i32) {
    %c0_i32 = arith.constant 0 : i32
    %c0_i32_0 = arith.constant 0 : i32
    %c0_i32_1 = arith.constant 0 : i32
    return %c0_i32, %c0_i32_0 : i32, i32
  }
  func.func @transform_3(%arg0: i32) -> (i32, i32) {
    %c0_i32 = arith.constant 0 : i32
    %c0_i32_0 = arith.constant 0 : i32
    return %arg0, %c0_i32 : i32, i32
  }
}

module attributes {stable_mosaic.version = 11 : i64} {
  func.func @_matmul_affine_kernel(%arg0: i32, %arg1: i32, %arg2: i32, %arg3: memref<512x512xbf16, #tpu.memory_space<vmem>>, %arg4: memref<512x128xbf16, #tpu.memory_space<vmem>>, %arg5: memref<1x128xf32, #tpu.memory_space<vmem>>, %arg6: memref<1x128xf32, #tpu.memory_space<vmem>>, %arg7: memref<512x128xf32, #tpu.memory_space<vmem>>, %arg8: memref<512x128xf32, #tpu.memory_space<vmem>>) attributes {dimension_semantics = [#tpu.dimension_semantics<parallel>, #tpu.dimension_semantics<parallel>, #tpu.dimension_semantics<arbitrary>], iteration_bounds = array<i64: 4, 1, 1>, scalar_prefetch = 0 : i64, scratch_operands = 1 : i64, tpu.core_type = #tpu.core_type<tc>, window_params = [{transform_indices = @transform_0, window_bounds = array<i64: 512, 512>}, {transform_indices = @transform_1, window_bounds = array<i64: 512, 128>}, {transform_indices = @transform_2, window_bounds = array<i64: 1, 128>}, {transform_indices = @transform_3, window_bounds = array<i64: 1, 128>}, {transform_indices = @transform_4, window_bounds = array<i64: 512, 128>}]} {
    %c0_i32 = arith.constant 0 : i32
    %0 = arith.cmpi eq, %arg2, %c0_i32 : i32
    %1 = arith.extui %0 : i1 to i32
    %c0_i32_0 = arith.constant 0 : i32
    %2 = arith.cmpi ne, %1, %c0_i32_0 : i32
    scf.if %2 {
      %cst_10 = arith.constant 0.000000e+00 : f32
      %12 = vector.broadcast %cst_10 : f32 to vector<512x128xf32>
      %c0_11 = arith.constant 0 : index
      %c0_12 = arith.constant 0 : index
      %13 = vector.load %arg8[%c0_11, %c0_12] : memref<512x128xf32, #tpu.memory_space<vmem>>, vector<512x128xf32>
      tpu.vector_store %arg8[%c0_11, %c0_12], %12 {strides = array<i32>} : memref<512x128xf32, #tpu.memory_space<vmem>>, vector<512x128xf32>,
    } else {
    }
    %c0 = arith.constant 0 : index
    %c0_1 = arith.constant 0 : index
    %3 = vector.load %arg8[%c0, %c0_1] : memref<512x128xf32, #tpu.memory_space<vmem>>, vector<512x128xf32>
    %c0_2 = arith.constant 0 : index
    %c0_3 = arith.constant 0 : index
    %4 = vector.load %arg3[%c0_2, %c0_3] : memref<512x512xbf16, #tpu.memory_space<vmem>>, vector<512x512xbf16>
    %c0_4 = arith.constant 0 : index
    %c0_5 = arith.constant 0 : index
    %5 = vector.load %arg4[%c0_4, %c0_5] : memref<512x128xbf16, #tpu.memory_space<vmem>>, vector<512x128xbf16>
    %cst = arith.constant dense<0.000000e+00> : vector<512x128xf32>
    %6 = tpu.matmul %4, %5, %cst {dimension_numbers = #tpu.dot_dimension_numbers<[1], [0], [0], [1], [0, 0, 1, 1], [], []>} : vector<512x512xbf16>, vector<512x128xbf16>, vector<512x128xf32> -> vector<512x128xf32>
    %7 = arith.addf %3, %6 : vector<512x128xf32>
    %c0_6 = arith.constant 0 : index
    %c0_7 = arith.constant 0 : index
    %8 = vector.load %arg8[%c0_6, %c0_7] : memref<512x128xf32, #tpu.memory_space<vmem>>, vector<512x128xf32>
    tpu.vector_store %arg8[%c0_6, %c0_7], %7 {strides = array<i32>} : memref<512x128xf32, #tpu.memory_space<vmem>>, vector<512x128xf32>,
    %c0_i32_8 = arith.constant 0 : i32
    %9 = arith.cmpi eq, %arg2, %c0_i32_8 : i32
    %10 = arith.extui %9 : i1 to i32
    %c0_i32_9 = arith.constant 0 : i32
    %11 = arith.cmpi ne, %10, %c0_i32_9 : i32
    scf.if %11 {
      %c0_10 = arith.constant 0 : index
      %c0_11 = arith.constant 0 : index
      %12 = vector.load %arg8[%c0_10, %c0_11] : memref<512x128xf32, #tpu.memory_space<vmem>>, vector<512x128xf32>
      %c0_12 = arith.constant 0 : index
      %c0_13 = arith.constant 0 : index
      %13 = vector.load %arg5[%c0_12, %c0_13] : memref<1x128xf32, #tpu.memory_space<vmem>>, vector<1x128xf32>
      %14 = vector.broadcast %13 : vector<1x128xf32> to vector<512x128xf32>
      %15 = arith.mulf %12, %14 : vector<512x128xf32>
      %c0_14 = arith.constant 0 : index
      %c0_15 = arith.constant 0 : index
      %16 = vector.load %arg6[%c0_14, %c0_15] : memref<1x128xf32, #tpu.memory_space<vmem>>, vector<1x128xf32>
      %17 = vector.broadcast %16 : vector<1x128xf32> to vector<512x128xf32>
      %18 = arith.addf %15, %17 : vector<512x128xf32>
      %19 = math.tanh %18 : vector<512x128xf32>
      %c0_16 = arith.constant 0 : index
      %c0_17 = arith.constant 0 : index
      %20 = vector.load %arg7[%c0_16, %c0_17] : memref<512x128xf32, #tpu.memory_space<vmem>>, vector<512x128xf32>
      tpu.vector_store %arg7[%c0_16, %c0_17], %19 {strides = array<i32>} : memref<512x128xf32, #tpu.memory_space<vmem>>, vector<512x128xf32>,
    } else {
    }
    return
  }
  func.func @transform_0(%arg0: i32, %arg1: i32, %arg2: i32) -> (i32, i32) {
    %c0_i32 = arith.constant 0 : i32
    return %arg0, %arg2 : i32, i32
  }
  func.func @transform_1(%arg0: i32, %arg1: i32, %arg2: i32) -> (i32, i32) {
    %c0_i32 = arith.constant 0 : i32
    return %arg2, %arg1 : i32, i32
  }
  func.func @transform_2(%arg0: i32, %arg1: i32, %arg2: i32) -> (i32, i32) {
    %c0_i32 = arith.constant 0 : i32
    %c0_i32_0 = arith.constant 0 : i32
    return %c0_i32, %arg1 : i32, i32
  }
  func.func @transform_3(%arg0: i32, %arg1: i32, %arg2: i32) -> (i32, i32) {
    %c0_i32 = arith.constant 0 : i32
    %c0_i32_0 = arith.constant 0 : i32
    return %c0_i32, %arg1 : i32, i32
  }
  func.func @transform_4(%arg0: i32, %arg1: i32, %arg2: i32) -> (i32, i32) {
    %c0_i32 = arith.constant 0 : i32
    return %arg0, %arg1 : i32, i32
  }
}

</mosaic_0001>

<bundles_post_ra>
// kernel: resnet_decoder_forward.14
= control target key start
LH: loop header
LB: loop body
LE: loop exit
PB: predicated region body
PF: predicated region fallthrough
CT: control target
= control target key end

     0   :  { %s336_s0 = inlined_call_operand.vmem [shape: bf16[128,128], index: 0, kind: input, shape index: {}]   ;;  %s337_s1 = inlined_call_operand.vmem [shape: f32[1,128], index: 1, kind: input, shape index: {}]   ;;  %s338_s2 = inlined_call_operand.vmem [shape: f32[1,128], index: 2, kind: input, shape index: {}]   ;;  %s339_s3 = inlined_call_operand.vmem [shape: bf16[128,128], index: 3, kind: output, shape index: {}]  }
   0x1   :  { %v139_v0 = vld [vmem:[%s336_s0] sm:$0xff]   ;;  %v210_v5 = vld [vmem:[%s336_s0 + $0x8] sm:$0xff]   ;;  %v211_v8 = vld [vmem:[%s336_s0 + $0x10] sm:$0xff]  }
   0x2   :  { %v252_v1 = vld [vmem:[%s337_s1] ss:$0 sm:$0xff]  ;;  %v140_v2 = vunpack.c.l.bf16 %v139_v0  ;;  %v141_v3 = vunpack.c.h.bf16 %v139_v0  ;;  %v144_v6 = vunpack.c.l.bf16 %v210_v5  ;;  %v145_v7 = vunpack.c.h.bf16 %v210_v5  ;;  %v212_v9 = vld [vmem:[%s336_s0 + $0x18] sm:$0xff]   ;;  %v214_v35 = vld [vmem:[%s336_s0 + $0x28] sm:$0xff]  }
   0x3   :  { %v257_v4 = vld [vmem:[%s338_s2] ss:$0 sm:$0xff]  ;;  %v148_v12 = vunpack.c.l.bf16 %v211_v8  ;;  %v149_v13 = vunpack.c.h.bf16 %v211_v8  ;;  %v152_v16 = vunpack.c.l.bf16 %v212_v9  ;;  %v153_v17 = vunpack.c.h.bf16 %v212_v9  ;;  %v215_v40 = vld [vmem:[%s336_s0 + $0x30] sm:$0xff]   ;;  %v216_v45 = vld [vmem:[%s336_s0 + $0x38] sm:$0xff]  }
   0x4   :  { %v50_v10 = vmul.f32 %v252_v1, %v140_v2  ;;  %v51_v11 = vmul.f32 %v252_v1, %v141_v3  ;;  %v52_v14 = vmul.f32 %v252_v1, %v144_v6  ;;  %v53_v15 = vmul.f32 %v252_v1, %v145_v7  ;;  %v213_v26 = vld [vmem:[%s336_s0 + $0x20] sm:$0xff]  }
   0x5   :  { %v54_v20 = vmul.f32 %v252_v1, %v148_v12  ;;  %v55_v21 = vmul.f32 %v252_v1, %v149_v13  ;;  %v56_v24 = vmul.f32 %v252_v1, %v152_v16  ;;  %v57_v25 = vmul.f32 %v252_v1, %v153_v17 }
   0x6   :  { %v70_v18 = vadd.f32 %v257_v4, %v50_v10  ;;  %v71_v19 = vadd.f32 %v257_v4, %v51_v11  ;;  %v72_v22 = vadd.f32 %v257_v4, %v52_v14  ;;  %v73_v23 = vadd.f32 %v257_v4, %v53_v15 }
   0x7   :  { %v74_v29 = vadd.f32 %v257_v4, %v54_v20  ;;  %v75_v30 = vadd.f32 %v257_v4, %v55_v21  ;;  %v76_v33 = vadd.f32 %v257_v4, %v56_v24  ;;  %v77_v34 = vadd.f32 %v257_v4, %v57_v25 }
   0x8   :  { %v86_v27 = vmax.f32 %v70_v18, 0.0  ;;  %v87_v28 = vmax.f32 %v71_v19, 0.0  ;;  %v88_v31 = vmax.f32 %v72_v22, 0.0  ;;  %v89_v32 = vmax.f32 %v73_v23, 0.0 }
   0x9   :  { %v90_v37 = vmax.f32 %v74_v29, 0.0  ;;  %v91_v38 = vmax.f32 %v75_v30, 0.0  ;;  %v156_v39 = vunpack.c.l.bf16 %v213_v26  ;;  %v92_v42 = vmax.f32 %v76_v33, 0.0 }
   0xa   :  { %v173_v36 = vpack.c.bf16 %v87_v28, %v86_v27  ;;  %v178_v41 = vpack.c.bf16 %v89_v32, %v88_v31  ;;  %v93_v43 = vmax.f32 %v77_v34, 0.0  ;;  %v157_v44 = vunpack.c.h.bf16 %v213_v26 }
   0xb   :  { %v183_v46 = vpack.c.bf16 %v91_v38, %v90_v37  ;;  %v58_v47 = vmul.f32 %v252_v1, %v156_v39  ;;  %v160_v48 = vunpack.c.l.bf16 %v214_v35  ;;  %v161_v49 = vunpack.c.h.bf16 %v214_v35 }
   0xc   :  { %174 = vst [vmem:[%s339_s3] sm:$0xff] %v173_v36   ;;  %v188_v50 = vpack.c.bf16 %v93_v43, %v92_v42  ;;  %v59_v51 = vmul.f32 %v252_v1, %v157_v44  ;;  %v164_v52 = vunpack.c.l.bf16 %v215_v40  ;;  %v165_v53 = vunpack.c.h.bf16 %v215_v40 }
   0xd   :  { %217 = vst [vmem:[%s339_s3 + $0x8] sm:$0xff] %v178_v41   ;;  %v78_v54 = vadd.f32 %v257_v4, %v58_v47  ;;  %v60_v55 = vmul.f32 %v252_v1, %v160_v48  ;;  %v61_v56 = vmul.f32 %v252_v1, %v161_v49  ;;  %v168_v57 = vunpack.c.l.bf16 %v216_v45 }
   0xe   :  { %218 = vst [vmem:[%s339_s3 + $0x10] sm:$0xff] %v183_v46   ;;  %v79_v58 = vadd.f32 %v257_v4, %v59_v51  ;;  %v62_v59 = vmul.f32 %v252_v1, %v164_v52  ;;  %v63_v60 = vmul.f32 %v252_v1, %v165_v53  ;;  %v169_v61 = vunpack.c.h.bf16 %v216_v45 }
   0xf   :  { %219 = vst [vmem:[%s339_s3 + $0x18] sm:$0xff] %v188_v50   ;;  %v94_v62 = vmax.f32 %v78_v54, 0.0  ;;  %v80_v63 = vadd.f32 %v257_v4, %v60_v55  ;;  %v81_v0 = vadd.f32 %v257_v4, %v61_v56  ;;  %v64_v2 = vmul.f32 %v252_v1, %v168_v57 }
  0x10   :  { %v95_v3 = vmax.f32 %v79_v58, 0.0  ;;  %v82_v5 = vadd.f32 %v257_v4, %v62_v59  ;;  %v83_v6 = vadd.f32 %v257_v4, %v63_v60  ;;  %v65_v7 = vmul.f32 %v252_v1, %v169_v61 }
  0x11   :  { %v96_v8 = vmax.f32 %v80_v63, 0.0  ;;  %v97_v9 = vmax.f32 %v81_v0, 0.0  ;;  %v84_v10 = vadd.f32 %v257_v4, %v64_v2 }
  0x12   :  { %v193_v11 = vpack.c.bf16 %v95_v3, %v94_v62  ;;  %v98_v12 = vmax.f32 %v82_v5, 0.0  ;;  %v99_v13 = vmax.f32 %v83_v6, 0.0  ;;  %v85_v14 = vadd.f32 %v257_v4, %v65_v7 }
  0x13   :  { %v198_v15 = vpack.c.bf16 %v97_v9, %v96_v8  ;;  %v100_v16 = vmax.f32 %v84_v10, 0.0 }
  0x14   :  { %220 = vst [vmem:[%s339_s3 + $0x20] sm:$0xff] %v193_v11   ;;  %v203_v17 = vpack.c.bf16 %v99_v13, %v98_v12  ;;  %v101_v18 = vmax.f32 %v85_v14, 0.0 }
  0x15   :  { %221 = vst [vmem:[%s339_s3 + $0x28] sm:$0xff] %v198_v15  }
  0x16   :  { %222 = vst [vmem:[%s339_s3 + $0x30] sm:$0xff] %v203_v17   ;;  %v208_v1 = vpack.c.bf16 %v101_v18, %v100_v16 }
  0x18   :  { %223 = vst [vmem:[%s339_s3 + $0x38] sm:$0xff] %v208_v1  }

// kernel: resnet_decoder_forward.13
= control target key start
LH: loop header
LB: loop body
LE: loop exit
PB: predicated region body
PF: predicated region fallthrough
CT: control target
= control target key end

     0   :  { %s1338_s1 = inlined_call_operand.vmem [shape: bf16[384,128], index: 1, kind: input, shape index: {}]   ;;  %s1339_s0 = inlined_call_operand.vmem [shape: bf16[128,384], index: 0, kind: input, shape index: {}]   ;;  %s1340_s2 = inlined_call_operand.vmem [shape: bf16[128,128], index: 2, kind: output, shape index: {0}]   ;;  %s1341_s3 = inlined_call_operand.vmem [shape: f32[1,1,128], index: 3, kind: output, shape index: {1}]   ;;  %s1342_s4 = inlined_call_operand.vmem [shape: f32[1,1,128], index: 4, kind: output, shape index: {2}]  }
   0x1   :  { %v927_v0 = vld [vmem:[%s1338_s1 + $0x38] sm:$0xff]  ;;  %v926_v3 = vld [vmem:[%s1338_s1 + $0x30] sm:$0xff]  ;;  %v925_v6 = vld [vmem:[%s1338_s1 + $0x28] sm:$0xff] }
   0x2   :  { %v1046_v1 = vld [vmem:[%s1338_s1 + $0x78] sm:$0xff]  ;;  %402 = vmatpush.bf16.msra.mxu0 %v927_v0  ;;  %991 = vmatpush.bf16.msra.mxu3 %v927_v0  ;;  %v1061_v4 = vld [vmem:[%s1338_s1 + $0x70] sm:$0xff]  ;;  %v933_v7 = vld [vmem:[%s1338_s1 + $0x68] sm:$0xff] }
   0x3   :  { %v1051_v2 = vld [vmem:[%s1338_s1 + $0xb8] sm:$0xff]  ;;  %451 = vmatpush.bf16.msra.mxu1 %v1046_v1  ;;  %v1066_v5 = vld [vmem:[%s1338_s1 + $0xb0] sm:$0xff]  ;;  %v1079_v8 = vld [vmem:[%s1338_s1 + $0xa8] sm:$0xff] }
   0x4   :  { %500 = vmatpush.bf16.msra.mxu2 %v1051_v2  ;;  %v924_v9 = vld [vmem:[%s1338_s1 + $0x20] sm:$0xff]  ;;  %v923_v12 = vld [vmem:[%s1338_s1 + $0x18] sm:$0xff]  ;;  %v922_v15 = vld [vmem:[%s1338_s1 + $0x10] sm:$0xff] }
   0x5   :  { %v932_v10 = vld [vmem:[%s1338_s1 + $0x60] sm:$0xff]  ;;  %v931_v13 = vld [vmem:[%s1338_s1 + $0x58] sm:$0xff]  ;;  %v930_v16 = vld [vmem:[%s1338_s1 + $0x50] sm:$0xff] }
   0x6   :  { %403 = vmatpush.bf16.msra.mxu0 %v926_v3  ;;  %992 = vmatpush.bf16.msra.mxu3 %v926_v3  ;;  %v1091_v11 = vld [vmem:[%s1338_s1 + $0xa0] sm:$0xff]  ;;  %v1103_v14 = vld [vmem:[%s1338_s1 + $0x98] sm:$0xff]  ;;  %v1115_v17 = vld [vmem:[%s1338_s1 + $0x90] sm:$0xff] }
   0x7   :  { %452 = vmatpush.bf16.msra.mxu1 %v1061_v4  ;;  %v921_v18 = vld [vmem:[%s1338_s1 + $0x8] sm:$0xff]  ;;  %v920_v21 = vld [vmem:[%s1338_s1] sm:$0xff]  ;;  %v778_v26 = vld [vmem:[%s1339_s0 + $0x90] sm:$0xf] }
   0x8   :  { %501 = vmatpush.bf16.msra.mxu2 %v1066_v5  ;;  %v929_v19 = vld [vmem:[%s1338_s1 + $0x48] sm:$0xff]  ;;  %v928_v22 = vld [vmem:[%s1338_s1 + $0x40] sm:$0xff]  ;;  %v915_v27 = vld [vmem:[%s1339_s0 + $0x98] sm:$0xf0] }
   0x9   :  { %v1127_v20 = vld [vmem:[%s1338_s1 + $0x88] sm:$0xff]  ;;  %v1138_v23 = vld [vmem:[%s1338_s1 + $0x80] sm:$0xff]  ;;  %v708_v29 = vld [vmem:[%s1339_s0 + $0xc] sm:$0xf0]  ;;  %v779_v33 = vor.u32 %v915_v27, %v778_v26 }
   0xa   :  { %404 = vmatpush.bf16.msra.mxu0 %v925_v6  ;;  %993 = vmatpush.bf16.msra.mxu3 %v925_v6  ;;  %v706_v24 = vld [vmem:[%s1339_s0] sm:$0xf]  ;;  %v897_v25 = vld [vmem:[%s1339_s0 + $0x8] sm:$0xf0]  ;;  %v896_v28 = vld [vmem:[%s1339_s0 + $0x4] sm:$0xf] }
   0xb   :  { %453 = vmatpush.bf16.msra.mxu1 %v933_v7  ;;  %v714_v30 = vld [vmem:[%s1339_s0 + $0x8] sm:$0xf]  ;;  %v898_v31 = vld [vmem:[%s1339_s0 + $0x10] sm:$0xf0]  ;;  %v707_v32 = vor.u32 %v897_v25, %v706_v24  ;;  %v711_v34 = vor.u32 %v896_v28, %v708_v29  ;;  %v718_v36 = vld [vmem:[%s1339_s0 + $0x18] sm:$0xf] }
   0xc   :  { %502 = vmatpush.bf16.msra.mxu2 %v1079_v8  ;;  %v715_v35 = vor.u32 %v898_v31, %v714_v30  ;;  %v900_v37 = vld [vmem:[%s1339_s0 + $0x20] sm:$0xf0]  ;;  %v790_v38 = vld [vmem:[%s1339_s0 + $0xa8] sm:$0xf]  ;;  %v918_v39 = vld [vmem:[%s1339_s0 + $0xb0] sm:$0xf0] }
   0xd   :  { %v899_v40 = vld [vmem:[%s1339_s0 + $0x1c] sm:$0xf]  ;;  %v720_v41 = vld [vmem:[%s1339_s0 + $0x24] sm:$0xf0]  ;;  %v726_v42 = vld [vmem:[%s1339_s0 + $0x20] sm:$0xf]  ;;  %v719_v44 = vor.u32 %v900_v37, %v718_v36  ;;  %v791_v45 = vor.u32 %v918_v39, %v790_v38 }
   0xe   :  { %405 = vmatpush.bf16.msra.mxu0 %v924_v9  ;;  %994 = vmatpush.bf16.msra.mxu3 %v924_v9  ;;  %v901_v43 = vld [vmem:[%s1339_s0 + $0x28] sm:$0xf0]  ;;  %v723_v46 = vor.u32 %v899_v40, %v720_v41  ;;  %v730_v48 = vld [vmem:[%s1339_s0 + $0x30] sm:$0xf]  ;;  %v903_v49 = vld [vmem:[%s1339_s0 + $0x38] sm:$0xf0] }
   0xf   :  { %454 = vmatpush.bf16.msra.mxu1 %v932_v10  ;;  %v727_v47 = vor.u32 %v901_v43, %v726_v42  ;;  %v902_v50 = vld [vmem:[%s1339_s0 + $0x34] sm:$0xf]  ;;  %v780_v52 = vld [vmem:[%s1339_s0 + $0x9c] sm:$0xf0]  ;;  %v738_v54 = vld [vmem:[%s1339_s0 + $0x38] sm:$0xf]  ;;  %v731_v56 = vor.u32 %v903_v49, %v730_v48 }
  0x10   :  { %503 = vmatpush.bf16.msra.mxu2 %v1091_v11  ;;  %v914_v51 = vld [vmem:[%s1339_s0 + $0x94] sm:$0xf]  ;;  %v732_v53 = vld [vmem:[%s1339_s0 + $0x3c] sm:$0xf0]  ;;  %v904_v55 = vld [vmem:[%s1339_s0 + $0x40] sm:$0xf0] }
  0x11   :  { %v783_v57 = vor.u32 %v914_v51, %v780_v52  ;;  %v735_v58 = vor.u32 %v902_v50, %v732_v53  ;;  %v739_v59 = vor.u32 %v904_v55, %v738_v54  ;;  %v742_v60 = vld [vmem:[%s1339_s0 + $0x48] sm:$0xf]  ;;  %v906_v61 = vld [vmem:[%s1339_s0 + $0x50] sm:$0xf0]  ;;  %v905_v62 = vld [vmem:[%s1339_s0 + $0x4c] sm:$0xf] }
  0x12   :  { %406 = vmatpush.bf16.msra.mxu0 %v923_v12  ;;  %995 = vmatpush.bf16.msra.mxu3 %v923_v12  ;;  %v917_v63 = vld [vmem:[%s1339_s0 + $0xac] sm:$0xf]  ;;  %v792_v0 = vld [vmem:[%s1339_s0 + $0xb4] sm:$0xf0]  ;;  %v907_v3 = vld [vmem:[%s1339_s0 + $0x58] sm:$0xf0] }
  0x13   :  { %455 = vmatpush.bf16.msra.mxu1 %v931_v13  ;;  %v909_v9 = vld [vmem:[%s1339_s0 + $0x68] sm:$0xf0]  ;;  %v916_v12 = vld [vmem:[%s1339_s0 + $0xa0] sm:$0xf0]  ;;  %v919_v24 = vld [vmem:[%s1339_s0 + $0xb8] sm:$0xf0] }
  0x14   :  { %504 = vmatpush.bf16.msra.mxu2 %v1103_v14  ;;  %v768_v25 = vld [vmem:[%s1339_s0 + $0x84] sm:$0xf0]  ;;  %v774_v26 = vld [vmem:[%s1339_s0 + $0x80] sm:$0xf]  ;;  %v913_v27 = vld [vmem:[%s1339_s0 + $0x88] sm:$0xf0] }
  0x15   :  { %v775_v31 = vor.u32 %v913_v27, %v774_v26 }
  0x16   :  { %407 = vmatpush.bf16.msra.mxu0 %v922_v15  ;;  %996 = vmatpush.bf16.msra.mxu3 %v922_v15  ;;  %v910_v15 = vld [vmem:[%s1339_s0 + $0x70] sm:$0xf0] }
  0x17   :  { %456 = vmatpush.bf16.msra.mxu1 %v930_v16 }
  0x18   :  { %505 = vmatpush.bf16.msra.mxu2 %v1115_v17 }
  0x1a   :  { %408 = vmatpush.bf16.msra.mxu0 %v921_v18  ;;  %997 = vmatpush.bf16.msra.mxu3 %v921_v18 }
  0x1b   :  { %457 = vmatpush.bf16.msra.mxu1 %v929_v19 }
  0x1c   :  { %506 = vmatpush.bf16.msra.mxu2 %v1127_v20 }
  0x1e   :  { %409 = vmatpush.bf16.msra.mxu0 %v920_v21  ;;  %998 = vmatpush.bf16.msra.mxu3 %v920_v21  ;;  %v912_v21 = vld [vmem:[%s1339_s0 + $0x80] sm:$0xf0] }
  0x1f   :  { %458 = vmatpush.bf16.msra.mxu1 %v928_v22 }
  0x20   :  { %507 = vmatpush.bf16.msra.mxu2 %v1138_v23 }
  0x21   :  { %410 = vmatmul.bf16.vlgmr.msra.gmra.mxu0 %v707_v32  ;;  %440 = vmatmul.bf16.vlgmr.msra.gmra.mxu3 %v779_v33 }
  0x22   :  { %999 = vmatpush.bf16.msrb.mxu3 %v1046_v1  ;;  %459 = vmatmul.bf16.vlgmr.msra.gmra.mxu1 %v711_v34  ;;  %v744_v1 = vld [vmem:[%s1339_s0 + $0x54] sm:$0xf0] }
  0x23   :  { %508 = vmatmul.bf16.vlgmr.msra.gmra.mxu2 %v715_v35  ;;  %v747_v6 = vor.u32 %v905_v62, %v744_v1 }
  0x26   :  { %1000 = vmatpush.bf16.msrb.mxu3 %v1061_v4  ;;  %v743_v4 = vor.u32 %v906_v61, %v742_v60 }
  0x2a   :  { %1001 = vmatpush.bf16.msrb.mxu3 %v933_v7 }
  0x2e   :  { %1002 = vmatpush.bf16.msrb.mxu3 %v932_v10  ;;  %v908_v10 = vld [vmem:[%s1339_s0 + $0x64] sm:$0xf] }
  0x31   :  { %415 = vmatmul.bf16.gmra.mxu0 %v719_v44  ;;  %445 = vmatmul.bf16.gmra.mxu3 %v791_v45 }
  0x32   :  { %1003 = vmatpush.bf16.msrb.mxu3 %v931_v13  ;;  %464 = vmatmul.bf16.gmra.mxu1 %v723_v46  ;;  %v756_v13 = vld [vmem:[%s1339_s0 + $0x6c] sm:$0xf0] }
  0x33   :  { %513 = vmatmul.bf16.gmra.mxu2 %v727_v47  ;;  %v759_v18 = vor.u32 %v908_v10, %v756_v13 }
  0x36   :  { %1004 = vmatpush.bf16.msrb.mxu3 %v930_v16 }
  0x3a   :  { %1005 = vmatpush.bf16.msrb.mxu3 %v929_v19 }
  0x3e   :  { %1006 = vmatpush.bf16.msrb.mxu3 %v928_v22  ;;  %v911_v22 = vld [vmem:[%s1339_s0 + $0x7c] sm:$0xf] }
  0x3f   :  { %v771_v30 = vor.u32 %v911_v22, %v768_v25 }
  0x41   :  { %420 = vmatmul.bf16.gmra.mxu0 %v731_v56  ;;  %489 = vmatmul.bf16.vlgmr.msrb.gmra.mxu3 %v783_v57 }
  0x42   :  { %1007 = vmatpush.bf16.msra.mxu3 %v1051_v2  ;;  %469 = vmatmul.bf16.gmra.mxu1 %v735_v58  ;;  %v750_v2 = vld [vmem:[%s1339_s0 + $0x50] sm:$0xf] }
  0x43   :  { %518 = vmatmul.bf16.gmra.mxu2 %v739_v59  ;;  %v751_v7 = vor.u32 %v907_v3, %v750_v2 }
  0x46   :  { %1008 = vmatpush.bf16.msra.mxu3 %v1066_v5  ;;  %v795_v5 = vor.u32 %v917_v63, %v792_v0 }
  0x4a   :  { %1009 = vmatpush.bf16.msra.mxu3 %v1079_v8  ;;  %v754_v8 = vld [vmem:[%s1339_s0 + $0x60] sm:$0xf] }
  0x4b   :  { %v755_v16 = vor.u32 %v909_v9, %v754_v8 }
  0x4e   :  { %1010 = vmatpush.bf16.msra.mxu3 %v1091_v11  ;;  %v786_v11 = vld [vmem:[%s1339_s0 + $0x98] sm:$0xf] }
  0x51   :  { %425 = vmatmul.bf16.gmra.mxu0 %v743_v4  ;;  %494 = vmatmul.bf16.gmra.mxu3 %v795_v5 }
  0x52   :  { %1011 = vmatpush.bf16.msra.mxu3 %v1103_v14  ;;  %474 = vmatmul.bf16.gmra.mxu1 %v747_v6  ;;  %v762_v14 = vld [vmem:[%s1339_s0 + $0x68] sm:$0xf] }
  0x53   :  { %523 = vmatmul.bf16.gmra.mxu2 %v751_v7  ;;  %v763_v19 = vor.u32 %v910_v15, %v762_v14 }
  0x56   :  { %1012 = vmatpush.bf16.msra.mxu3 %v1115_v17  ;;  %v787_v17 = vor.u32 %v916_v12, %v786_v11 }
  0x5a   :  { %1013 = vmatpush.bf16.msra.mxu3 %v1127_v20  ;;  %v766_v20 = vld [vmem:[%s1339_s0 + $0x78] sm:$0xf] }
  0x5b   :  { %v767_v28 = vor.u32 %v912_v21, %v766_v20 }
  0x5e   :  { %1014 = vmatpush.bf16.msra.mxu3 %v1138_v23  ;;  %v798_v23 = vld [vmem:[%s1339_s0 + $0xb0] sm:$0xf] }
  0x5f   :  { %v799_v29 = vor.u32 %v919_v24, %v798_v23 }
  0x61   :  { %430 = vmatmul.bf16.gmra.mxu0 %v755_v16  ;;  %538 = vmatmul.bf16.vlgmr.msra.gmra.mxu3 %v787_v17 }
  0x62   :  { %479 = vmatmul.bf16.gmra.mxu1 %v759_v18 }
  0x63   :  { %528 = vmatmul.bf16.gmra.mxu2 %v763_v19 }
  0x71   :  { %435 = vmatmul.bf16.gmra.mxu0 %v767_v28  ;;  %543 = vmatmul.bf16.gmra.mxu3 %v799_v29 }
  0x72   :  { %484 = vmatmul.bf16.gmra.mxu1 %v771_v30 }
  0x73   :  { %533 = vmatmul.bf16.gmra.mxu2 %v775_v31 }
  0x9e   :  { %v411_v32 = vpop.f32.mrf.mxu0 }
  0x9f   :  { %v460_v33 = vpop.f32.mrf.mxu1 }
  0xa0   :  { %v461_v38 = vadd.f32 %v460_v33, %v411_v32 }
  0xa4   :  { %v1296_v34 = vpop.f32.mrf.mxu3 }
  0xa6   :  { %v509_v35 = vpop.f32.mrf.mxu2  ;;  %v413_v36 = vpop.f32.mrf.mxu0 }
  0xa7   :  { %v462_v37 = vpop.f32.mrf.mxu1  ;;  %v510_v42 = vadd.f32 %v509_v35, %v461_v38 }
  0xa8   :  { %v463_v39 = vadd.f32 %v462_v37, %v413_v36 }
  0xa9   :  { %v621_v28 = vmul.f32 %v510_v42, %v510_v42 }
  0xac   :  { %v443_v40 = vpop.f32.mrf.mxu3 }
  0xae   :  { %v511_v41 = vpop.f32.mrf.mxu2  ;;  %v416_v44 = vpop.f32.mrf.mxu0 }
  0xaf   :  { %v512_v43 = vadd.f32 %v511_v41, %v463_v39  ;;  %v465_v45 = vpop.f32.mrf.mxu1 }
  0xb0   :  { %v466_v51 = vadd.f32 %v465_v45, %v416_v44 }
  0xb1   :  { %v947_v46 = vpack.c.bf16 %v512_v43, %v510_v42  ;;  %v622_v26 = vmul.f32 %v512_v43, %v512_v43  ;;  %v600_v31 = vadd.f32 %v512_v43, %v510_v42 }
  0xb3   :  { %948 = vst [vmem:[%s1340_s2] sm:$0xff] %v947_v46   ;;  %v637_v36 = vadd.f32 %v622_v26, %v621_v28 }
  0xb4   :  { %v1301_v47 = vpop.f32.mrf.mxu3 }
  0xb6   :  { %v514_v48 = vpop.f32.mrf.mxu2  ;;  %v418_v49 = vpop.f32.mrf.mxu0 }
  0xb7   :  { %v467_v50 = vpop.f32.mrf.mxu1  ;;  %v515_v55 = vadd.f32 %v514_v48, %v466_v51 }
  0xb8   :  { %v468_v52 = vadd.f32 %v467_v50, %v418_v49 }
  0xb9   :  { %v623_v32 = vmul.f32 %v515_v55, %v515_v55  ;;  %v601_v41 = vadd.f32 %v600_v31, %v515_v55 }
  0xbb   :  { %v638_v51 = vadd.f32 %v637_v36, %v623_v32 }
  0xbc   :  { %v1303_v53 = vpop.f32.mrf.mxu3 }
  0xbe   :  { %v516_v54 = vpop.f32.mrf.mxu2  ;;  %v421_v57 = vpop.f32.mrf.mxu0 }
  0xbf   :  { %v517_v56 = vadd.f32 %v516_v54, %v468_v52  ;;  %v470_v58 = vpop.f32.mrf.mxu1 }
  0xc0   :  { %v471_v0 = vadd.f32 %v470_v58, %v421_v57 }
  0xc1   :  { %v952_v59 = vpack.c.bf16 %v517_v56, %v515_v55  ;;  %v624_v44 = vmul.f32 %v517_v56, %v517_v56  ;;  %v602_v52 = vadd.f32 %v601_v41, %v517_v56 }
  0xc3   :  { %984 = vst [vmem:[%s1340_s2 + $0x8] sm:$0xff] %v952_v59  }
  0xc4   :  { %v490_v60 = vpop.f32.mrf.mxu3 }
  0xc5   :  { %v491_v29 = vadd.f32 %v490_v60, %v1296_v34 }
  0xc6   :  { %v519_v61 = vpop.f32.mrf.mxu2  ;;  %v423_v62 = vpop.f32.mrf.mxu0 }
  0xc7   :  { %v472_v63 = vpop.f32.mrf.mxu1  ;;  %v520_v4 = vadd.f32 %v519_v61, %v471_v0 }
  0xc8   :  { %v473_v1 = vadd.f32 %v472_v63, %v423_v62 }
  0xc9   :  { %v625_v54 = vmul.f32 %v520_v4, %v520_v4  ;;  %v603_v42 = vadd.f32 %v602_v52, %v520_v4 }
  0xcc   :  { %v492_v2 = vpop.f32.mrf.mxu3 }
  0xcd   :  { %v493_v30 = vadd.f32 %v492_v2, %v443_v40  ;;  %v639_v40 = vadd.f32 %v638_v51, %v624_v44 }
  0xce   :  { %v521_v3 = vpop.f32.mrf.mxu2  ;;  %v426_v6 = vpop.f32.mrf.mxu0 }
  0xcf   :  { %v522_v5 = vadd.f32 %v521_v3, %v473_v1  ;;  %v475_v7 = vpop.f32.mrf.mxu1  ;;  %v640_v55 = vadd.f32 %v639_v40, %v625_v54 }
  0xd0   :  { %v476_v13 = vadd.f32 %v475_v7, %v426_v6 }
  0xd1   :  { %v957_v8 = vpack.c.bf16 %v522_v5, %v520_v4  ;;  %v626_v43 = vmul.f32 %v522_v5, %v522_v5  ;;  %v604_v57 = vadd.f32 %v603_v42, %v522_v5 }
  0xd3   :  { %985 = vst [vmem:[%s1340_s2 + $0x10] sm:$0xff] %v957_v8   ;;  %v641_v56 = vadd.f32 %v640_v55, %v626_v43 }
  0xd4   :  { %v1311_v9 = vpop.f32.mrf.mxu3 }
  0xd6   :  { %v524_v10 = vpop.f32.mrf.mxu2  ;;  %v428_v11 = vpop.f32.mrf.mxu0 }
  0xd7   :  { %v477_v12 = vpop.f32.mrf.mxu1  ;;  %v525_v17 = vadd.f32 %v524_v10, %v476_v13 }
  0xd8   :  { %v478_v14 = vadd.f32 %v477_v12, %v428_v11  ;;  %v496_v11 = vadd.f32 %v1311_v9, %v1301_v47 }
  0xd9   :  { %v627_v58 = vmul.f32 %v525_v17, %v525_v17  ;;  %v605_v62 = vadd.f32 %v604_v57, %v525_v17 }
  0xdb   :  { %v642_v0 = vadd.f32 %v641_v56, %v627_v58 }
  0xdc   :  { %v497_v15 = vpop.f32.mrf.mxu3 }
  0xdd   :  { %v498_v5 = vadd.f32 %v497_v15, %v1303_v53 }
  0xde   :  { %v526_v16 = vpop.f32.mrf.mxu2  ;;  %v431_v19 = vpop.f32.mrf.mxu0 }
  0xdf   :  { %v527_v18 = vadd.f32 %v526_v16, %v478_v14  ;;  %v480_v20 = vpop.f32.mrf.mxu1 }
  0xe0   :  { %v481_v27 = vadd.f32 %v480_v20, %v431_v19 }
  0xe1   :  { %v962_v21 = vpack.c.bf16 %v527_v18, %v525_v17  ;;  %v628_v63 = vmul.f32 %v527_v18, %v527_v18  ;;  %v606_v1 = vadd.f32 %v605_v62, %v527_v18 }
  0xe3   :  { %986 = vst [vmem:[%s1340_s2 + $0x18] sm:$0xff] %v962_v21   ;;  %v643_v7 = vadd.f32 %v642_v0, %v628_v63 }
  0xe4   :  { %v539_v22 = vpop.f32.mrf.mxu3 }
  0xe5   :  { %v540_v37 = vadd.f32 %v539_v22, %v491_v29 }
  0xe6   :  { %v529_v23 = vpop.f32.mrf.mxu2  ;;  %v433_v24 = vpop.f32.mrf.mxu0 }
  0xe7   :  { %v482_v25 = vpop.f32.mrf.mxu1  ;;  %v530_v45 = vadd.f32 %v529_v23, %v481_v27  ;;  %v633_v47 = vmul.f32 %v540_v37, %v540_v37 }
  0xe8   :  { %v483_v33 = vadd.f32 %v482_v25, %v433_v24 }
  0xe9   :  { %v629_v2 = vmul.f32 %v530_v45, %v530_v45  ;;  %v607_v8 = vadd.f32 %v606_v1, %v530_v45 }
  0xeb   :  { %v644_v12 = vadd.f32 %v643_v7, %v629_v2 }
  0xec   :  { %v541_v35 = vpop.f32.mrf.mxu3 }
  0xed   :  { %v542_v39 = vadd.f32 %v541_v35, %v493_v30 }
  0xee   :  { %v531_v38 = vpop.f32.mrf.mxu2  ;;  %v436_v49 = vpop.f32.mrf.mxu0 }
  0xef   :  { %v532_v46 = vadd.f32 %v531_v38, %v483_v33  ;;  %v977_v48 = vpack.c.bf16 %v542_v39, %v540_v37  ;;  %v485_v50 = vpop.f32.mrf.mxu1  ;;  %v634_v15 = vmul.f32 %v542_v39, %v542_v39 }
  0xf0   :  { %v486_v59 = vadd.f32 %v485_v50, %v436_v49 }
  0xf1   :  { %v967_v34 = vpack.c.bf16 %v532_v46, %v530_v45  ;;  %989 = vst [vmem:[%s1340_s2 + $0x30] sm:$0xff] %v977_v48   ;;  %v630_v10 = vmul.f32 %v532_v46, %v532_v46  ;;  %v608_v13 = vadd.f32 %v607_v8, %v532_v46 }
  0xf3   :  { %987 = vst [vmem:[%s1340_s2 + $0x20] sm:$0xff] %v967_v34   ;;  %v645_v21 = vadd.f32 %v644_v12, %v630_v10 }
  0xf4   :  { %v544_v60 = vpop.f32.mrf.mxu3 }
  0xf5   :  { %v545_v19 = vadd.f32 %v544_v60, %v496_v11 }
  0xf6   :  { %v534_v61 = vpop.f32.mrf.mxu2  ;;  %v438_v6 = vpop.f32.mrf.mxu0 }
  0xf7   :  { %v535_v3 = vadd.f32 %v534_v61, %v486_v59  ;;  %v487_v4 = vpop.f32.mrf.mxu1  ;;  %v635_v31 = vmul.f32 %v545_v19, %v545_v19 }
  0xf8   :  { %v488_v16 = vadd.f32 %v487_v4, %v438_v6 }
  0xf9   :  { %v631_v14 = vmul.f32 %v535_v3, %v535_v3  ;;  %v609_v22 = vadd.f32 %v608_v13, %v535_v3 }
  0xfb   :  { %v646_v25 = vadd.f32 %v645_v21, %v631_v14 }
  0xfc   :  { %v546_v17 = vpop.f32.mrf.mxu3 }
  0xfd   :  { %v547_v18 = vadd.f32 %v546_v17, %v498_v5 }
  0xfe   :  { %v536_v20 = vpop.f32.mrf.mxu2 }
  0xff   :  { %v537_v23 = vadd.f32 %v536_v20, %v488_v16  ;;  %v982_v24 = vpack.c.bf16 %v547_v18, %v545_v19  ;;  %v636_v36 = vmul.f32 %v547_v18, %v547_v18 }
 0x101   :  { %v610_v26 = vadd.f32 %v609_v22, %v537_v23  ;;  %v632_v27 = vmul.f32 %v537_v23, %v537_v23  ;;  %v972_v28 = vpack.c.bf16 %v537_v23, %v535_v3  ;;  %990 = vst [vmem:[%s1340_s2 + $0x38] sm:$0xff] %v982_v24  }
 0x103   :  { %v611_v53 = vadd.f32 %v610_v26, %v540_v37  ;;  %v647_v9 = vadd.f32 %v646_v25, %v632_v27  ;;  %988 = vst [vmem:[%s1340_s2 + $0x28] sm:$0xff] %v972_v28  }
 0x105   :  { %v648_v29 = vadd.f32 %v647_v9, %v633_v47  ;;  %v612_v30 = vadd.f32 %v611_v53, %v542_v39 }
 0x107   :  { %v613_v32 = vadd.f32 %v612_v30, %v545_v19  ;;  %v649_v33 = vadd.f32 %v648_v29, %v634_v15 }
 0x109   :  { %v614_v35 = vadd.f32 %v613_v32, %v547_v18  ;;  %v650_v38 = vadd.f32 %v649_v33, %v635_v31 }
 0x10b   :  { %v615_v41 = vrot.slane %v614_v35, 4  ;;  %v651_v44 = vadd.f32 %v650_v38, %v636_v36 }
 0x10d   :  { %v616_v45 = vadd.f32 %v615_v41, %v614_v35  ;;  %v652_v46 = vrot.slane %v651_v44, 4 }
 0x10f   :  { %v617_v48 = vrot.slane %v616_v45, 2  ;;  %v653_v37 = vadd.f32 %v652_v46, %v651_v44 }
 0x111   :  { %v618_v49 = vadd.f32 %v617_v48, %v616_v45  ;;  %v654_v50 = vrot.slane %v653_v37, 2 }
 0x113   :  { %v619_v51 = vrot.slane %v618_v49, 1  ;;  %v655_v52 = vadd.f32 %v654_v50, %v653_v37 }
 0x115   :  { %v620_v54 = vadd.f32 %v619_v51, %v618_v49  ;;  %v656_v34 = vrot.slane %v655_v52, 1 }
 0x117   :  { %v657_v40 = vadd.f32 %v656_v34, %v655_v52  ;;  %658 = vst [vmem:[%s1341_s3] sm:$0x1] %v620_v54 }
 0x119   :  { %659 = vst [vmem:[%s1342_s4] sm:$0x1] %v657_v40 }

// kernel: resnet_decoder_forward.16
= control target key start
LH: loop header
LB: loop body
LE: loop exit
PB: predicated region body
PF: predicated region fallthrough
CT: control target
= control target key end

     0   :  { %s439_s0 = inlined_call_operand.vmem [shape: bf16[128,128], index: 0, kind: input, shape index: {}]   ;;  %s440_s1 = inlined_call_operand.vmem [shape: bf16[128,128], index: 1, kind: input, shape index: {}]   ;;  %s441_s2 = inlined_call_operand.vmem [shape: f32[1,128], index: 2, kind: input, shape index: {}]   ;;  %s442_s3 = inlined_call_operand.vmem [shape: f32[1,128], index: 3, kind: input, shape index: {}]   ;;  %s443_s4 = inlined_call_operand.vmem [shape: bf16[128,128], index: 4, kind: output, shape index: {}]  }
   0x1   :  { %v174_v0 = vld [vmem:[%s439_s0] sm:$0xff]   ;;  %v277_v8 = vld [vmem:[%s439_s0 + $0x8] sm:$0xff]   ;;  %v278_v10 = vld [vmem:[%s439_s0 + $0x10] sm:$0xff]  }
   0x2   :  { %v331_v1 = vld [vmem:[%s441_s2] ss:$0 sm:$0xff]  ;;  %v175_v2 = vunpack.c.l.bf16 %v174_v0  ;;  %v176_v3 = vunpack.c.h.bf16 %v174_v0  ;;  %v284_v9 = vld [vmem:[%s440_s1 + $0x8] sm:$0xff]   ;;  %v179_v13 = vunpack.c.l.bf16 %v277_v8  ;;  %v180_v14 = vunpack.c.h.bf16 %v277_v8  ;;  %v285_v15 = vld [vmem:[%s440_s1 + $0x10] sm:$0xff]  }
   0x3   :  { %v336_v4 = vld [vmem:[%s442_s3] ss:$0 sm:$0xff]  ;;  %v211_v16 = vunpack.c.l.bf16 %v284_v9  ;;  %v212_v17 = vunpack.c.h.bf16 %v284_v9  ;;  %v183_v18 = vunpack.c.l.bf16 %v278_v10  ;;  %v184_v19 = vunpack.c.h.bf16 %v278_v10  ;;  %v279_v24 = vld [vmem:[%s439_s0 + $0x18] sm:$0xff]   ;;  %v281_v48 = vld [vmem:[%s439_s0 + $0x28] sm:$0xff]  }
   0x4   :  { %v206_v5 = vld [vmem:[%s440_s1] sm:$0xff]   ;;  %v53_v11 = vmul.f32 %v331_v1, %v175_v2  ;;  %v54_v12 = vmul.f32 %v331_v1, %v176_v3  ;;  %v55_v22 = vmul.f32 %v331_v1, %v179_v13  ;;  %v56_v23 = vmul.f32 %v331_v1, %v180_v14  ;;  %v286_v29 = vld [vmem:[%s440_s1 + $0x18] sm:$0xff]   ;;  %v288_v53 = vld [vmem:[%s440_s1 + $0x28] sm:$0xff]  }
   0x5   :  { %v207_v6 = vunpack.c.l.bf16 %v206_v5  ;;  %v208_v7 = vunpack.c.h.bf16 %v206_v5  ;;  %v57_v25 = vmul.f32 %v331_v1, %v183_v18  ;;  %v58_v26 = vmul.f32 %v331_v1, %v184_v19  ;;  %v280_v38 = vld [vmem:[%s439_s0 + $0x20] sm:$0xff]   ;;  %v282_v62 = vld [vmem:[%s439_s0 + $0x30] sm:$0xff]   ;;  %v283_v14 = vld [vmem:[%s439_s0 + $0x38] sm:$0xff]  }
   0x6   :  { %v73_v20 = vadd.f32 %v336_v4, %v53_v11  ;;  %v74_v21 = vadd.f32 %v336_v4, %v54_v12  ;;  %v215_v27 = vunpack.c.l.bf16 %v285_v15  ;;  %v216_v28 = vunpack.c.h.bf16 %v285_v15  ;;  %v287_v43 = vld [vmem:[%s440_s1 + $0x20] sm:$0xff]   ;;  %v289_v5 = vld [vmem:[%s440_s1 + $0x30] sm:$0xff]  }
   0x7   :  { %v75_v32 = vadd.f32 %v336_v4, %v55_v22  ;;  %v76_v33 = vadd.f32 %v336_v4, %v56_v23  ;;  %v77_v34 = vadd.f32 %v336_v4, %v57_v25  ;;  %v78_v35 = vadd.f32 %v336_v4, %v58_v26  ;;  %v290_v23 = vld [vmem:[%s440_s1 + $0x38] sm:$0xff]  }
   0x8   :  { %v121_v30 = vadd.f32 %v207_v6, %v73_v20  ;;  %v122_v31 = vadd.f32 %v208_v7, %v74_v21  ;;  %v187_v36 = vunpack.c.l.bf16 %v279_v24  ;;  %v188_v37 = vunpack.c.h.bf16 %v279_v24 }
   0x9   :  { %v123_v40 = vadd.f32 %v211_v16, %v75_v32  ;;  %v124_v41 = vadd.f32 %v212_v17, %v76_v33  ;;  %v219_v42 = vunpack.c.l.bf16 %v286_v29  ;;  %v125_v44 = vadd.f32 %v215_v27, %v77_v34 }
   0xa   :  { %v240_v39 = vpack.c.bf16 %v122_v31, %v121_v30  ;;  %v126_v45 = vadd.f32 %v216_v28, %v78_v35  ;;  %v59_v46 = vmul.f32 %v331_v1, %v187_v36  ;;  %v60_v47 = vmul.f32 %v331_v1, %v188_v37 }
   0xb   :  { %v245_v49 = vpack.c.bf16 %v124_v41, %v123_v40  ;;  %v220_v50 = vunpack.c.h.bf16 %v286_v29  ;;  %v191_v51 = vunpack.c.l.bf16 %v280_v38  ;;  %v192_v52 = vunpack.c.h.bf16 %v280_v38 }
   0xc   :  { %241 = vst [vmem:[%s443_s4] sm:$0xff] %v240_v39   ;;  %v250_v54 = vpack.c.bf16 %v126_v45, %v125_v44  ;;  %v79_v55 = vadd.f32 %v336_v4, %v59_v46  ;;  %v80_v56 = vadd.f32 %v336_v4, %v60_v47  ;;  %v223_v57 = vunpack.c.l.bf16 %v287_v43 }
   0xd   :  { %291 = vst [vmem:[%s443_s4 + $0x8] sm:$0xff] %v245_v49   ;;  %v61_v58 = vmul.f32 %v331_v1, %v191_v51  ;;  %v62_v59 = vmul.f32 %v331_v1, %v192_v52  ;;  %v224_v60 = vunpack.c.h.bf16 %v287_v43  ;;  %v195_v61 = vunpack.c.l.bf16 %v281_v48 }
   0xe   :  { %292 = vst [vmem:[%s443_s4 + $0x10] sm:$0xff] %v250_v54   ;;  %v127_v63 = vadd.f32 %v219_v42, %v79_v55  ;;  %v128_v0 = vadd.f32 %v220_v50, %v80_v56  ;;  %v196_v2 = vunpack.c.h.bf16 %v281_v48  ;;  %v227_v3 = vunpack.c.l.bf16 %v288_v53 }
   0xf   :  { %v81_v6 = vadd.f32 %v336_v4, %v61_v58  ;;  %v82_v7 = vadd.f32 %v336_v4, %v62_v59  ;;  %v63_v8 = vmul.f32 %v331_v1, %v195_v61  ;;  %v228_v9 = vunpack.c.h.bf16 %v288_v53 }
  0x10   :  { %v255_v10 = vpack.c.bf16 %v128_v0, %v127_v63  ;;  %v64_v11 = vmul.f32 %v331_v1, %v196_v2  ;;  %v199_v12 = vunpack.c.l.bf16 %v282_v62  ;;  %v200_v13 = vunpack.c.h.bf16 %v282_v62 }
  0x11   :  { %v129_v15 = vadd.f32 %v223_v57, %v81_v6  ;;  %v130_v16 = vadd.f32 %v224_v60, %v82_v7  ;;  %v83_v17 = vadd.f32 %v336_v4, %v63_v8  ;;  %v231_v18 = vunpack.c.l.bf16 %v289_v5 }
  0x12   :  { %293 = vst [vmem:[%s443_s4 + $0x18] sm:$0xff] %v255_v10   ;;  %v84_v19 = vadd.f32 %v336_v4, %v64_v11  ;;  %v65_v20 = vmul.f32 %v331_v1, %v199_v12  ;;  %v66_v21 = vmul.f32 %v331_v1, %v200_v13  ;;  %v232_v22 = vunpack.c.h.bf16 %v289_v5 }
  0x13   :  { %v260_v24 = vpack.c.bf16 %v130_v16, %v129_v15  ;;  %v131_v25 = vadd.f32 %v227_v3, %v83_v17  ;;  %v203_v26 = vunpack.c.l.bf16 %v283_v14  ;;  %v204_v27 = vunpack.c.h.bf16 %v283_v14 }
  0x14   :  { %v132_v28 = vadd.f32 %v228_v9, %v84_v19  ;;  %v85_v29 = vadd.f32 %v336_v4, %v65_v20  ;;  %v86_v30 = vadd.f32 %v336_v4, %v66_v21  ;;  %v235_v33 = vunpack.c.l.bf16 %v290_v23 }
  0x15   :  { %294 = vst [vmem:[%s443_s4 + $0x20] sm:$0xff] %v260_v24   ;;  %v67_v31 = vmul.f32 %v331_v1, %v203_v26  ;;  %v68_v32 = vmul.f32 %v331_v1, %v204_v27  ;;  %v236_v34 = vunpack.c.h.bf16 %v290_v23 }
  0x16   :  { %v265_v35 = vpack.c.bf16 %v132_v28, %v131_v25  ;;  %v133_v36 = vadd.f32 %v231_v18, %v85_v29  ;;  %v134_v37 = vadd.f32 %v232_v22, %v86_v30 }
  0x17   :  { %v87_v38 = vadd.f32 %v336_v4, %v67_v31  ;;  %v88_v39 = vadd.f32 %v336_v4, %v68_v32 }
  0x18   :  { %295 = vst [vmem:[%s443_s4 + $0x28] sm:$0xff] %v265_v35   ;;  %v270_v40 = vpack.c.bf16 %v134_v37, %v133_v36 }
  0x19   :  { %v135_v41 = vadd.f32 %v235_v33, %v87_v38  ;;  %v136_v42 = vadd.f32 %v236_v34, %v88_v39 }
  0x1a   :  { %296 = vst [vmem:[%s443_s4 + $0x30] sm:$0xff] %v270_v40  }
  0x1b   :  { %v275_v1 = vpack.c.bf16 %v136_v42, %v135_v41 }
  0x1d   :  { %297 = vst [vmem:[%s443_s4 + $0x38] sm:$0xff] %v275_v1  }

// kernel: tile.23
= control target key start
LH: loop header
LB: loop body
LE: loop exit
PB: predicated region body
PF: predicated region fallthrough
CT: control target
= control target key end

     0   :  { %s22_s0 = inlined_call_operand.vmem [shape: f32[16], index: 0, kind: input, shape index: {}]   ;;  %s23_s1 = inlined_call_operand.vmem [shape: f32[4,16], index: 1, kind: output, shape index: {}]  }
   0x1   :  { %v4_v0 = vld [vmem:[%s22_s0] ss:$0 sm:$0xff] }
   0x2   :  { %5 = vst [vmem:[%s23_s1] sm:$0xf] %v4_v0 }

// kernel: tile.28
= control target key start
LH: loop header
LB: loop body
LE: loop exit
PB: predicated region body
PF: predicated region fallthrough
CT: control target
= control target key end

     0   :  { %s37_s8 = smov 16   ;;  %s38_s9 = smov 32   ;;  %vm7_vm0 = vcmask 130048   ;;  %vm13_vm1 = vcmask 523648   ;;  %vm19_vm2 = vcmask 392448   ;;  %vm25_vm3 = vcmask 261248   ;;  %s55_s0 = inlined_call_operand.vmem [shape: f32[4,16], index: 0, kind: input, shape index: {}]   ;;  %s56_s1 = inlined_call_operand.vmem [shape: f32[1,64], index: 1, kind: output, shape index: {}]  }
   0x1   :  { %v4_v0 = vld [vmem:[%s55_s0] sm:$0xf]  ;;  %s36_s0 = smov 48  }
   0x2   :  { %5 = vst [vmem:[#allocation1] sm:$0xf] %v4_v0 }
   0x9   :  { %v10_v1 = vld [vmem:[#allocation1 + $0x3] sm:$0x1]   ;;  %v22_v2 = vld [vmem:[#allocation1 + $0x1] sm:$0x1]   ;;  %v16_v3 = vld [vmem:[#allocation1 + $0x2] sm:$0x1]  }
   0xa   :  { %11 = vrot.lane.b32.xlu0 %v10_v1, %s36_s0  ;;  %23 = vrot.lane.b32.xlu1 %v22_v2, %s37_s8  ;;  %v6_v4 = vld [vmem:[#allocation1] sm:$0x1]  }
   0xb   :  { %8 = vst.msk [vmem:[#allocation0] sm:$0x1] %vm7_vm0, %v6_v4  }
  0x12   :  { %17 = vrot.lane.b32.xlu0 %v16_v3, %s38_s9 }
  0x7c   :  { %v12_v5 = vpop.permute.xlu0 %11   ;;  %v24_v6 = vpop.permute.xlu1 %23  }
  0x7d   :  { %14 = vst.msk [vmem:[#allocation0] sm:$0x1] %vm13_vm1, %v12_v5  }
  0x84   :  { %v18_v7 = vpop.permute.xlu0 %17  }
  0x85   :  { %20 = vst.msk [vmem:[#allocation0] sm:$0x1] %vm19_vm2, %v18_v7  }
  0x86   :  { %26 = vst.msk [vmem:[#allocation0] sm:$0x1] %vm25_vm3, %v24_v6  }
  0x8d   :  { %v29_v8 = vld [vmem:[#allocation0] sm:$0x1] }
  0x8e   :  { %32 = vst [vmem:[%s56_s1] sm:$0x1] %v29_v8 }

// kernel: resnet_decoder_forward.21
= control target key start
LH: loop header
LB: loop body
LE: loop exit
PB: predicated region body
PF: predicated region fallthrough
CT: control target
= control target key end

     0   :  { %s642_s1 = inlined_call_operand.vmem [shape: bf16[128,128], index: 1, kind: input, shape index: {}]   ;;  %s643_s0 = inlined_call_operand.vmem [shape: bf16[128,128], index: 0, kind: input, shape index: {}]   ;;  %s644_s2 = inlined_call_operand.vmem [shape: bf16[128,128], index: 2, kind: output, shape index: {0}]   ;;  %s645_s3 = inlined_call_operand.vmem [shape: f32[1,1,128], index: 3, kind: output, shape index: {1}]   ;;  %s646_s4 = inlined_call_operand.vmem [shape: f32[1,1,128], index: 4, kind: output, shape index: {2}]  }
   0x1   :  { %v461_v0 = vld [vmem:[%s642_s1 + $0x38] sm:$0xff]  ;;  %v460_v1 = vld [vmem:[%s642_s1 + $0x30] sm:$0xff]  ;;  %v459_v2 = vld [vmem:[%s642_s1 + $0x28] sm:$0xff] }
   0x2   :  { %178 = vmatpush.bf16.msra.mxu0 %v461_v0  ;;  %509 = vmatpush.bf16.msra.mxu1 %v461_v0  ;;  %v458_v3 = vld [vmem:[%s642_s1 + $0x20] sm:$0xff]  ;;  %v457_v4 = vld [vmem:[%s642_s1 + $0x18] sm:$0xff]  ;;  %v456_v5 = vld [vmem:[%s642_s1 + $0x10] sm:$0xff] }
   0x3   :  { %510 = vmatpush.bf16.msra.mxu2 %v461_v0  ;;  %511 = vmatpush.bf16.msra.mxu3 %v461_v0  ;;  %v455_v6 = vld [vmem:[%s642_s1 + $0x8] sm:$0xff]  ;;  %v454_v7 = vld [vmem:[%s642_s1] sm:$0xff]  ;;  %v448_v9 = vld [vmem:[%s643_s0 + $0x10] sm:$0xff] }
   0x4   :  { %v446_v8 = vld [vmem:[%s643_s0] sm:$0xff]  ;;  %v452_v11 = vld [vmem:[%s643_s0 + $0x30] sm:$0xff]  ;;  %v447_v12 = vld [vmem:[%s643_s0 + $0x8] sm:$0xff] }
   0x5   :  { %v450_v10 = vld [vmem:[%s643_s0 + $0x20] sm:$0xff]  ;;  %v449_v13 = vld [vmem:[%s643_s0 + $0x18] sm:$0xff]  ;;  %v451_v14 = vld [vmem:[%s643_s0 + $0x28] sm:$0xff] }
   0x6   :  { %179 = vmatpush.bf16.msra.mxu0 %v460_v1  ;;  %512 = vmatpush.bf16.msra.mxu1 %v460_v1  ;;  %v453_v15 = vld [vmem:[%s643_s0 + $0x38] sm:$0xff] }
   0x7   :  { %513 = vmatpush.bf16.msra.mxu2 %v460_v1  ;;  %514 = vmatpush.bf16.msra.mxu3 %v460_v1 }
   0xa   :  { %180 = vmatpush.bf16.msra.mxu0 %v459_v2  ;;  %515 = vmatpush.bf16.msra.mxu1 %v459_v2 }
   0xb   :  { %516 = vmatpush.bf16.msra.mxu2 %v459_v2  ;;  %517 = vmatpush.bf16.msra.mxu3 %v459_v2 }
   0xe   :  { %181 = vmatpush.bf16.msra.mxu0 %v458_v3  ;;  %518 = vmatpush.bf16.msra.mxu1 %v458_v3 }
   0xf   :  { %519 = vmatpush.bf16.msra.mxu2 %v458_v3  ;;  %520 = vmatpush.bf16.msra.mxu3 %v458_v3 }
  0x12   :  { %182 = vmatpush.bf16.msra.mxu0 %v457_v4  ;;  %521 = vmatpush.bf16.msra.mxu1 %v457_v4 }
  0x13   :  { %522 = vmatpush.bf16.msra.mxu2 %v457_v4  ;;  %523 = vmatpush.bf16.msra.mxu3 %v457_v4 }
  0x16   :  { %183 = vmatpush.bf16.msra.mxu0 %v456_v5  ;;  %524 = vmatpush.bf16.msra.mxu1 %v456_v5 }
  0x17   :  { %525 = vmatpush.bf16.msra.mxu2 %v456_v5  ;;  %526 = vmatpush.bf16.msra.mxu3 %v456_v5 }
  0x1a   :  { %184 = vmatpush.bf16.msra.mxu0 %v455_v6  ;;  %527 = vmatpush.bf16.msra.mxu1 %v455_v6 }
  0x1b   :  { %528 = vmatpush.bf16.msra.mxu2 %v455_v6  ;;  %529 = vmatpush.bf16.msra.mxu3 %v455_v6 }
  0x1e   :  { %185 = vmatpush.bf16.msra.mxu0 %v454_v7  ;;  %530 = vmatpush.bf16.msra.mxu1 %v454_v7 }
  0x1f   :  { %531 = vmatpush.bf16.msra.mxu2 %v454_v7  ;;  %532 = vmatpush.bf16.msra.mxu3 %v454_v7 }
  0x21   :  { %186 = vmatmul.bf16.vlgmr.msra.gmra.mxu0 %v446_v8  ;;  %196 = vmatmul.bf16.vlgmr.msra.gmra.mxu1 %v448_v9 }
  0x22   :  { %206 = vmatmul.bf16.vlgmr.msra.gmra.mxu2 %v450_v10  ;;  %216 = vmatmul.bf16.vlgmr.msra.gmra.mxu3 %v452_v11 }
  0x31   :  { %191 = vmatmul.bf16.gmra.mxu0 %v447_v12  ;;  %201 = vmatmul.bf16.gmra.mxu1 %v449_v13 }
  0x32   :  { %211 = vmatmul.bf16.gmra.mxu2 %v451_v14  ;;  %221 = vmatmul.bf16.gmra.mxu3 %v453_v15 }
  0x9e   :  { %v187_v16 = vpop.f32.mrf.mxu0  ;;  %v197_v17 = vpop.f32.mrf.mxu1 }
  0x9f   :  { %v299_v31 = vmul.f32 %v187_v16, %v187_v16  ;;  %v303_v45 = vmul.f32 %v197_v17, %v197_v17 }
  0xa5   :  { %v207_v18 = vpop.f32.mrf.mxu2  ;;  %v606_v19 = vpop.f32.mrf.mxu3 }
  0xa6   :  { %v189_v20 = vpop.f32.mrf.mxu0  ;;  %v199_v21 = vpop.f32.mrf.mxu1  ;;  %v307_v61 = vmul.f32 %v207_v18, %v207_v18  ;;  %v311_v9 = vmul.f32 %v606_v19, %v606_v19 }
  0xa7   :  { %v465_v22 = vpack.c.bf16 %v189_v20, %v187_v16  ;;  %v475_v23 = vpack.c.bf16 %v199_v21, %v197_v17  ;;  %v300_v30 = vmul.f32 %v189_v20, %v189_v20  ;;  %v278_v32 = vadd.f32 %v189_v20, %v187_v16 }
  0xa8   :  { %v304_v48 = vmul.f32 %v199_v21, %v199_v21 }
  0xa9   :  { %466 = vst [vmem:[%s644_s2] sm:$0xff] %v465_v22   ;;  %v315_v34 = vadd.f32 %v300_v30, %v299_v31 }
  0xaa   :  { %503 = vst [vmem:[%s644_s2 + $0x10] sm:$0xff] %v475_v23  }
  0xad   :  { %v209_v24 = vpop.f32.mrf.mxu2  ;;  %v219_v25 = vpop.f32.mrf.mxu3 }
  0xae   :  { %v192_v26 = vpop.f32.mrf.mxu0  ;;  %v202_v27 = vpop.f32.mrf.mxu1  ;;  %v485_v28 = vpack.c.bf16 %v209_v24, %v207_v18  ;;  %v495_v29 = vpack.c.bf16 %v219_v25, %v606_v19  ;;  %v308_v0 = vmul.f32 %v209_v24, %v209_v24  ;;  %v312_v12 = vmul.f32 %v219_v25, %v219_v25 }
  0xaf   :  { %v301_v33 = vmul.f32 %v192_v26, %v192_v26  ;;  %v279_v35 = vadd.f32 %v278_v32, %v192_v26  ;;  %v305_v51 = vmul.f32 %v202_v27, %v202_v27 }
  0xb0   :  { %505 = vst [vmem:[%s644_s2 + $0x20] sm:$0xff] %v485_v28  }
  0xb1   :  { %507 = vst [vmem:[%s644_s2 + $0x30] sm:$0xff] %v495_v29   ;;  %v316_v40 = vadd.f32 %v315_v34, %v301_v33 }
  0xb5   :  { %v212_v36 = vpop.f32.mrf.mxu2  ;;  %v222_v37 = vpop.f32.mrf.mxu3 }
  0xb6   :  { %v194_v38 = vpop.f32.mrf.mxu0  ;;  %v204_v39 = vpop.f32.mrf.mxu1  ;;  %v309_v4 = vmul.f32 %v212_v36, %v212_v36  ;;  %v313_v16 = vmul.f32 %v222_v37, %v222_v37 }
  0xb7   :  { %v280_v41 = vadd.f32 %v279_v35, %v194_v38  ;;  %v302_v42 = vmul.f32 %v194_v38, %v194_v38  ;;  %v470_v43 = vpack.c.bf16 %v194_v38, %v192_v26  ;;  %v480_v44 = vpack.c.bf16 %v204_v39, %v202_v27 }
  0xb8   :  { %v306_v59 = vmul.f32 %v204_v39, %v204_v39 }
  0xb9   :  { %v281_v46 = vadd.f32 %v280_v41, %v197_v17  ;;  %v317_v47 = vadd.f32 %v316_v40, %v302_v42  ;;  %502 = vst [vmem:[%s644_s2 + $0x8] sm:$0xff] %v470_v43  }
  0xba   :  { %504 = vst [vmem:[%s644_s2 + $0x18] sm:$0xff] %v480_v44  }
  0xbb   :  { %v318_v49 = vadd.f32 %v317_v47, %v303_v45  ;;  %v282_v50 = vadd.f32 %v281_v46, %v199_v21 }
  0xbd   :  { %v283_v52 = vadd.f32 %v282_v50, %v202_v27  ;;  %v319_v53 = vadd.f32 %v318_v49, %v304_v48  ;;  %v214_v54 = vpop.f32.mrf.mxu2  ;;  %v224_v55 = vpop.f32.mrf.mxu3 }
  0xbe   :  { %v490_v56 = vpack.c.bf16 %v214_v54, %v212_v36  ;;  %v500_v57 = vpack.c.bf16 %v224_v55, %v222_v37  ;;  %v310_v8 = vmul.f32 %v214_v54, %v214_v54  ;;  %v314_v21 = vmul.f32 %v224_v55, %v224_v55 }
  0xbf   :  { %v284_v58 = vadd.f32 %v283_v52, %v204_v39  ;;  %v320_v60 = vadd.f32 %v319_v53, %v305_v51 }
  0xc0   :  { %506 = vst [vmem:[%s644_s2 + $0x28] sm:$0xff] %v490_v56  }
  0xc1   :  { %v285_v62 = vadd.f32 %v284_v58, %v207_v18  ;;  %v321_v63 = vadd.f32 %v320_v60, %v306_v59  ;;  %508 = vst [vmem:[%s644_s2 + $0x38] sm:$0xff] %v500_v57  }
  0xc3   :  { %v322_v1 = vadd.f32 %v321_v63, %v307_v61  ;;  %v286_v2 = vadd.f32 %v285_v62, %v209_v24 }
  0xc5   :  { %v287_v3 = vadd.f32 %v286_v2, %v212_v36  ;;  %v323_v5 = vadd.f32 %v322_v1, %v308_v0 }
  0xc7   :  { %v324_v6 = vadd.f32 %v323_v5, %v309_v4  ;;  %v288_v7 = vadd.f32 %v287_v3, %v214_v54 }
  0xc9   :  { %v289_v10 = vadd.f32 %v288_v7, %v606_v19  ;;  %v325_v11 = vadd.f32 %v324_v6, %v310_v8 }
  0xcb   :  { %v326_v13 = vadd.f32 %v325_v11, %v311_v9  ;;  %v290_v14 = vadd.f32 %v289_v10, %v219_v25 }
  0xcd   :  { %v291_v15 = vadd.f32 %v290_v14, %v222_v37  ;;  %v327_v17 = vadd.f32 %v326_v13, %v312_v12 }
  0xcf   :  { %v328_v18 = vadd.f32 %v327_v17, %v313_v16  ;;  %v292_v20 = vadd.f32 %v291_v15, %v224_v55 }
  0xd1   :  { %v293_v22 = vrot.slane %v292_v20, 4  ;;  %v329_v23 = vadd.f32 %v328_v18, %v314_v21 }
  0xd3   :  { %v294_v24 = vadd.f32 %v293_v22, %v292_v20  ;;  %v330_v26 = vrot.slane %v329_v23, 4 }
  0xd5   :  { %v295_v27 = vrot.slane %v294_v24, 2  ;;  %v331_v28 = vadd.f32 %v330_v26, %v329_v23 }
  0xd7   :  { %v296_v29 = vadd.f32 %v295_v27, %v294_v24  ;;  %v332_v30 = vrot.slane %v331_v28, 2 }
  0xd9   :  { %v297_v31 = vrot.slane %v296_v29, 1  ;;  %v333_v19 = vadd.f32 %v332_v30, %v331_v28 }
  0xdb   :  { %v298_v32 = vadd.f32 %v297_v31, %v296_v29  ;;  %v334_v33 = vrot.slane %v333_v19, 1 }
  0xdd   :  { %v335_v34 = vadd.f32 %v334_v33, %v333_v19  ;;  %336 = vst [vmem:[%s645_s3] sm:$0x1] %v298_v32 }
  0xdf   :  { %337 = vst [vmem:[%s646_s4] sm:$0x1] %v335_v34 }

// kernel: tile.33
= control target key start
LH: loop header
LB: loop body
LE: loop exit
PB: predicated region body
PF: predicated region fallthrough
CT: control target
= control target key end

     0   :  { %s22_s0 = inlined_call_operand.vmem [shape: f32[8], index: 0, kind: input, shape index: {}]   ;;  %s23_s1 = inlined_call_operand.vmem [shape: f32[4,8], index: 1, kind: output, shape index: {}]  }
   0x1   :  { %v4_v0 = vld [vmem:[%s22_s0] ss:$0 sm:$0xff] }
   0x2   :  { %5 = vst [vmem:[%s23_s1] sm:$0xf] %v4_v0 }

// kernel: tile.38
= control target key start
LH: loop header
LB: loop body
LE: loop exit
PB: predicated region body
PF: predicated region fallthrough
CT: control target
= control target key end

     0   :  { %s37_s8 = smov 8   ;;  %s38_s9 = smov 16   ;;  %vm7_vm0 = vcmask 64512   ;;  %vm13_vm1 = vcmask 261312   ;;  %vm19_vm2 = vcmask 195712   ;;  %vm25_vm3 = vcmask 130112   ;;  %s55_s0 = inlined_call_operand.vmem [shape: f32[4,8], index: 0, kind: input, shape index: {}]   ;;  %s56_s1 = inlined_call_operand.vmem [shape: f32[1,32], index: 1, kind: output, shape index: {}]  }
   0x1   :  { %v4_v0 = vld [vmem:[%s55_s0] sm:$0xf]  ;;  %s36_s0 = smov 24  }
   0x2   :  { %5 = vst [vmem:[#allocation1] sm:$0xf] %v4_v0 }
   0x9   :  { %v10_v1 = vld [vmem:[#allocation1 + $0x3] sm:$0x1]   ;;  %v22_v2 = vld [vmem:[#allocation1 + $0x1] sm:$0x1]   ;;  %v16_v3 = vld [vmem:[#allocation1 + $0x2] sm:$0x1]  }
   0xa   :  { %11 = vrot.lane.b32.xlu0 %v10_v1, %s36_s0  ;;  %23 = vrot.lane.b32.xlu1 %v22_v2, %s37_s8  ;;  %v6_v4 = vld [vmem:[#allocation1] sm:$0x1]  }
   0xb   :  { %8 = vst.msk [vmem:[#allocation0] sm:$0x1] %vm7_vm0, %v6_v4  }
  0x12   :  { %17 = vrot.lane.b32.xlu0 %v16_v3, %s38_s9 }
  0x7c   :  { %v12_v5 = vpop.permute.xlu0 %11   ;;  %v24_v6 = vpop.permute.xlu1 %23  }
  0x7d   :  { %14 = vst.msk [vmem:[#allocation0] sm:$0x1] %vm13_vm1, %v12_v5  }
  0x84   :  { %v18_v7 = vpop.permute.xlu0 %17  }
  0x85   :  { %20 = vst.msk [vmem:[#allocation0] sm:$0x1] %vm19_vm2, %v18_v7  }
  0x86   :  { %26 = vst.msk [vmem:[#allocation0] sm:$0x1] %vm25_vm3, %v24_v6  }
  0x8d   :  { %v29_v8 = vld [vmem:[#allocation0] sm:$0x1] }
  0x8e   :  { %32 = vst [vmem:[%s56_s1] sm:$0x1] %v29_v8 }

// kernel: resnet_decoder_forward.24
= control target key start
LH: loop header
LB: loop body
LE: loop exit
PB: predicated region body
PF: predicated region fallthrough
CT: control target
= control target key end

     0   :  { %s1176_s0 = inlined_call_operand.vmem [shape: bf16[512,128], index: 0, kind: input, shape index: {}]   ;;  %s1177_s1 = inlined_call_operand.vmem [shape: f32[1,128], index: 1, kind: input, shape index: {}]   ;;  %s1178_s2 = inlined_call_operand.vmem [shape: f32[1,128], index: 2, kind: input, shape index: {}]   ;;  %s1179_s3 = inlined_call_operand.vmem [shape: bf16[512,128], index: 3, kind: output, shape index: {}]  }
   0x1   :  { %v475_v0 = vld [vmem:[%s1176_s0] sm:$0xff]   ;;  %v762_v5 = vld [vmem:[%s1176_s0 + $0x8] sm:$0xff]   ;;  %v763_v8 = vld [vmem:[%s1176_s0 + $0x10] sm:$0xff]  }
   0x2   :  { %v852_v1 = vld [vmem:[%s1177_s1] ss:$0 sm:$0xff]  ;;  %v476_v2 = vunpack.c.l.bf16 %v475_v0  ;;  %v477_v3 = vunpack.c.h.bf16 %v475_v0  ;;  %v480_v6 = vunpack.c.l.bf16 %v762_v5  ;;  %v481_v7 = vunpack.c.h.bf16 %v762_v5  ;;  %v764_v9 = vld [vmem:[%s1176_s0 + $0x18] sm:$0xff]   ;;  %v766_v35 = vld [vmem:[%s1176_s0 + $0x28] sm:$0xff]  }
   0x3   :  { %v857_v4 = vld [vmem:[%s1178_s2] ss:$0 sm:$0xff]  ;;  %v484_v12 = vunpack.c.l.bf16 %v763_v8  ;;  %v485_v13 = vunpack.c.h.bf16 %v763_v8  ;;  %v488_v16 = vunpack.c.l.bf16 %v764_v9  ;;  %v489_v17 = vunpack.c.h.bf16 %v764_v9  ;;  %v767_v40 = vld [vmem:[%s1176_s0 + $0x30] sm:$0xff]   ;;  %v768_v45 = vld [vmem:[%s1176_s0 + $0x38] sm:$0xff]  }
   0x4   :  { %v146_v10 = vmul.f32 %v852_v1, %v476_v2  ;;  %v147_v11 = vmul.f32 %v852_v1, %v477_v3  ;;  %v148_v14 = vmul.f32 %v852_v1, %v480_v6  ;;  %v149_v15 = vmul.f32 %v852_v1, %v481_v7  ;;  %v765_v26 = vld [vmem:[%s1176_s0 + $0x20] sm:$0xff]  }
   0x5   :  { %v150_v20 = vmul.f32 %v852_v1, %v484_v12  ;;  %v151_v21 = vmul.f32 %v852_v1, %v485_v13  ;;  %v152_v24 = vmul.f32 %v852_v1, %v488_v16  ;;  %v153_v25 = vmul.f32 %v852_v1, %v489_v17  ;;  %v769_v62 = vld [vmem:[%s1176_s0 + $0x40] sm:$0xff]   ;;  %v770_v13 = vld [vmem:[%s1176_s0 + $0x48] sm:$0xff]  }
   0x6   :  { %v214_v18 = vadd.f32 %v857_v4, %v146_v10  ;;  %v215_v19 = vadd.f32 %v857_v4, %v147_v11  ;;  %v216_v22 = vadd.f32 %v857_v4, %v148_v14  ;;  %v217_v23 = vadd.f32 %v857_v4, %v149_v15 }
   0x7   :  { %v218_v29 = vadd.f32 %v857_v4, %v150_v20  ;;  %v219_v30 = vadd.f32 %v857_v4, %v151_v21  ;;  %v220_v33 = vadd.f32 %v857_v4, %v152_v24  ;;  %v221_v34 = vadd.f32 %v857_v4, %v153_v25 }
   0x8   :  { %v278_v27 = vmax.f32 %v214_v18, 0.0  ;;  %v279_v28 = vmax.f32 %v215_v19, 0.0  ;;  %v280_v31 = vmax.f32 %v216_v22, 0.0  ;;  %v281_v32 = vmax.f32 %v217_v23, 0.0  ;;  %v771_v18 = vld [vmem:[%s1176_s0 + $0x50] sm:$0xff]   ;;  %v772_v23 = vld [vmem:[%s1176_s0 + $0x58] sm:$0xff]  }
   0x9   :  { %v282_v37 = vmax.f32 %v218_v29, 0.0  ;;  %v283_v38 = vmax.f32 %v219_v30, 0.0  ;;  %v492_v39 = vunpack.c.l.bf16 %v765_v26  ;;  %v284_v42 = vmax.f32 %v220_v33, 0.0 }
   0xa   :  { %v605_v36 = vpack.c.bf16 %v279_v28, %v278_v27  ;;  %v610_v41 = vpack.c.bf16 %v281_v32, %v280_v31  ;;  %v285_v43 = vmax.f32 %v221_v34, 0.0  ;;  %v493_v44 = vunpack.c.h.bf16 %v765_v26 }
   0xb   :  { %v615_v46 = vpack.c.bf16 %v283_v38, %v282_v37  ;;  %v154_v47 = vmul.f32 %v852_v1, %v492_v39  ;;  %v496_v48 = vunpack.c.l.bf16 %v766_v35  ;;  %v497_v49 = vunpack.c.h.bf16 %v766_v35 }
   0xc   :  { %606 = vst [vmem:[%s1179_s3] sm:$0xff] %v605_v36   ;;  %v620_v50 = vpack.c.bf16 %v285_v43, %v284_v42  ;;  %v155_v51 = vmul.f32 %v852_v1, %v493_v44  ;;  %v500_v52 = vunpack.c.l.bf16 %v767_v40  ;;  %v501_v53 = vunpack.c.h.bf16 %v767_v40  ;;  %v773_v36 = vld [vmem:[%s1176_s0 + $0x60] sm:$0xff]  }
   0xd   :  { %793 = vst [vmem:[%s1179_s3 + $0x8] sm:$0xff] %v610_v41   ;;  %v222_v54 = vadd.f32 %v857_v4, %v154_v47  ;;  %v156_v55 = vmul.f32 %v852_v1, %v496_v48  ;;  %v157_v56 = vmul.f32 %v852_v1, %v497_v49  ;;  %v504_v57 = vunpack.c.l.bf16 %v768_v45 }
   0xe   :  { %794 = vst [vmem:[%s1179_s3 + $0x10] sm:$0xff] %v615_v46   ;;  %v223_v58 = vadd.f32 %v857_v4, %v155_v51  ;;  %v158_v59 = vmul.f32 %v852_v1, %v500_v52  ;;  %v159_v60 = vmul.f32 %v852_v1, %v501_v53  ;;  %v505_v61 = vunpack.c.h.bf16 %v768_v45  ;;  %v774_v53 = vld [vmem:[%s1176_s0 + $0x68] sm:$0xff]  }
   0xf   :  { %795 = vst [vmem:[%s1179_s3 + $0x18] sm:$0xff] %v620_v50   ;;  %v286_v63 = vmax.f32 %v222_v54, 0.0  ;;  %v224_v0 = vadd.f32 %v857_v4, %v156_v55  ;;  %v225_v2 = vadd.f32 %v857_v4, %v157_v56  ;;  %v160_v3 = vmul.f32 %v852_v1, %v504_v57 }
  0x10   :  { %v287_v5 = vmax.f32 %v223_v58, 0.0  ;;  %v226_v6 = vadd.f32 %v857_v4, %v158_v59  ;;  %v227_v7 = vadd.f32 %v857_v4, %v159_v60  ;;  %v161_v8 = vmul.f32 %v852_v1, %v505_v61  ;;  %v775_v58 = vld [vmem:[%s1176_s0 + $0x70] sm:$0xff]  }
  0x11   :  { %v288_v9 = vmax.f32 %v224_v0, 0.0  ;;  %v289_v10 = vmax.f32 %v225_v2, 0.0  ;;  %v228_v11 = vadd.f32 %v857_v4, %v160_v3  ;;  %v508_v12 = vunpack.c.l.bf16 %v769_v62 }
  0x12   :  { %v625_v14 = vpack.c.bf16 %v287_v5, %v286_v63  ;;  %v290_v15 = vmax.f32 %v226_v6, 0.0  ;;  %v291_v16 = vmax.f32 %v227_v7, 0.0  ;;  %v229_v17 = vadd.f32 %v857_v4, %v161_v8  ;;  %v776_v63 = vld [vmem:[%s1176_s0 + $0x78] sm:$0xff]  }
  0x13   :  { %v630_v19 = vpack.c.bf16 %v289_v10, %v288_v9  ;;  %v292_v20 = vmax.f32 %v228_v11, 0.0  ;;  %v509_v21 = vunpack.c.h.bf16 %v769_v62  ;;  %v162_v22 = vmul.f32 %v852_v1, %v508_v12 }
  0x14   :  { %796 = vst [vmem:[%s1179_s3 + $0x20] sm:$0xff] %v625_v14   ;;  %v635_v24 = vpack.c.bf16 %v291_v16, %v290_v15  ;;  %v293_v25 = vmax.f32 %v229_v17, 0.0  ;;  %v512_v26 = vunpack.c.l.bf16 %v770_v13  ;;  %v513_v27 = vunpack.c.h.bf16 %v770_v13  ;;  %v777_v14 = vld [vmem:[%s1176_s0 + $0x80] sm:$0xff]  }
  0x15   :  { %797 = vst [vmem:[%s1179_s3 + $0x28] sm:$0xff] %v630_v19   ;;  %v163_v28 = vmul.f32 %v852_v1, %v509_v21  ;;  %v230_v29 = vadd.f32 %v857_v4, %v162_v22  ;;  %v516_v30 = vunpack.c.l.bf16 %v771_v18  ;;  %v517_v31 = vunpack.c.h.bf16 %v771_v18 }
  0x16   :  { %798 = vst [vmem:[%s1179_s3 + $0x30] sm:$0xff] %v635_v24   ;;  %v640_v32 = vpack.c.bf16 %v293_v25, %v292_v20  ;;  %v164_v33 = vmul.f32 %v852_v1, %v512_v26  ;;  %v165_v34 = vmul.f32 %v852_v1, %v513_v27  ;;  %v520_v35 = vunpack.c.l.bf16 %v772_v23  ;;  %v778_v27 = vld [vmem:[%s1176_s0 + $0x88] sm:$0xff]  }
  0x17   :  { %v231_v37 = vadd.f32 %v857_v4, %v163_v28  ;;  %v294_v38 = vmax.f32 %v230_v29, 0.0  ;;  %v166_v39 = vmul.f32 %v852_v1, %v516_v30  ;;  %v167_v40 = vmul.f32 %v852_v1, %v517_v31 }
  0x18   :  { %799 = vst [vmem:[%s1179_s3 + $0x38] sm:$0xff] %v640_v32   ;;  %v232_v41 = vadd.f32 %v857_v4, %v164_v33  ;;  %v233_v42 = vadd.f32 %v857_v4, %v165_v34  ;;  %v521_v43 = vunpack.c.h.bf16 %v772_v23  ;;  %v168_v44 = vmul.f32 %v852_v1, %v520_v35 }
  0x19   :  { %v295_v45 = vmax.f32 %v231_v37, 0.0  ;;  %v234_v46 = vadd.f32 %v857_v4, %v166_v39  ;;  %v235_v47 = vadd.f32 %v857_v4, %v167_v40  ;;  %v524_v48 = vunpack.c.l.bf16 %v773_v36 }
  0x1a   :  { %v296_v49 = vmax.f32 %v232_v41, 0.0  ;;  %v297_v50 = vmax.f32 %v233_v42, 0.0  ;;  %v169_v51 = vmul.f32 %v852_v1, %v521_v43  ;;  %v236_v52 = vadd.f32 %v857_v4, %v168_v44  ;;  %v780_v41 = vld [vmem:[%s1176_s0 + $0x98] sm:$0xff]  }
  0x1b   :  { %v645_v54 = vpack.c.bf16 %v295_v45, %v294_v38  ;;  %v298_v55 = vmax.f32 %v234_v46, 0.0  ;;  %v299_v56 = vmax.f32 %v235_v47, 0.0  ;;  %v525_v57 = vunpack.c.h.bf16 %v773_v36  ;;  %v779_v36 = vld [vmem:[%s1176_s0 + $0x90] sm:$0xff]  }
  0x1c   :  { %v650_v59 = vpack.c.bf16 %v297_v50, %v296_v49  ;;  %v237_v60 = vadd.f32 %v857_v4, %v169_v51  ;;  %v300_v61 = vmax.f32 %v236_v52, 0.0  ;;  %v170_v62 = vmul.f32 %v852_v1, %v524_v48 }
  0x1d   :  { %800 = vst [vmem:[%s1179_s3 + $0x40] sm:$0xff] %v645_v54   ;;  %v655_v0 = vpack.c.bf16 %v299_v56, %v298_v55  ;;  %v171_v2 = vmul.f32 %v852_v1, %v525_v57  ;;  %v528_v3 = vunpack.c.l.bf16 %v774_v53  ;;  %v529_v5 = vunpack.c.h.bf16 %v774_v53  ;;  %v781_v54 = vld [vmem:[%s1176_s0 + $0xa0] sm:$0xff]  }
  0x1e   :  { %801 = vst [vmem:[%s1179_s3 + $0x48] sm:$0xff] %v650_v59   ;;  %v301_v6 = vmax.f32 %v237_v60, 0.0  ;;  %v238_v7 = vadd.f32 %v857_v4, %v170_v62  ;;  %v532_v8 = vunpack.c.l.bf16 %v775_v58  ;;  %v533_v9 = vunpack.c.h.bf16 %v775_v58 }
  0x1f   :  { %802 = vst [vmem:[%s1179_s3 + $0x50] sm:$0xff] %v655_v0   ;;  %v239_v10 = vadd.f32 %v857_v4, %v171_v2  ;;  %v172_v11 = vmul.f32 %v852_v1, %v528_v3  ;;  %v173_v12 = vmul.f32 %v852_v1, %v529_v5  ;;  %v536_v13 = vunpack.c.l.bf16 %v776_v63  ;;  %v782_v5 = vld [vmem:[%s1176_s0 + $0xa8] sm:$0xff]  }
  0x20   :  { %v660_v15 = vpack.c.bf16 %v301_v6, %v300_v61  ;;  %v302_v16 = vmax.f32 %v238_v7, 0.0  ;;  %v174_v17 = vmul.f32 %v852_v1, %v532_v8  ;;  %v175_v18 = vmul.f32 %v852_v1, %v533_v9 }
  0x21   :  { %v303_v19 = vmax.f32 %v239_v10, 0.0  ;;  %v240_v20 = vadd.f32 %v857_v4, %v172_v11  ;;  %v241_v21 = vadd.f32 %v857_v4, %v173_v12  ;;  %v537_v22 = vunpack.c.h.bf16 %v776_v63 }
  0x22   :  { %803 = vst [vmem:[%s1179_s3 + $0x58] sm:$0xff] %v660_v15   ;;  %v242_v23 = vadd.f32 %v857_v4, %v174_v17  ;;  %v243_v24 = vadd.f32 %v857_v4, %v175_v18  ;;  %v176_v25 = vmul.f32 %v852_v1, %v536_v13  ;;  %v540_v26 = vunpack.c.l.bf16 %v777_v14 }
  0x23   :  { %v665_v28 = vpack.c.bf16 %v303_v19, %v302_v16  ;;  %v304_v29 = vmax.f32 %v240_v20, 0.0  ;;  %v305_v30 = vmax.f32 %v241_v21, 0.0  ;;  %v177_v31 = vmul.f32 %v852_v1, %v537_v22 }
  0x24   :  { %v306_v32 = vmax.f32 %v242_v23, 0.0  ;;  %v307_v33 = vmax.f32 %v243_v24, 0.0  ;;  %v244_v34 = vadd.f32 %v857_v4, %v176_v25  ;;  %v541_v35 = vunpack.c.h.bf16 %v777_v14  ;;  %v783_v14 = vld [vmem:[%s1176_s0 + $0xb0] sm:$0xff]   ;;  %v784_v23 = vld [vmem:[%s1176_s0 + $0xb8] sm:$0xff]  }
  0x25   :  { %804 = vst [vmem:[%s1179_s3 + $0x60] sm:$0xff] %v665_v28   ;;  %v670_v37 = vpack.c.bf16 %v305_v30, %v304_v29  ;;  %v245_v38 = vadd.f32 %v857_v4, %v177_v31  ;;  %v178_v39 = vmul.f32 %v852_v1, %v540_v26  ;;  %v544_v40 = vunpack.c.l.bf16 %v778_v27 }
  0x26   :  { %v675_v42 = vpack.c.bf16 %v307_v33, %v306_v32  ;;  %v308_v43 = vmax.f32 %v244_v34, 0.0  ;;  %v179_v44 = vmul.f32 %v852_v1, %v541_v35  ;;  %v545_v45 = vunpack.c.h.bf16 %v778_v27  ;;  %v785_v32 = vld [vmem:[%s1176_s0 + $0xc0] sm:$0xff]  }
  0x27   :  { %805 = vst [vmem:[%s1179_s3 + $0x68] sm:$0xff] %v670_v37   ;;  %v309_v46 = vmax.f32 %v245_v38, 0.0  ;;  %v246_v47 = vadd.f32 %v857_v4, %v178_v39  ;;  %v180_v48 = vmul.f32 %v852_v1, %v544_v40  ;;  %v548_v49 = vunpack.c.l.bf16 %v779_v36 }
  0x28   :  { %806 = vst [vmem:[%s1179_s3 + $0x70] sm:$0xff] %v675_v42   ;;  %v247_v50 = vadd.f32 %v857_v4, %v179_v44  ;;  %v181_v51 = vmul.f32 %v852_v1, %v545_v45  ;;  %v549_v52 = vunpack.c.h.bf16 %v779_v36  ;;  %v552_v53 = vunpack.c.l.bf16 %v780_v41  ;;  %v786_v45 = vld [vmem:[%s1176_s0 + $0xc8] sm:$0xff]  }
  0x29   :  { %v680_v55 = vpack.c.bf16 %v309_v46, %v308_v43  ;;  %v310_v56 = vmax.f32 %v246_v47, 0.0  ;;  %v248_v57 = vadd.f32 %v857_v4, %v180_v48  ;;  %v182_v58 = vmul.f32 %v852_v1, %v548_v49 }
  0x2a   :  { %v311_v59 = vmax.f32 %v247_v50, 0.0  ;;  %v249_v60 = vadd.f32 %v857_v4, %v181_v51  ;;  %v183_v61 = vmul.f32 %v852_v1, %v549_v52  ;;  %v553_v62 = vunpack.c.h.bf16 %v780_v41 }
  0x2b   :  { %807 = vst [vmem:[%s1179_s3 + $0x78] sm:$0xff] %v680_v55   ;;  %v312_v63 = vmax.f32 %v248_v57, 0.0  ;;  %v250_v0 = vadd.f32 %v857_v4, %v182_v58  ;;  %v184_v2 = vmul.f32 %v852_v1, %v552_v53  ;;  %v556_v3 = vunpack.c.l.bf16 %v781_v54 }
  0x2c   :  { %v685_v6 = vpack.c.bf16 %v311_v59, %v310_v56  ;;  %v313_v7 = vmax.f32 %v249_v60, 0.0  ;;  %v251_v8 = vadd.f32 %v857_v4, %v183_v61  ;;  %v185_v9 = vmul.f32 %v852_v1, %v553_v62 }
  0x2d   :  { %v314_v10 = vmax.f32 %v250_v0, 0.0  ;;  %v252_v11 = vadd.f32 %v857_v4, %v184_v2  ;;  %v557_v12 = vunpack.c.h.bf16 %v781_v54  ;;  %v186_v13 = vmul.f32 %v852_v1, %v556_v3  ;;  %v787_v54 = vld [vmem:[%s1176_s0 + $0xd0] sm:$0xff]  }
  0x2e   :  { %808 = vst [vmem:[%s1179_s3 + $0x80] sm:$0xff] %v685_v6   ;;  %v690_v15 = vpack.c.bf16 %v313_v7, %v312_v63  ;;  %v315_v16 = vmax.f32 %v251_v8, 0.0  ;;  %v253_v17 = vadd.f32 %v857_v4, %v185_v9  ;;  %v560_v18 = vunpack.c.l.bf16 %v782_v5  ;;  %v788_v63 = vld [vmem:[%s1176_s0 + $0xd8] sm:$0xff]  }
  0x2f   :  { %v316_v19 = vmax.f32 %v252_v11, 0.0  ;;  %v187_v20 = vmul.f32 %v852_v1, %v557_v12  ;;  %v254_v21 = vadd.f32 %v857_v4, %v186_v13  ;;  %v561_v22 = vunpack.c.h.bf16 %v782_v5 }
  0x30   :  { %809 = vst [vmem:[%s1179_s3 + $0x88] sm:$0xff] %v690_v15   ;;  %v695_v24 = vpack.c.bf16 %v315_v16, %v314_v10  ;;  %v317_v25 = vmax.f32 %v253_v17, 0.0  ;;  %v188_v26 = vmul.f32 %v852_v1, %v560_v18  ;;  %v564_v27 = vunpack.c.l.bf16 %v783_v14  ;;  %v789_v10 = vld [vmem:[%s1176_s0 + $0xe0] sm:$0xff]  }
  0x31   :  { %v255_v28 = vadd.f32 %v857_v4, %v187_v20  ;;  %v318_v29 = vmax.f32 %v254_v21, 0.0  ;;  %v189_v30 = vmul.f32 %v852_v1, %v561_v22  ;;  %v565_v31 = vunpack.c.h.bf16 %v783_v14 }
  0x32   :  { %810 = vst [vmem:[%s1179_s3 + $0x90] sm:$0xff] %v695_v24   ;;  %v700_v33 = vpack.c.bf16 %v317_v25, %v316_v19  ;;  %v256_v34 = vadd.f32 %v857_v4, %v188_v26  ;;  %v190_v35 = vmul.f32 %v852_v1, %v564_v27  ;;  %v568_v36 = vunpack.c.l.bf16 %v784_v23 }
  0x33   :  { %v319_v37 = vmax.f32 %v255_v28, 0.0  ;;  %v257_v38 = vadd.f32 %v857_v4, %v189_v30  ;;  %v191_v39 = vmul.f32 %v852_v1, %v565_v31  ;;  %v569_v40 = vunpack.c.h.bf16 %v784_v23  ;;  %v790_v23 = vld [vmem:[%s1176_s0 + $0xe8] sm:$0xff]  }
  0x34   :  { %811 = vst [vmem:[%s1179_s3 + $0x98] sm:$0xff] %v700_v33   ;;  %v320_v41 = vmax.f32 %v256_v34, 0.0  ;;  %v258_v42 = vadd.f32 %v857_v4, %v190_v35  ;;  %v192_v43 = vmul.f32 %v852_v1, %v568_v36  ;;  %v572_v44 = vunpack.c.l.bf16 %v785_v32 }
  0x35   :  { %v705_v46 = vpack.c.bf16 %v319_v37, %v318_v29  ;;  %v321_v47 = vmax.f32 %v257_v38, 0.0  ;;  %v259_v48 = vadd.f32 %v857_v4, %v191_v39  ;;  %v193_v49 = vmul.f32 %v852_v1, %v569_v40 }
  0x36   :  { %v322_v50 = vmax.f32 %v258_v42, 0.0  ;;  %v260_v51 = vadd.f32 %v857_v4, %v192_v43  ;;  %v573_v52 = vunpack.c.h.bf16 %v785_v32  ;;  %v194_v53 = vmul.f32 %v852_v1, %v572_v44  ;;  %v791_v32 = vld [vmem:[%s1176_s0 + $0xf0] sm:$0xff]  }
  0x37   :  { %812 = vst [vmem:[%s1179_s3 + $0xa0] sm:$0xff] %v705_v46   ;;  %v710_v55 = vpack.c.bf16 %v321_v47, %v320_v41  ;;  %v323_v56 = vmax.f32 %v259_v48, 0.0  ;;  %v261_v57 = vadd.f32 %v857_v4, %v193_v49  ;;  %v576_v58 = vunpack.c.l.bf16 %v786_v45  ;;  %v792_v41 = vld [vmem:[%s1176_s0 + $0xf8] sm:$0xff]  }
  0x38   :  { %v324_v59 = vmax.f32 %v260_v51, 0.0  ;;  %v195_v60 = vmul.f32 %v852_v1, %v573_v52  ;;  %v262_v61 = vadd.f32 %v857_v4, %v194_v53  ;;  %v577_v62 = vunpack.c.h.bf16 %v786_v45 }
  0x39   :  { %813 = vst [vmem:[%s1179_s3 + $0xa8] sm:$0xff] %v710_v55   ;;  %v715_v0 = vpack.c.bf16 %v323_v56, %v322_v50  ;;  %v325_v2 = vmax.f32 %v261_v57, 0.0  ;;  %v196_v3 = vmul.f32 %v852_v1, %v576_v58  ;;  %v580_v5 = vunpack.c.l.bf16 %v787_v54 }
  0x3a   :  { %v263_v6 = vadd.f32 %v857_v4, %v195_v60  ;;  %v326_v7 = vmax.f32 %v262_v61, 0.0  ;;  %v197_v8 = vmul.f32 %v852_v1, %v577_v62  ;;  %v581_v9 = vunpack.c.h.bf16 %v787_v54 }
  0x3b   :  { %814 = vst [vmem:[%s1179_s3 + $0xb0] sm:$0xff] %v715_v0   ;;  %v720_v11 = vpack.c.bf16 %v325_v2, %v324_v59  ;;  %v264_v12 = vadd.f32 %v857_v4, %v196_v3  ;;  %v198_v13 = vmul.f32 %v852_v1, %v580_v5  ;;  %v584_v14 = vunpack.c.l.bf16 %v788_v63 }
  0x3c   :  { %v327_v15 = vmax.f32 %v263_v6, 0.0  ;;  %v265_v16 = vadd.f32 %v857_v4, %v197_v8  ;;  %v199_v17 = vmul.f32 %v852_v1, %v581_v9  ;;  %v585_v18 = vunpack.c.h.bf16 %v788_v63 }
  0x3d   :  { %815 = vst [vmem:[%s1179_s3 + $0xb8] sm:$0xff] %v720_v11   ;;  %v328_v19 = vmax.f32 %v264_v12, 0.0  ;;  %v266_v20 = vadd.f32 %v857_v4, %v198_v13  ;;  %v200_v21 = vmul.f32 %v852_v1, %v584_v14  ;;  %v588_v22 = vunpack.c.l.bf16 %v789_v10 }
  0x3e   :  { %v725_v24 = vpack.c.bf16 %v327_v15, %v326_v7  ;;  %v329_v25 = vmax.f32 %v265_v16, 0.0  ;;  %v267_v26 = vadd.f32 %v857_v4, %v199_v17  ;;  %v201_v27 = vmul.f32 %v852_v1, %v585_v18 }
  0x3f   :  { %v330_v28 = vmax.f32 %v266_v20, 0.0  ;;  %v268_v29 = vadd.f32 %v857_v4, %v200_v21  ;;  %v589_v30 = vunpack.c.h.bf16 %v789_v10  ;;  %v202_v31 = vmul.f32 %v852_v1, %v588_v22 }
  0x40   :  { %816 = vst [vmem:[%s1179_s3 + $0xc0] sm:$0xff] %v725_v24   ;;  %v730_v33 = vpack.c.bf16 %v329_v25, %v328_v19  ;;  %v331_v34 = vmax.f32 %v267_v26, 0.0  ;;  %v269_v35 = vadd.f32 %v857_v4, %v201_v27  ;;  %v592_v36 = vunpack.c.l.bf16 %v790_v23 }
  0x41   :  { %v332_v37 = vmax.f32 %v268_v29, 0.0  ;;  %v203_v38 = vmul.f32 %v852_v1, %v589_v30  ;;  %v270_v39 = vadd.f32 %v857_v4, %v202_v31  ;;  %v593_v40 = vunpack.c.h.bf16 %v790_v23 }
  0x42   :  { %817 = vst [vmem:[%s1179_s3 + $0xc8] sm:$0xff] %v730_v33   ;;  %v735_v42 = vpack.c.bf16 %v331_v34, %v330_v28  ;;  %v333_v43 = vmax.f32 %v269_v35, 0.0  ;;  %v204_v44 = vmul.f32 %v852_v1, %v592_v36  ;;  %v596_v45 = vunpack.c.l.bf16 %v791_v32 }
  0x43   :  { %v271_v46 = vadd.f32 %v857_v4, %v203_v38  ;;  %v334_v47 = vmax.f32 %v270_v39, 0.0  ;;  %v205_v48 = vmul.f32 %v852_v1, %v593_v40  ;;  %v597_v49 = vunpack.c.h.bf16 %v791_v32 }
  0x44   :  { %818 = vst [vmem:[%s1179_s3 + $0xd0] sm:$0xff] %v735_v42   ;;  %v740_v50 = vpack.c.bf16 %v333_v43, %v332_v37  ;;  %v272_v51 = vadd.f32 %v857_v4, %v204_v44  ;;  %v206_v52 = vmul.f32 %v852_v1, %v596_v45  ;;  %v600_v53 = vunpack.c.l.bf16 %v792_v41 }
  0x45   :  { %v335_v54 = vmax.f32 %v271_v46, 0.0  ;;  %v273_v55 = vadd.f32 %v857_v4, %v205_v48  ;;  %v207_v56 = vmul.f32 %v852_v1, %v597_v49  ;;  %v601_v57 = vunpack.c.h.bf16 %v792_v41 }
  0x46   :  { %819 = vst [vmem:[%s1179_s3 + $0xd8] sm:$0xff] %v740_v50   ;;  %v336_v58 = vmax.f32 %v272_v51, 0.0  ;;  %v274_v59 = vadd.f32 %v857_v4, %v206_v52  ;;  %v208_v60 = vmul.f32 %v852_v1, %v600_v53 }
  0x47   :  { %v745_v61 = vpack.c.bf16 %v335_v54, %v334_v47  ;;  %v337_v62 = vmax.f32 %v273_v55, 0.0  ;;  %v275_v63 = vadd.f32 %v857_v4, %v207_v56  ;;  %v209_v0 = vmul.f32 %v852_v1, %v601_v57 }
  0x48   :  { %v338_v2 = vmax.f32 %v274_v59, 0.0  ;;  %v276_v3 = vadd.f32 %v857_v4, %v208_v60 }
  0x49   :  { %820 = vst [vmem:[%s1179_s3 + $0xe0] sm:$0xff] %v745_v61   ;;  %v750_v5 = vpack.c.bf16 %v337_v62, %v336_v58  ;;  %v339_v6 = vmax.f32 %v275_v63, 0.0  ;;  %v277_v7 = vadd.f32 %v857_v4, %v209_v0 }
  0x4a   :  { %v340_v8 = vmax.f32 %v276_v3, 0.0 }
  0x4b   :  { %821 = vst [vmem:[%s1179_s3 + $0xe8] sm:$0xff] %v750_v5   ;;  %v755_v9 = vpack.c.bf16 %v339_v6, %v338_v2  ;;  %v341_v10 = vmax.f32 %v277_v7, 0.0 }
  0x4d   :  { %822 = vst [vmem:[%s1179_s3 + $0xf0] sm:$0xff] %v755_v9   ;;  %v760_v1 = vpack.c.bf16 %v341_v10, %v340_v8 }
  0x4f   :  { %823 = vst [vmem:[%s1179_s3 + $0xf8] sm:$0xff] %v760_v1  }

// kernel: resnet_decoder_forward.23
= control target key start
LH: loop header
LB: loop body
LE: loop exit
PB: predicated region body
PF: predicated region fallthrough
CT: control target
= control target key end

     0   :  { %s2124_s1 = inlined_call_operand.vmem [shape: bf16[128,128], index: 1, kind: input, shape index: {}]   ;;  %s2125_s0 = inlined_call_operand.vmem [shape: bf16[512,128], index: 0, kind: input, shape index: {}]   ;;  %s2126_s2 = inlined_call_operand.vmem [shape: bf16[512,128], index: 2, kind: output, shape index: {0}]   ;;  %s2127_s3 = inlined_call_operand.vmem [shape: f32[1,1,128], index: 3, kind: output, shape index: {1}]   ;;  %s2128_s4 = inlined_call_operand.vmem [shape: f32[1,1,128], index: 4, kind: output, shape index: {2}]  }
   0x1   :  { %v1373_v0 = vld [vmem:[%s2124_s1 + $0x38] sm:$0xff]  ;;  %v1372_v1 = vld [vmem:[%s2124_s1 + $0x30] sm:$0xff]  ;;  %v1371_v2 = vld [vmem:[%s2124_s1 + $0x28] sm:$0xff] }
   0x2   :  { %466 = vmatpush.bf16.msra.mxu0 %v1373_v0  ;;  %1565 = vmatpush.bf16.msra.mxu1 %v1373_v0  ;;  %v1370_v3 = vld [vmem:[%s2124_s1 + $0x20] sm:$0xff]  ;;  %v1369_v4 = vld [vmem:[%s2124_s1 + $0x18] sm:$0xff]  ;;  %v1368_v5 = vld [vmem:[%s2124_s1 + $0x10] sm:$0xff] }
   0x3   :  { %1566 = vmatpush.bf16.msra.mxu2 %v1373_v0  ;;  %1567 = vmatpush.bf16.msra.mxu3 %v1373_v0  ;;  %v1367_v6 = vld [vmem:[%s2124_s1 + $0x8] sm:$0xff]  ;;  %v1366_v7 = vld [vmem:[%s2124_s1] sm:$0xff]  ;;  %v1336_v13 = vld [vmem:[%s2125_s0 + $0x10] sm:$0xff] }
   0x4   :  { %v1334_v8 = vld [vmem:[%s2125_s0] sm:$0xff]  ;;  %v1335_v10 = vld [vmem:[%s2125_s0 + $0x8] sm:$0xff]  ;;  %v1344_v14 = vld [vmem:[%s2125_s0 + $0x50] sm:$0xff] }
   0x5   :  { %v1342_v9 = vld [vmem:[%s2125_s0 + $0x40] sm:$0xff]  ;;  %v1343_v11 = vld [vmem:[%s2125_s0 + $0x48] sm:$0xff]  ;;  %v1337_v16 = vld [vmem:[%s2125_s0 + $0x18] sm:$0xff] }
   0x6   :  { %467 = vmatpush.bf16.msra.mxu0 %v1372_v1  ;;  %1568 = vmatpush.bf16.msra.mxu1 %v1372_v1  ;;  %v1350_v12 = vld [vmem:[%s2125_s0 + $0x80] sm:$0xff]  ;;  %v1351_v15 = vld [vmem:[%s2125_s0 + $0x88] sm:$0xff]  ;;  %v1345_v17 = vld [vmem:[%s2125_s0 + $0x58] sm:$0xff] }
   0x7   :  { %1569 = vmatpush.bf16.msra.mxu2 %v1372_v1  ;;  %1570 = vmatpush.bf16.msra.mxu3 %v1372_v1  ;;  %v1352_v18 = vld [vmem:[%s2125_s0 + $0x90] sm:$0xff]  ;;  %v1358_v19 = vld [vmem:[%s2125_s0 + $0xc0] sm:$0xff]  ;;  %v1353_v22 = vld [vmem:[%s2125_s0 + $0x98] sm:$0xff] }
   0x8   :  { %v1338_v20 = vld [vmem:[%s2125_s0 + $0x20] sm:$0xff]  ;;  %v1359_v23 = vld [vmem:[%s2125_s0 + $0xc8] sm:$0xff]  ;;  %v1360_v27 = vld [vmem:[%s2125_s0 + $0xd0] sm:$0xff] }
   0x9   :  { %v1346_v21 = vld [vmem:[%s2125_s0 + $0x60] sm:$0xff]  ;;  %v1339_v24 = vld [vmem:[%s2125_s0 + $0x28] sm:$0xff]  ;;  %v1340_v28 = vld [vmem:[%s2125_s0 + $0x30] sm:$0xff] }
   0xa   :  { %468 = vmatpush.bf16.msra.mxu0 %v1371_v2  ;;  %1571 = vmatpush.bf16.msra.mxu1 %v1371_v2  ;;  %v1347_v25 = vld [vmem:[%s2125_s0 + $0x68] sm:$0xff]  ;;  %v1354_v26 = vld [vmem:[%s2125_s0 + $0xa0] sm:$0xff]  ;;  %v1348_v29 = vld [vmem:[%s2125_s0 + $0x70] sm:$0xff] }
   0xb   :  { %1572 = vmatpush.bf16.msra.mxu2 %v1371_v2  ;;  %1573 = vmatpush.bf16.msra.mxu3 %v1371_v2  ;;  %v1355_v30 = vld [vmem:[%s2125_s0 + $0xa8] sm:$0xff]  ;;  %v1361_v31 = vld [vmem:[%s2125_s0 + $0xd8] sm:$0xff]  ;;  %v1356_v34 = vld [vmem:[%s2125_s0 + $0xb0] sm:$0xff] }
   0xc   :  { %v1341_v32 = vld [vmem:[%s2125_s0 + $0x38] sm:$0xff]  ;;  %v1362_v35 = vld [vmem:[%s2125_s0 + $0xe0] sm:$0xff]  ;;  %v1363_v39 = vld [vmem:[%s2125_s0 + $0xe8] sm:$0xff] }
   0xd   :  { %v1349_v33 = vld [vmem:[%s2125_s0 + $0x78] sm:$0xff]  ;;  %v1364_v53 = vld [vmem:[%s2125_s0 + $0xf0] sm:$0xff] }
   0xe   :  { %469 = vmatpush.bf16.msra.mxu0 %v1370_v3  ;;  %1574 = vmatpush.bf16.msra.mxu1 %v1370_v3  ;;  %v1357_v38 = vld [vmem:[%s2125_s0 + $0xb8] sm:$0xff] }
   0xf   :  { %1575 = vmatpush.bf16.msra.mxu2 %v1370_v3  ;;  %1576 = vmatpush.bf16.msra.mxu3 %v1370_v3 }
  0x12   :  { %470 = vmatpush.bf16.msra.mxu0 %v1369_v4  ;;  %1577 = vmatpush.bf16.msra.mxu1 %v1369_v4 }
  0x13   :  { %1578 = vmatpush.bf16.msra.mxu2 %v1369_v4  ;;  %1579 = vmatpush.bf16.msra.mxu3 %v1369_v4 }
  0x16   :  { %471 = vmatpush.bf16.msra.mxu0 %v1368_v5  ;;  %1580 = vmatpush.bf16.msra.mxu1 %v1368_v5 }
  0x17   :  { %1581 = vmatpush.bf16.msra.mxu2 %v1368_v5  ;;  %1582 = vmatpush.bf16.msra.mxu3 %v1368_v5  ;;  %v1365_v5 = vld [vmem:[%s2125_s0 + $0xf8] sm:$0xff] }
  0x1a   :  { %472 = vmatpush.bf16.msra.mxu0 %v1367_v6  ;;  %1583 = vmatpush.bf16.msra.mxu1 %v1367_v6 }
  0x1b   :  { %1584 = vmatpush.bf16.msra.mxu2 %v1367_v6  ;;  %1585 = vmatpush.bf16.msra.mxu3 %v1367_v6 }
  0x1e   :  { %473 = vmatpush.bf16.msra.mxu0 %v1366_v7  ;;  %1586 = vmatpush.bf16.msra.mxu1 %v1366_v7 }
  0x1f   :  { %1587 = vmatpush.bf16.msra.mxu2 %v1366_v7  ;;  %1588 = vmatpush.bf16.msra.mxu3 %v1366_v7 }
  0x21   :  { %474 = vmatmul.bf16.vlgmr.msra.gmra.mxu0 %v1334_v8  ;;  %514 = vmatmul.bf16.vlgmr.msra.gmra.mxu1 %v1342_v9 }
  0x22   :  { %554 = vmatmul.bf16.vlgmr.msra.gmra.mxu2 %v1350_v12  ;;  %594 = vmatmul.bf16.vlgmr.msra.gmra.mxu3 %v1358_v19 }
  0x31   :  { %479 = vmatmul.bf16.gmra.mxu0 %v1335_v10  ;;  %519 = vmatmul.bf16.gmra.mxu1 %v1343_v11 }
  0x32   :  { %559 = vmatmul.bf16.gmra.mxu2 %v1351_v15  ;;  %599 = vmatmul.bf16.gmra.mxu3 %v1359_v23 }
  0x41   :  { %484 = vmatmul.bf16.gmra.mxu0 %v1336_v13  ;;  %524 = vmatmul.bf16.gmra.mxu1 %v1344_v14 }
  0x42   :  { %564 = vmatmul.bf16.gmra.mxu2 %v1352_v18  ;;  %604 = vmatmul.bf16.gmra.mxu3 %v1360_v27 }
  0x51   :  { %489 = vmatmul.bf16.gmra.mxu0 %v1337_v16  ;;  %529 = vmatmul.bf16.gmra.mxu1 %v1345_v17 }
  0x52   :  { %569 = vmatmul.bf16.gmra.mxu2 %v1353_v22  ;;  %609 = vmatmul.bf16.gmra.mxu3 %v1361_v31 }
  0x61   :  { %494 = vmatmul.bf16.gmra.mxu0 %v1338_v20  ;;  %534 = vmatmul.bf16.gmra.mxu1 %v1346_v21 }
  0x62   :  { %574 = vmatmul.bf16.gmra.mxu2 %v1354_v26  ;;  %614 = vmatmul.bf16.gmra.mxu3 %v1362_v35 }
  0x71   :  { %499 = vmatmul.bf16.gmra.mxu0 %v1339_v24  ;;  %539 = vmatmul.bf16.gmra.mxu1 %v1347_v25 }
  0x72   :  { %579 = vmatmul.bf16.gmra.mxu2 %v1355_v30  ;;  %619 = vmatmul.bf16.gmra.mxu3 %v1363_v39 }
  0x81   :  { %504 = vmatmul.bf16.gmra.mxu0 %v1340_v28  ;;  %544 = vmatmul.bf16.gmra.mxu1 %v1348_v29 }
  0x82   :  { %584 = vmatmul.bf16.gmra.mxu2 %v1356_v34  ;;  %624 = vmatmul.bf16.gmra.mxu3 %v1364_v53 }
  0x91   :  { %509 = vmatmul.bf16.gmra.mxu0 %v1341_v32  ;;  %549 = vmatmul.bf16.gmra.mxu1 %v1349_v33 }
  0x92   :  { %589 = vmatmul.bf16.gmra.mxu2 %v1357_v38  ;;  %629 = vmatmul.bf16.gmra.mxu3 %v1365_v5 }
  0x9e   :  { %v475_v36 = vpop.f32.mrf.mxu0  ;;  %v1722_v37 = vpop.f32.mrf.mxu1 }
  0x9f   :  { %v899_v42 = vmul.f32 %v475_v36, %v475_v36 }
  0xa5   :  { %v1747_v59 = vpop.f32.mrf.mxu2  ;;  %v1798_v19 = vpop.f32.mrf.mxu3 }
  0xa6   :  { %v477_v40 = vpop.f32.mrf.mxu0  ;;  %v1730_v41 = vpop.f32.mrf.mxu1 }
  0xa7   :  { %v830_v43 = vadd.f32 %v477_v40, %v475_v36  ;;  %v900_v44 = vmul.f32 %v477_v40, %v477_v40  ;;  %v1377_v45 = vpack.c.bf16 %v477_v40, %v475_v36  ;;  %v1417_v46 = vpack.c.bf16 %v1730_v41, %v1722_v37 }
  0xa9   :  { %v963_v47 = vadd.f32 %v900_v44, %v899_v42  ;;  %1378 = vst [vmem:[%s2126_s2] sm:$0xff] %v1377_v45  }
  0xaa   :  { %1541 = vst [vmem:[%s2126_s2 + $0x40] sm:$0xff] %v1417_v46  }
  0xad   :  { %v1761_v2 = vpop.f32.mrf.mxu2  ;;  %v1812_v24 = vpop.f32.mrf.mxu3 }
  0xae   :  { %v480_v48 = vpop.f32.mrf.mxu0  ;;  %v1740_v49 = vpop.f32.mrf.mxu1  ;;  %v1457_v3 = vpack.c.bf16 %v1761_v2, %v1747_v59  ;;  %v1497_v26 = vpack.c.bf16 %v1812_v24, %v1798_v19 }
  0xaf   :  { %v831_v50 = vadd.f32 %v830_v43, %v480_v48  ;;  %v901_v51 = vmul.f32 %v480_v48, %v480_v48 }
  0xb0   :  { %1549 = vst [vmem:[%s2126_s2 + $0x80] sm:$0xff] %v1457_v3  }
  0xb1   :  { %v964_v52 = vadd.f32 %v963_v47, %v901_v51  ;;  %1557 = vst [vmem:[%s2126_s2 + $0xc0] sm:$0xff] %v1497_v26  }
  0xb5   :  { %v1775_v9 = vpop.f32.mrf.mxu2  ;;  %v1828_v31 = vpop.f32.mrf.mxu3 }
  0xb6   :  { %v482_v54 = vpop.f32.mrf.mxu0  ;;  %v1745_v55 = vpop.f32.mrf.mxu1 }
  0xb7   :  { %v832_v56 = vadd.f32 %v831_v50, %v482_v54  ;;  %v902_v57 = vmul.f32 %v482_v54, %v482_v54  ;;  %v1382_v58 = vpack.c.bf16 %v482_v54, %v480_v48  ;;  %v1422_v60 = vpack.c.bf16 %v1745_v55, %v1740_v49 }
  0xb9   :  { %v965_v61 = vadd.f32 %v964_v52, %v902_v57  ;;  %1534 = vst [vmem:[%s2126_s2 + $0x8] sm:$0xff] %v1382_v58  }
  0xba   :  { %1542 = vst [vmem:[%s2126_s2 + $0x48] sm:$0xff] %v1422_v60  }
  0xbd   :  { %v1787_v13 = vpop.f32.mrf.mxu2  ;;  %v1842_v36 = vpop.f32.mrf.mxu3 }
  0xbe   :  { %v485_v62 = vpop.f32.mrf.mxu0  ;;  %v1757_v63 = vpop.f32.mrf.mxu1  ;;  %v1462_v14 = vpack.c.bf16 %v1787_v13, %v1775_v9  ;;  %v1502_v39 = vpack.c.bf16 %v1842_v36, %v1828_v31 }
  0xbf   :  { %v1759_v0 = vadd.f32 %v832_v56, %v485_v62  ;;  %v903_v1 = vmul.f32 %v485_v62, %v485_v62 }
  0xc0   :  { %1550 = vst [vmem:[%s2126_s2 + $0x88] sm:$0xff] %v1462_v14  }
  0xc1   :  { %v1765_v4 = vadd.f32 %v965_v61, %v903_v1  ;;  %1558 = vst [vmem:[%s2126_s2 + $0xc8] sm:$0xff] %v1502_v39  }
  0xc5   :  { %v1796_v18 = vpop.f32.mrf.mxu2  ;;  %v1858_v45 = vpop.f32.mrf.mxu3 }
  0xc6   :  { %v487_v6 = vpop.f32.mrf.mxu0  ;;  %v1773_v7 = vpop.f32.mrf.mxu1 }
  0xc7   :  { %v1387_v8 = vpack.c.bf16 %v487_v6, %v485_v62  ;;  %v1427_v10 = vpack.c.bf16 %v1773_v7, %v1757_v63  ;;  %v904_v53 = vmul.f32 %v487_v6, %v487_v6  ;;  %v834_v56 = vadd.f32 %v1759_v0, %v487_v6 }
  0xc9   :  { %1535 = vst [vmem:[%s2126_s2 + $0x10] sm:$0xff] %v1387_v8   ;;  %v967_v58 = vadd.f32 %v1765_v4, %v904_v53 }
  0xca   :  { %1543 = vst [vmem:[%s2126_s2 + $0x50] sm:$0xff] %v1427_v10  }
  0xcd   :  { %v1810_v23 = vpop.f32.mrf.mxu2  ;;  %v1872_v51 = vpop.f32.mrf.mxu3 }
  0xce   :  { %v490_v11 = vpop.f32.mrf.mxu0  ;;  %v1785_v12 = vpop.f32.mrf.mxu1  ;;  %v1467_v25 = vpack.c.bf16 %v1810_v23, %v1796_v18  ;;  %v1507_v54 = vpack.c.bf16 %v1872_v51, %v1858_v45 }
  0xcf   :  { %v905_v57 = vmul.f32 %v490_v11, %v490_v11  ;;  %v835_v60 = vadd.f32 %v834_v56, %v490_v11 }
  0xd0   :  { %1551 = vst [vmem:[%s2126_s2 + $0x90] sm:$0xff] %v1467_v25  }
  0xd1   :  { %1559 = vst [vmem:[%s2126_s2 + $0xd0] sm:$0xff] %v1507_v54   ;;  %v968_v3 = vadd.f32 %v967_v58, %v905_v57 }
  0xd5   :  { %v1826_v30 = vpop.f32.mrf.mxu2 }
  0xd6   :  { %v492_v15 = vpop.f32.mrf.mxu0  ;;  %v1794_v16 = vpop.f32.mrf.mxu1 }
  0xd7   :  { %v1392_v17 = vpack.c.bf16 %v492_v15, %v490_v11  ;;  %v1432_v20 = vpack.c.bf16 %v1794_v16, %v1785_v12  ;;  %v906_v61 = vmul.f32 %v492_v15, %v492_v15  ;;  %v836_v5 = vadd.f32 %v835_v60, %v492_v15 }
  0xd9   :  { %1536 = vst [vmem:[%s2126_s2 + $0x18] sm:$0xff] %v1392_v17   ;;  %v1890_v17 = vpop.f32.mrf.mxu3  ;;  %v969_v6 = vadd.f32 %v968_v3, %v906_v61 }
  0xda   :  { %1544 = vst [vmem:[%s2126_s2 + $0x58] sm:$0xff] %v1432_v20  }
  0xdd   :  { %v1840_v35 = vpop.f32.mrf.mxu2 }
  0xde   :  { %v495_v21 = vpop.f32.mrf.mxu0  ;;  %v1808_v22 = vpop.f32.mrf.mxu1  ;;  %v1472_v38 = vpack.c.bf16 %v1840_v35, %v1826_v30 }
  0xdf   :  { %v907_v8 = vmul.f32 %v495_v21, %v495_v21  ;;  %v837_v20 = vadd.f32 %v836_v5, %v495_v21 }
  0xe0   :  { %1552 = vst [vmem:[%s2126_s2 + $0x98] sm:$0xff] %v1472_v38  }
  0xe1   :  { %v970_v4 = vadd.f32 %v969_v6, %v907_v8  ;;  %v1904_v53 = vpop.f32.mrf.mxu3 }
  0xe5   :  { %v1856_v44 = vpop.f32.mrf.mxu2 }
  0xe6   :  { %v497_v27 = vpop.f32.mrf.mxu0  ;;  %v1824_v28 = vpop.f32.mrf.mxu1 }
  0xe7   :  { %v1397_v29 = vpack.c.bf16 %v497_v27, %v495_v21  ;;  %v1437_v32 = vpack.c.bf16 %v1824_v28, %v1808_v22  ;;  %v908_v25 = vmul.f32 %v497_v27, %v497_v27  ;;  %v838_v11 = vadd.f32 %v837_v20, %v497_v27 }
  0xe9   :  { %1537 = vst [vmem:[%s2126_s2 + $0x20] sm:$0xff] %v1397_v29   ;;  %v971_v26 = vadd.f32 %v970_v4, %v908_v25  ;;  %v1920_v25 = vpop.f32.mrf.mxu3  ;;  %v915_v4 = vmul.f32 %v1722_v37, %v1722_v37 }
  0xea   :  { %1545 = vst [vmem:[%s2126_s2 + $0x60] sm:$0xff] %v1437_v32  }
  0xed   :  { %v1870_v50 = vpop.f32.mrf.mxu2 }
  0xee   :  { %v500_v33 = vpop.f32.mrf.mxu0  ;;  %v1838_v34 = vpop.f32.mrf.mxu1  ;;  %v1477_v52 = vpack.c.bf16 %v1870_v50, %v1856_v44 }
  0xef   :  { %v909_v15 = vmul.f32 %v500_v33, %v500_v33  ;;  %v839_v29 = vadd.f32 %v838_v11, %v500_v33 }
  0xf0   :  { %1553 = vst [vmem:[%s2126_s2 + $0xa0] sm:$0xff] %v1477_v52  }
  0xf5   :  { %v1888_v14 = vpop.f32.mrf.mxu2 }
  0xf6   :  { %v502_v40 = vpop.f32.mrf.mxu0  ;;  %v1854_v42 = vpop.f32.mrf.mxu1 }
  0xf7   :  { %v1402_v43 = vpack.c.bf16 %v502_v40, %v500_v33  ;;  %v1442_v46 = vpack.c.bf16 %v1854_v42, %v1838_v34  ;;  %v910_v32 = vmul.f32 %v502_v40, %v502_v40  ;;  %v840_v21 = vadd.f32 %v839_v29, %v502_v40 }
  0xf8   :  { %v1512_v33 = vpack.c.bf16 %v1904_v53, %v1890_v17 }
  0xf9   :  { %1538 = vst [vmem:[%s2126_s2 + $0x28] sm:$0xff] %v1402_v43   ;;  %v972_v43 = vadd.f32 %v971_v26, %v909_v15  ;;  %v916_v26 = vmul.f32 %v1730_v41, %v1730_v41 }
  0xfa   :  { %1546 = vst [vmem:[%s2126_s2 + $0x68] sm:$0xff] %v1442_v46  }
  0xfb   :  { %v973_v56 = vadd.f32 %v972_v43, %v910_v32  ;;  %1560 = vst [vmem:[%s2126_s2 + $0xd8] sm:$0xff] %v1512_v33  }
  0xfd   :  { %v1902_v52 = vpop.f32.mrf.mxu2 }
  0xfe   :  { %v505_v47 = vpop.f32.mrf.mxu0  ;;  %v1868_v48 = vpop.f32.mrf.mxu1  ;;  %v1482_v54 = vpack.c.bf16 %v1902_v52, %v1888_v14 }
  0xff   :  { %v911_v46 = vmul.f32 %v505_v47, %v505_v47  ;;  %v841_v57 = vadd.f32 %v840_v21, %v505_v47  ;;  %v918_v21 = vmul.f32 %v1745_v55, %v1745_v55 }
 0x100   :  { %1554 = vst [vmem:[%s2126_s2 + $0xa8] sm:$0xff] %v1482_v54  }
 0x101   :  { %v974_v58 = vadd.f32 %v973_v56, %v911_v46 }
 0x105   :  { %v1918_v20 = vpop.f32.mrf.mxu2 }
 0x106   :  { %v507_v62 = vpop.f32.mrf.mxu0  ;;  %v1886_v1 = vpop.f32.mrf.mxu1 }
 0x107   :  { %v1407_v10 = vpack.c.bf16 %v507_v62, %v505_v47  ;;  %v1447_v0 = vpack.c.bf16 %v1886_v1, %v1868_v48  ;;  %v912_v27 = vmul.f32 %v507_v62, %v507_v62  ;;  %v842_v40 = vadd.f32 %v841_v57, %v507_v62  ;;  %v1944_v57 = vpop.f32.mrf.mxu3 }
 0x109   :  { %1539 = vst [vmem:[%s2126_s2 + $0x30] sm:$0xff] %v1407_v10   ;;  %v975_v61 = vadd.f32 %v974_v58, %v912_v27  ;;  %v1517_v27 = vpack.c.bf16 %v1944_v57, %v1920_v25 }
 0x10a   :  { %1547 = vst [vmem:[%s2126_s2 + $0x70] sm:$0xff] %v1447_v0  }
 0x10b   :  { %1561 = vst [vmem:[%s2126_s2 + $0xe0] sm:$0xff] %v1517_v27   ;;  %v928_v27 = vmul.f32 %v1886_v1, %v1886_v1 }
 0x10d   :  { %v1942_v56 = vpop.f32.mrf.mxu2 }
 0x10e   :  { %v510_v38 = vpop.f32.mrf.mxu0  ;;  %v1900_v39 = vpop.f32.mrf.mxu1 }
 0x10f   :  { %v913_v60 = vmul.f32 %v510_v38, %v510_v38  ;;  %v843_v3 = vadd.f32 %v842_v40, %v510_v38 }
 0x111   :  { %v976_v47 = vadd.f32 %v975_v61, %v913_v60  ;;  %v921_v61 = vmul.f32 %v1785_v12, %v1785_v12 }
 0x116   :  { %v512_v5 = vpop.f32.mrf.mxu0  ;;  %v1916_v8 = vpop.f32.mrf.mxu1 }
 0x117   :  { %v844_v10 = vadd.f32 %v843_v3, %v512_v5  ;;  %v914_v0 = vmul.f32 %v512_v5, %v512_v5  ;;  %v1412_v6 = vpack.c.bf16 %v512_v5, %v510_v38  ;;  %v1452_v62 = vpack.c.bf16 %v1916_v8, %v1900_v39 }
 0x118   :  { %v917_v38 = vmul.f32 %v1740_v49, %v1740_v49  ;;  %v922_v5 = vmul.f32 %v1794_v16, %v1794_v16 }
 0x119   :  { %v845_v11 = vadd.f32 %v844_v10, %v1722_v37  ;;  %v977_v15 = vadd.f32 %v976_v47, %v914_v0  ;;  %1540 = vst [vmem:[%s2126_s2 + $0x38] sm:$0xff] %v1412_v6   ;;  %v1968_v0 = vpop.f32.mrf.mxu2  ;;  %v923_v6 = vmul.f32 %v1808_v22, %v1808_v22 }
 0x11a   :  { %1548 = vst [vmem:[%s2126_s2 + $0x78] sm:$0xff] %v1452_v62  }
 0x11b   :  { %v846_v29 = vadd.f32 %v845_v11, %v1730_v41  ;;  %v978_v32 = vadd.f32 %v977_v15, %v915_v4  ;;  %v1487_v41 = vpack.c.bf16 %v1942_v56, %v1918_v20  ;;  %v924_v11 = vmul.f32 %v1824_v28, %v1824_v28 }
 0x11d   :  { %v847_v37 = vadd.f32 %v846_v29, %v1740_v49  ;;  %v979_v43 = vadd.f32 %v978_v32, %v916_v26  ;;  %v919_v49 = vmul.f32 %v1757_v63, %v1757_v63  ;;  %1555 = vst [vmem:[%s2126_s2 + $0xb0] sm:$0xff] %v1487_v41   ;;  %v926_v32 = vmul.f32 %v1854_v42, %v1854_v42 }
 0x11f   :  { %v848_v46 = vadd.f32 %v847_v37, %v1745_v55  ;;  %v980_v54 = vadd.f32 %v979_v43, %v917_v38  ;;  %v920_v55 = vmul.f32 %v1773_v7, %v1773_v7 }
 0x121   :  { %v849_v33 = vadd.f32 %v848_v46, %v1757_v63  ;;  %v981_v58 = vadd.f32 %v980_v54, %v918_v21 }
 0x123   :  { %v850_v40 = vadd.f32 %v849_v33, %v1773_v7  ;;  %v982_v60 = vadd.f32 %v981_v58, %v919_v49  ;;  %v1970_v7 = vpop.f32.mrf.mxu3 }
 0x125   :  { %v983_v3 = vadd.f32 %v982_v60, %v920_v55  ;;  %v851_v63 = vadd.f32 %v850_v40, %v1785_v12  ;;  %v930_v40 = vmul.f32 %v1916_v8, %v1916_v8 }
 0x127   :  { %v852_v47 = vadd.f32 %v851_v63, %v1794_v16  ;;  %v984_v10 = vadd.f32 %v983_v3, %v921_v61  ;;  %v925_v16 = vmul.f32 %v1838_v34, %v1838_v34  ;;  %v932_v63 = vmul.f32 %v1761_v2, %v1761_v2 }
 0x129   :  { %v853_v62 = vadd.f32 %v852_v47, %v1808_v22  ;;  %v985_v4 = vadd.f32 %v984_v10, %v922_v5  ;;  %v1984_v22 = vpop.f32.mrf.mxu2  ;;  %v933_v47 = vmul.f32 %v1775_v9, %v1775_v9 }
 0x12b   :  { %v854_v12 = vadd.f32 %v853_v62, %v1824_v28  ;;  %v986_v15 = vadd.f32 %v985_v4, %v923_v6  ;;  %v1986_v43 = vpop.f32.mrf.mxu3  ;;  %v1492_v28 = vpack.c.bf16 %v1984_v22, %v1968_v0  ;;  %v934_v6 = vmul.f32 %v1787_v13, %v1787_v13 }
 0x12c   :  { %v1522_v21 = vpack.c.bf16 %v1986_v43, %v1970_v7 }
 0x12d   :  { %v855_v26 = vadd.f32 %v854_v12, %v1838_v34  ;;  %v987_v29 = vadd.f32 %v986_v15, %v924_v11  ;;  %v927_v34 = vmul.f32 %v1868_v48, %v1868_v48  ;;  %1556 = vst [vmem:[%s2126_s2 + $0xb8] sm:$0xff] %v1492_v28  }
 0x12e   :  { %1562 = vst [vmem:[%s2126_s2 + $0xe8] sm:$0xff] %v1522_v21   ;;  %v939_v21 = vmul.f32 %v1856_v44, %v1856_v44 }
 0x12f   :  { %v856_v38 = vadd.f32 %v855_v26, %v1854_v42  ;;  %v988_v37 = vadd.f32 %v987_v29, %v925_v16  ;;  %v937_v26 = vmul.f32 %v1826_v30, %v1826_v30 }
 0x131   :  { %v857_v46 = vadd.f32 %v856_v38, %v1868_v48  ;;  %v989_v54 = vadd.f32 %v988_v37, %v926_v32  ;;  %v929_v48 = vmul.f32 %v1900_v39, %v1900_v39 }
 0x133   :  { %v990_v42 = vadd.f32 %v989_v54, %v927_v34  ;;  %v858_v41 = vadd.f32 %v857_v46, %v1886_v1  ;;  %v2010_v60 = vpop.f32.mrf.mxu3  ;;  %v931_v1 = vmul.f32 %v1747_v59, %v1747_v59  ;;  %v940_v34 = vmul.f32 %v1870_v50, %v1870_v50 }
 0x135   :  { %v991_v49 = vadd.f32 %v990_v42, %v928_v27  ;;  %v859_v33 = vadd.f32 %v858_v41, %v1900_v39  ;;  %v941_v42 = vmul.f32 %v1888_v14, %v1888_v14 }
 0x137   :  { %v992_v58 = vadd.f32 %v991_v49, %v929_v48  ;;  %v860_v55 = vadd.f32 %v859_v33, %v1916_v8  ;;  %v942_v49 = vmul.f32 %v1902_v52, %v1902_v52 }
 0x139   :  { %v861_v61 = vadd.f32 %v860_v55, %v1747_v59  ;;  %v993_v3 = vadd.f32 %v992_v58, %v930_v40 }
 0x13b   :  { %v862_v5 = vadd.f32 %v861_v61, %v1761_v2  ;;  %v994_v39 = vadd.f32 %v993_v3, %v931_v1  ;;  %v2024_v59 = vpop.f32.mrf.mxu3  ;;  %v935_v2 = vmul.f32 %v1796_v18, %v1796_v18  ;;  %v945_v3 = vmul.f32 %v1968_v0, %v1968_v0 }
 0x13c   :  { %v1527_v11 = vpack.c.bf16 %v2024_v59, %v2010_v60 }
 0x13d   :  { %v863_v10 = vadd.f32 %v862_v5, %v1775_v9  ;;  %v995_v8 = vadd.f32 %v994_v39, %v932_v63  ;;  %v936_v9 = vmul.f32 %v1810_v23, %v1810_v23  ;;  %v947_v39 = vmul.f32 %v1798_v19, %v1798_v19 }
 0x13e   :  { %1563 = vst [vmem:[%s2126_s2 + $0xf0] sm:$0xff] %v1527_v11  }
 0x13f   :  { %v864_v62 = vadd.f32 %v863_v10, %v1787_v13  ;;  %v996_v4 = vadd.f32 %v995_v8, %v933_v47 }
 0x141   :  { %v865_v12 = vadd.f32 %v864_v62, %v1796_v18  ;;  %v997_v15 = vadd.f32 %v996_v4, %v934_v6  ;;  %v938_v18 = vmul.f32 %v1840_v35, %v1840_v35 }
 0x143   :  { %v866_v13 = vadd.f32 %v865_v12, %v1810_v23  ;;  %v998_v16 = vadd.f32 %v997_v15, %v935_v2  ;;  %v2043_v28 = vpop.f32.mrf.mxu3 }
 0x145   :  { %v999_v29 = vadd.f32 %v998_v16, %v936_v9  ;;  %v867_v32 = vadd.f32 %v866_v13, %v1826_v30 }
 0x147   :  { %v868_v38 = vadd.f32 %v867_v32, %v1840_v35  ;;  %v1000_v37 = vadd.f32 %v999_v29, %v937_v26 }
 0x149   :  { %v869_v23 = vadd.f32 %v868_v38, %v1856_v44  ;;  %v1001_v46 = vadd.f32 %v1000_v37, %v938_v18 }
 0x14b   :  { %v870_v54 = vadd.f32 %v869_v23, %v1870_v50  ;;  %v1002_v30 = vadd.f32 %v1001_v46, %v939_v21  ;;  %v632_v44 = vpop.f32.mrf.mxu3  ;;  %v943_v50 = vmul.f32 %v1918_v20, %v1918_v20 }
 0x14c   :  { %v1532_v48 = vpack.c.bf16 %v632_v44, %v2043_v28 }
 0x14d   :  { %v871_v35 = vadd.f32 %v870_v54, %v1888_v14  ;;  %v1003_v41 = vadd.f32 %v1002_v30, %v940_v34  ;;  %v958_v34 = vmul.f32 %v1986_v43, %v1986_v43 }
 0x14e   :  { %1564 = vst [vmem:[%s2126_s2 + $0xf8] sm:$0xff] %v1532_v48   ;;  %v962_v48 = vmul.f32 %v632_v44, %v632_v44 }
 0x14f   :  { %v872_v27 = vadd.f32 %v871_v35, %v1902_v52  ;;  %v1004_v33 = vadd.f32 %v1003_v41, %v941_v42  ;;  %v944_v52 = vmul.f32 %v1942_v56, %v1942_v56  ;;  %v959_v42 = vmul.f32 %v2010_v60, %v2010_v60 }
 0x150   :  { %v960_v41 = vmul.f32 %v2024_v59, %v2024_v59 }
 0x151   :  { %v1005_v58 = vadd.f32 %v1004_v33, %v942_v49  ;;  %v873_v55 = vadd.f32 %v872_v27, %v1918_v20  ;;  %v946_v20 = vmul.f32 %v1984_v22, %v1984_v22  ;;  %v961_v49 = vmul.f32 %v2043_v28, %v2043_v28 }
 0x153   :  { %v1006_v14 = vadd.f32 %v1005_v58, %v943_v50  ;;  %v874_v40 = vadd.f32 %v873_v55, %v1942_v56  ;;  %v948_v56 = vmul.f32 %v1812_v24, %v1812_v24 }
 0x155   :  { %v1007_v1 = vadd.f32 %v1006_v14, %v944_v52  ;;  %v875_v61 = vadd.f32 %v874_v40, %v1968_v0  ;;  %v949_v0 = vmul.f32 %v1828_v31, %v1828_v31 }
 0x157   :  { %v1008_v63 = vadd.f32 %v1007_v1, %v945_v3  ;;  %v876_v5 = vadd.f32 %v875_v61, %v1984_v22  ;;  %v950_v22 = vmul.f32 %v1842_v36, %v1842_v36 }
 0x159   :  { %v877_v47 = vadd.f32 %v876_v5, %v1798_v19  ;;  %v1009_v10 = vadd.f32 %v1008_v63, %v946_v20  ;;  %v951_v19 = vmul.f32 %v1858_v45, %v1858_v45 }
 0x15b   :  { %v878_v8 = vadd.f32 %v877_v47, %v1812_v24  ;;  %v1010_v6 = vadd.f32 %v1009_v10, %v947_v39  ;;  %v952_v24 = vmul.f32 %v1872_v51, %v1872_v51 }
 0x15d   :  { %v879_v62 = vadd.f32 %v878_v8, %v1828_v31  ;;  %v1011_v4 = vadd.f32 %v1010_v6, %v948_v56  ;;  %v953_v31 = vmul.f32 %v1890_v17, %v1890_v17 }
 0x15f   :  { %v880_v11 = vadd.f32 %v879_v62, %v1842_v36  ;;  %v1012_v2 = vadd.f32 %v1011_v4, %v949_v0  ;;  %v954_v36 = vmul.f32 %v1904_v53, %v1904_v53 }
 0x161   :  { %v881_v12 = vadd.f32 %v880_v11, %v1858_v45  ;;  %v1013_v15 = vadd.f32 %v1012_v2, %v950_v22  ;;  %v955_v45 = vmul.f32 %v1920_v25, %v1920_v25 }
 0x163   :  { %v882_v9 = vadd.f32 %v881_v12, %v1872_v51  ;;  %v1014_v13 = vadd.f32 %v1013_v15, %v951_v19  ;;  %v956_v51 = vmul.f32 %v1944_v57, %v1944_v57 }
 0x165   :  { %v1015_v16 = vadd.f32 %v1014_v13, %v952_v24  ;;  %v883_v26 = vadd.f32 %v882_v9, %v1890_v17  ;;  %v957_v17 = vmul.f32 %v1970_v7, %v1970_v7 }
 0x167   :  { %v884_v29 = vadd.f32 %v883_v26, %v1904_v53  ;;  %v1016_v32 = vadd.f32 %v1015_v16, %v953_v31 }
 0x169   :  { %v885_v18 = vadd.f32 %v884_v29, %v1920_v25  ;;  %v1017_v38 = vadd.f32 %v1016_v32, %v954_v36 }
 0x16b   :  { %v886_v37 = vadd.f32 %v885_v18, %v1944_v57  ;;  %v1018_v21 = vadd.f32 %v1017_v38, %v955_v45 }
 0x16d   :  { %v887_v23 = vadd.f32 %v886_v37, %v1970_v7  ;;  %v1019_v46 = vadd.f32 %v1018_v21, %v956_v51 }
 0x16f   :  { %v888_v53 = vadd.f32 %v887_v23, %v1986_v43  ;;  %v1020_v54 = vadd.f32 %v1019_v46, %v957_v17 }
 0x171   :  { %v1021_v25 = vadd.f32 %v1020_v54, %v958_v34  ;;  %v889_v30 = vadd.f32 %v888_v53, %v2010_v60 }
 0x173   :  { %v1022_v57 = vadd.f32 %v1021_v25, %v959_v42  ;;  %v890_v35 = vadd.f32 %v889_v30, %v2024_v59 }
 0x175   :  { %v1023_v7 = vadd.f32 %v1022_v57, %v960_v41  ;;  %v891_v27 = vadd.f32 %v890_v35, %v2043_v28 }
 0x177   :  { %v1024_v43 = vadd.f32 %v1023_v7, %v961_v49  ;;  %v892_v33 = vadd.f32 %v891_v27, %v632_v44 }
 0x179   :  { %v893_v58 = vrot.slane %v892_v33, 4  ;;  %v1025_v55 = vadd.f32 %v1024_v43, %v962_v48 }
 0x17b   :  { %v894_v50 = vadd.f32 %v893_v58, %v892_v33  ;;  %v1026_v14 = vrot.slane %v1025_v55, 4 }
 0x17d   :  { %v895_v60 = vrot.slane %v894_v50, 2  ;;  %v1027_v40 = vadd.f32 %v1026_v14, %v1025_v55 }
 0x17f   :  { %v896_v52 = vadd.f32 %v895_v60, %v894_v50  ;;  %v1028_v1 = vrot.slane %v1027_v40, 2 }
 0x181   :  { %v897_v61 = vrot.slane %v896_v52, 1  ;;  %v1029_v3 = vadd.f32 %v1028_v1, %v1027_v40 }
 0x183   :  { %v898_v59 = vadd.f32 %v897_v61, %v896_v52  ;;  %v1030_v63 = vrot.slane %v1029_v3, 1 }
 0x185   :  { %v1031_v5 = vadd.f32 %v1030_v63, %v1029_v3  ;;  %1032 = vst [vmem:[%s2127_s3] sm:$0x1] %v898_v59 }
 0x187   :  { %1033 = vst [vmem:[%s2128_s4] sm:$0x1] %v1031_v5 }

// kernel: resnet_decoder_forward.25
= control target key start
LH: loop header
LB: loop body
LE: loop exit
PB: predicated region body
PF: predicated region fallthrough
CT: control target
= control target key end

     0   :  { %s3748_s15 = smov 0   ;;  %s3750_s16 = smov 0   ;;  %s4366_s0 = inlined_call_operand.vmem [shape: bf16[2048,512], index: 0, kind: input, shape index: {}]   ;;  %s4367_s1 = inlined_call_operand.vmem [shape: bf16[512,128], index: 1, kind: input, shape index: {}]   ;;  %s4368_s2 = inlined_call_operand.vmem [shape: f32[1,128], index: 2, kind: input, shape index: {}]   ;;  %s4369_s3 = inlined_call_operand.vmem [shape: f32[1,128], index: 3, kind: input, shape index: {}]   ;;  %s4370_s4 = inlined_call_operand.vmem [shape: f32[2048,128], index: 4, kind: output, shape index: {}]  }
   0x1   :  { %s3752_s17 = smov 0  }
   0x2 LB: > { %s33_s18 = sadd.s32 1, %s3717_s16  ;;  %p2732_p0 = scmp.ge.s32.totalorder %s3721_s17, 1  ;;  %s3721_s17 = sphi %s3752_s17, %s14_s17   ;;  %s3717_s16 = sphi %s3750_s16, %s4372_s16   ;;  %s3713_s15 = sphi %s3748_s15, %s4371_s15  }
   0x3   : > { %p35_p1 = scmp.ge.s32.totalorder %s33_s18, 4  ;;  %p224_p2 = scmp.lt.s32.totalorder %s3721_s17, 5 }
   0x5   : > { %s4374_s18 = smov (%p35_p1, %s33_s18), 0  ;;  %p225_p3 = pnand %p2732_p0, %p224_p2 }
   0x6   : > { %s2733_s21 = sshll.u32 (!%p225_p3), %s3713_s15, 6 }
   0x7   : > { %228 = sbr.rel (%p225_p3) target bundleno = 698 (0x2ba), region = 36  ;;  %p274_p4 = scmp.lt.s32.totalorder (!%p225_p3), %s2733_s21, 255 }
   0xc   : > { %v3516_v0 = vld [vmem:[%s4367_s1 + $0x38] sm:$0xff]  ;;  %v3515_v4 = vld [vmem:[%s4367_s1 + $0x30] sm:$0xff]  ;;  %v3514_v8 = vld [vmem:[%s4367_s1 + $0x28] sm:$0xff]  ;;  %s4376_s21 = smov (!%p274_p4, %s2733_s21), 255 }
   0xd   : > { %v3524_v1 = vld [vmem:[%s4367_s1 + $0x78] sm:$0xff]  ;;  %1464 = vmatpush.bf16.msra.mxu0 %v3516_v0  ;;  %v3523_v5 = vld [vmem:[%s4367_s1 + $0x70] sm:$0xff]  ;;  %v3522_v9 = vld [vmem:[%s4367_s1 + $0x68] sm:$0xff]  ;;  %s3380_s24 = sshll.u32 %s4376_s21, 4  ;;  %s2737_s26 = sshll.u32 %s4376_s21, 3 }
   0xe   : > { %v3532_v2 = vld [vmem:[%s4367_s1 + $0xb8] sm:$0xff]  ;;  %1633 = vmatpush.bf16.msra.mxu1 %v3524_v1  ;;  %v3531_v6 = vld [vmem:[%s4367_s1 + $0xb0] sm:$0xff]  ;;  %v3530_v10 = vld [vmem:[%s4367_s1 + $0xa8] sm:$0xff]  ;;  %s3853_s30 = scalar_lea.vmem %s4366_s0, %s3380_s24  ;;  %s3969_s29 = scalar_lea.vmem %s4370_s4, %s2737_s26 }
   0xf   : > { %v3540_v3 = vld [vmem:[%s4367_s1 + $0xf8] sm:$0xff]  ;;  %1802 = vmatpush.bf16.msra.mxu2 %v3532_v2  ;;  %v3539_v7 = vld [vmem:[%s4367_s1 + $0xf0] sm:$0xff]  ;;  %v3538_v11 = vld [vmem:[%s4367_s1 + $0xe8] sm:$0xff] }
  0x10   : > { %1971 = vmatpush.bf16.msra.mxu3 %v3540_v3  ;;  %v3513_v12 = vld [vmem:[%s4367_s1 + $0x20] sm:$0xff]  ;;  %v3512_v16 = vld [vmem:[%s4367_s1 + $0x18] sm:$0xff]  ;;  %v3511_v20 = vld [vmem:[%s4367_s1 + $0x10] sm:$0xff] }
  0x11   : > { %1465 = vmatpush.bf16.msra.mxu0 %v3515_v4  ;;  %v3521_v13 = vld [vmem:[%s4367_s1 + $0x60] sm:$0xff]  ;;  %v3520_v17 = vld [vmem:[%s4367_s1 + $0x58] sm:$0xff]  ;;  %v3519_v21 = vld [vmem:[%s4367_s1 + $0x50] sm:$0xff] }
  0x12   : > { %1634 = vmatpush.bf16.msra.mxu1 %v3523_v5  ;;  %v3529_v14 = vld [vmem:[%s4367_s1 + $0xa0] sm:$0xff]  ;;  %v3528_v18 = vld [vmem:[%s4367_s1 + $0x98] sm:$0xff]  ;;  %v3527_v22 = vld [vmem:[%s4367_s1 + $0x90] sm:$0xff] }
  0x13   : > { %1803 = vmatpush.bf16.msra.mxu2 %v3531_v6  ;;  %v3537_v15 = vld [vmem:[%s4367_s1 + $0xe0] sm:$0xff]  ;;  %v3536_v19 = vld [vmem:[%s4367_s1 + $0xd8] sm:$0xff]  ;;  %v3535_v23 = vld [vmem:[%s4367_s1 + $0xd0] sm:$0xff] }
  0x14   : > { %1972 = vmatpush.bf16.msra.mxu3 %v3539_v7  ;;  %v3510_v24 = vld [vmem:[%s4367_s1 + $0x8] sm:$0xff]  ;;  %v3509_v28 = vld [vmem:[%s4367_s1] sm:$0xff]  ;;  %v3383_v33 = vld [vmem:[%s3853_s30 + $0xc] sm:$0xf0] }
  0x15   : > { %1466 = vmatpush.bf16.msra.mxu0 %v3514_v8  ;;  %v3518_v25 = vld [vmem:[%s4367_s1 + $0x48] sm:$0xff]  ;;  %v3517_v29 = vld [vmem:[%s4367_s1 + $0x40] sm:$0xff]  ;;  %v2742_v35 = vld [vmem:[%s3853_s30 + $0x10] sm:$0xf0] }
  0x16   : > { %1635 = vmatpush.bf16.msra.mxu1 %v3522_v9  ;;  %v3526_v26 = vld [vmem:[%s4367_s1 + $0x88] sm:$0xff]  ;;  %v3525_v30 = vld [vmem:[%s4367_s1 + $0x80] sm:$0xff]  ;;  %v3384_v37 = vld [vmem:[%s3853_s30 + $0x14] sm:$0xf0] }
  0x17   : > { %1804 = vmatpush.bf16.msra.mxu2 %v3530_v10  ;;  %v3534_v27 = vld [vmem:[%s4367_s1 + $0xc8] sm:$0xff]  ;;  %v3533_v31 = vld [vmem:[%s4367_s1 + $0xc0] sm:$0xff]  ;;  %v2750_v39 = vld [vmem:[%s3853_s30 + $0x18] sm:$0xf0] }
  0x18   : > { %1973 = vmatpush.bf16.msra.mxu3 %v3538_v11  ;;  %v2740_v32 = vld [vmem:[%s3853_s30] sm:$0xf]  ;;  %v3381_v34 = vld [vmem:[%s3853_s30 + $0x4] sm:$0xf]  ;;  %v2748_v36 = vld [vmem:[%s3853_s30 + $0x8] sm:$0xf] }
  0x19   : > { %1467 = vmatpush.bf16.msra.mxu0 %v3513_v12  ;;  %v3382_v38 = vld [vmem:[%s3853_s30 + $0xc] sm:$0xf]  ;;  %v2741_v40 = vor.u32 %v3383_v33, %v2740_v32  ;;  %v2745_v41 = vor.u32 %v3381_v34, %v2742_v35  ;;  %v2749_v42 = vor.u32 %v3384_v37, %v2748_v36  ;;  %v2756_v44 = vld [vmem:[%s3853_s30 + $0x20] sm:$0xf]  ;;  %v3387_v45 = vld [vmem:[%s3853_s30 + $0x2c] sm:$0xf0] }
  0x1a   : > { %1636 = vmatpush.bf16.msra.mxu1 %v3521_v13  ;;  %v2753_v43 = vor.u32 %v3382_v38, %v2750_v39  ;;  %v3385_v46 = vld [vmem:[%s3853_s30 + $0x24] sm:$0xf]  ;;  %v2758_v47 = vld [vmem:[%s3853_s30 + $0x30] sm:$0xf0]  ;;  %v2764_v48 = vld [vmem:[%s3853_s30 + $0x28] sm:$0xf]  ;;  %v2757_v52 = vor.u32 %v3387_v45, %v2756_v44 }
  0x1b   : > { %1805 = vmatpush.bf16.msra.mxu2 %v3529_v14  ;;  %v3388_v49 = vld [vmem:[%s3853_s30 + $0x34] sm:$0xf0]  ;;  %v3386_v50 = vld [vmem:[%s3853_s30 + $0x2c] sm:$0xf]  ;;  %v2766_v51 = vld [vmem:[%s3853_s30 + $0x38] sm:$0xf0]  ;;  %v2761_v53 = vor.u32 %v3385_v46, %v2758_v47 }
  0x1c   : > { %1974 = vmatpush.bf16.msra.mxu3 %v3537_v15  ;;  %v2765_v54 = vor.u32 %v3388_v49, %v2764_v48  ;;  %v2769_v55 = vor.u32 %v3386_v50, %v2766_v51  ;;  %v2772_v56 = vld [vmem:[%s3853_s30 + $0x40] sm:$0xf]  ;;  %v3391_v57 = vld [vmem:[%s3853_s30 + $0x4c] sm:$0xf0]  ;;  %v3389_v58 = vld [vmem:[%s3853_s30 + $0x44] sm:$0xf] }
  0x1d   : > { %1468 = vmatpush.bf16.msra.mxu0 %v3512_v16  ;;  %v2774_v59 = vld [vmem:[%s3853_s30 + $0x50] sm:$0xf0]  ;;  %v2780_v60 = vld [vmem:[%s3853_s30 + $0x48] sm:$0xf]  ;;  %v3392_v61 = vld [vmem:[%s3853_s30 + $0x54] sm:$0xf0]  ;;  %v2773_v0 = vor.u32 %v3391_v57, %v2772_v56 }
  0x1e   : > { %1637 = vmatpush.bf16.msra.mxu1 %v3520_v17  ;;  %v3390_v62 = vld [vmem:[%s3853_s30 + $0x4c] sm:$0xf]  ;;  %v2782_v63 = vld [vmem:[%s3853_s30 + $0x58] sm:$0xf0]  ;;  %v2777_v1 = vor.u32 %v3389_v58, %v2774_v59  ;;  %v2781_v2 = vor.u32 %v3392_v61, %v2780_v60  ;;  %v2788_v4 = vld [vmem:[%s3853_s30 + $0x60] sm:$0xf] }
  0x1f   : > { %1806 = vmatpush.bf16.msra.mxu2 %v3528_v18  ;;  %v2785_v3 = vor.u32 %v3390_v62, %v2782_v63  ;;  %v3395_v5 = vld [vmem:[%s3853_s30 + $0x6c] sm:$0xf0]  ;;  %v3393_v6 = vld [vmem:[%s3853_s30 + $0x64] sm:$0xf]  ;;  %v2790_v7 = vld [vmem:[%s3853_s30 + $0x70] sm:$0xf0] }
  0x20   : > { %1975 = vmatpush.bf16.msra.mxu3 %v3536_v19  ;;  %v2796_v8 = vld [vmem:[%s3853_s30 + $0x68] sm:$0xf]  ;;  %v3396_v9 = vld [vmem:[%s3853_s30 + $0x74] sm:$0xf0]  ;;  %v3394_v10 = vld [vmem:[%s3853_s30 + $0x6c] sm:$0xf]  ;;  %v2789_v12 = vor.u32 %v3395_v5, %v2788_v4  ;;  %v2793_v13 = vor.u32 %v3393_v6, %v2790_v7 }
  0x21   : > { %1469 = vmatpush.bf16.msra.mxu0 %v3511_v20  ;;  %v2798_v11 = vld [vmem:[%s3853_s30 + $0x78] sm:$0xf0]  ;;  %v2797_v14 = vor.u32 %v3396_v9, %v2796_v8  ;;  %v2804_v16 = vld [vmem:[%s3853_s30 + $0x80] sm:$0xf]  ;;  %v3399_v17 = vld [vmem:[%s3853_s30 + $0x8c] sm:$0xf0] }
  0x22   : > { %1638 = vmatpush.bf16.msra.mxu1 %v3519_v21  ;;  %v2801_v15 = vor.u32 %v3394_v10, %v2798_v11  ;;  %v3397_v18 = vld [vmem:[%s3853_s30 + $0x84] sm:$0xf]  ;;  %v2806_v19 = vld [vmem:[%s3853_s30 + $0x90] sm:$0xf0]  ;;  %v2812_v20 = vld [vmem:[%s3853_s30 + $0x88] sm:$0xf] }
  0x23   : > { %1807 = vmatpush.bf16.msra.mxu2 %v3527_v22  ;;  %v3400_v21 = vld [vmem:[%s3853_s30 + $0x94] sm:$0xf0]  ;;  %v3398_v22 = vld [vmem:[%s3853_s30 + $0x8c] sm:$0xf]  ;;  %v2828_v32 = vld [vmem:[%s3853_s30 + $0xa8] sm:$0xf] }
  0x24   : > { %1976 = vmatpush.bf16.msra.mxu3 %v3535_v23  ;;  %v2814_v23 = vld [vmem:[%s3853_s30 + $0x98] sm:$0xf0]  ;;  %v3404_v33 = vld [vmem:[%s3853_s30 + $0xb4] sm:$0xf0]  ;;  %v3402_v34 = vld [vmem:[%s3853_s30 + $0xac] sm:$0xf] }
  0x25   : > { %1470 = vmatpush.bf16.msra.mxu0 %v3510_v24  ;;  %v2805_v24 = vor.u32 %v3399_v17, %v2804_v16  ;;  %v2830_v35 = vld [vmem:[%s3853_s30 + $0xb8] sm:$0xf0]  ;;  %v2829_v38 = vor.u32 %v3404_v33, %v2828_v32  ;;  %v2844_v44 = vld [vmem:[%s3853_s30 + $0xc8] sm:$0xf]  ;;  %v3408_v45 = vld [vmem:[%s3853_s30 + $0xd4] sm:$0xf0] }
  0x26   : > { %1639 = vmatpush.bf16.msra.mxu1 %v3518_v25  ;;  %v2809_v25 = vor.u32 %v3397_v18, %v2806_v19  ;;  %v2833_v39 = vor.u32 %v3402_v34, %v2830_v35  ;;  %v3406_v46 = vld [vmem:[%s3853_s30 + $0xcc] sm:$0xf]  ;;  %v2846_v47 = vld [vmem:[%s3853_s30 + $0xd8] sm:$0xf0]  ;;  %v2845_v50 = vor.u32 %v3408_v45, %v2844_v44  ;;  %v2860_v56 = vld [vmem:[%s3853_s30 + $0xe8] sm:$0xf] }
  0x27   : > { %1808 = vmatpush.bf16.msra.mxu2 %v3526_v26  ;;  %v2813_v26 = vor.u32 %v3400_v21, %v2812_v20  ;;  %v2849_v51 = vor.u32 %v3406_v46, %v2846_v47  ;;  %v3412_v57 = vld [vmem:[%s3853_s30 + $0xf4] sm:$0xf0]  ;;  %v3410_v58 = vld [vmem:[%s3853_s30 + $0xec] sm:$0xf]  ;;  %v2862_v59 = vld [vmem:[%s3853_s30 + $0xf8] sm:$0xf0] }
  0x28   : > { %1977 = vmatpush.bf16.msra.mxu3 %v3534_v27  ;;  %v2817_v27 = vor.u32 %v3398_v22, %v2814_v23  ;;  %v2861_v62 = vor.u32 %v3412_v57, %v2860_v56  ;;  %v2865_v63 = vor.u32 %v3410_v58, %v2862_v59  ;;  %v2876_v4 = vld [vmem:[%s3853_s30 + $0x108] sm:$0xf]  ;;  %v3416_v5 = vld [vmem:[%s3853_s30 + $0x114] sm:$0xf0]  ;;  %v3414_v6 = vld [vmem:[%s3853_s30 + $0x10c] sm:$0xf] }
  0x29   : > { %1471 = vmatpush.bf16.msra.mxu0 %v3509_v28  ;;  %v2820_v28 = vld [vmem:[%s3853_s30 + $0xa0] sm:$0xf]  ;;  %v2878_v7 = vld [vmem:[%s3853_s30 + $0x118] sm:$0xf0]  ;;  %v3421_v57 = vld [vmem:[%s3853_s30 + $0x144] sm:$0xf] }
  0x2a   : > { %1640 = vmatpush.bf16.msra.mxu1 %v3517_v29  ;;  %v3403_v29 = vld [vmem:[%s3853_s30 + $0xac] sm:$0xf0]  ;;  %v3948_v18 = vld [vmem:[%s4368_s2] ss:$0 sm:$0xff]  ;;  %v2902_v58 = vld [vmem:[%s3853_s30 + $0x150] sm:$0xf0] }
  0x2b   : > { %1809 = vmatpush.bf16.msra.mxu2 %v3525_v30  ;;  %v3401_v30 = vld [vmem:[%s3853_s30 + $0xa4] sm:$0xf]  ;;  %v2821_v36 = vor.u32 %v3403_v29, %v2820_v28  ;;  %v3953_v22 = vld [vmem:[%s4369_s3] ss:$0 sm:$0xff]  ;;  %v2892_v28 = vld [vmem:[%s3853_s30 + $0x128] sm:$0xf] }
  0x2c   : > { %1978 = vmatpush.bf16.msra.mxu3 %v3533_v31  ;;  %1472 = vmatmul.bf16.vlgmr.msra.gmra.mxu0 %v2741_v40  ;;  %v2822_v31 = vld [vmem:[%s3853_s30 + $0xb0] sm:$0xf0]  ;;  %v2836_v40 = vld [vmem:[%s3853_s30 + $0xc0] sm:$0xf]  ;;  %v3420_v29 = vld [vmem:[%s3853_s30 + $0x134] sm:$0xf0] }
  0x2d   : > { %1641 = vmatmul.bf16.vlgmr.msra.gmra.mxu1 %v2745_v41  ;;  %v2825_v37 = vor.u32 %v3401_v30, %v2822_v31  ;;  %v3407_v41 = vld [vmem:[%s3853_s30 + $0xcc] sm:$0xf0]  ;;  %v2884_v23 = vld [vmem:[%s3853_s30 + $0x120] sm:$0xf]  ;;  %v3418_v30 = vld [vmem:[%s3853_s30 + $0x12c] sm:$0xf] }
  0x2e   : > { %1810 = vmatmul.bf16.vlgmr.msra.gmra.mxu2 %v2749_v42  ;;  %v3405_v42 = vld [vmem:[%s3853_s30 + $0xc4] sm:$0xf]  ;;  %v2837_v48 = vor.u32 %v3407_v41, %v2836_v40  ;;  %v2894_v31 = vld [vmem:[%s3853_s30 + $0x138] sm:$0xf0]  ;;  %v2893_v41 = vor.u32 %v3420_v29, %v2892_v28  ;;  %v2908_v59 = vld [vmem:[%s3853_s30 + $0x148] sm:$0xf] }
  0x2f   : > { %1979 = vmatmul.bf16.vlgmr.msra.gmra.mxu3 %v2753_v43  ;;  %v2838_v43 = vld [vmem:[%s3853_s30 + $0xd0] sm:$0xf0]  ;;  %v2924_v29 = vld [vmem:[%s3853_s30 + $0x168] sm:$0xf] }
  0x30   : > { %v2841_v49 = vor.u32 %v3405_v42, %v2838_v43  ;;  %v2897_v42 = vor.u32 %v3418_v30, %v2894_v31  ;;  %v2918_v28 = vld [vmem:[%s3853_s30 + $0x170] sm:$0xf0]  ;;  %v3428_v30 = vld [vmem:[%s3853_s30 + $0x174] sm:$0xf0]  ;;  %v3426_v31 = vld [vmem:[%s3853_s30 + $0x16c] sm:$0xf] }
  0x3c   : > { %1477 = vmatmul.bf16.gmra.mxu0 %v2757_v52  ;;  %v2852_v52 = vld [vmem:[%s3853_s30 + $0xe0] sm:$0xf] }
  0x3d   : > { %1646 = vmatmul.bf16.gmra.mxu1 %v2761_v53  ;;  %v3411_v53 = vld [vmem:[%s3853_s30 + $0xec] sm:$0xf0] }
  0x3e   : > { %1815 = vmatmul.bf16.gmra.mxu2 %v2765_v54  ;;  %v3409_v54 = vld [vmem:[%s3853_s30 + $0xe4] sm:$0xf]  ;;  %v2853_v60 = vor.u32 %v3411_v53, %v2852_v52 }
  0x3f   : > { %1984 = vmatmul.bf16.gmra.mxu3 %v2769_v55  ;;  %v2854_v55 = vld [vmem:[%s3853_s30 + $0xf0] sm:$0xf0] }
  0x40   : > { %v2857_v61 = vor.u32 %v3409_v54, %v2854_v55  ;;  %v2900_v54 = vld [vmem:[%s3853_s30 + $0x140] sm:$0xf]  ;;  %v3423_v55 = vld [vmem:[%s3853_s30 + $0x14c] sm:$0xf0] }
  0x4c   : > { %1482 = vmatmul.bf16.gmra.mxu0 %v2773_v0  ;;  %v2868_v0 = vld [vmem:[%s3853_s30 + $0x100] sm:$0xf] }
  0x4d   : > { %1651 = vmatmul.bf16.gmra.mxu1 %v2777_v1  ;;  %v3415_v1 = vld [vmem:[%s3853_s30 + $0x10c] sm:$0xf0] }
  0x4e   : > { %1820 = vmatmul.bf16.gmra.mxu2 %v2781_v2  ;;  %v3413_v2 = vld [vmem:[%s3853_s30 + $0x104] sm:$0xf]  ;;  %v2869_v8 = vor.u32 %v3415_v1, %v2868_v0 }
  0x4f   : > { %1989 = vmatmul.bf16.gmra.mxu3 %v2785_v3  ;;  %v2870_v3 = vld [vmem:[%s3853_s30 + $0x110] sm:$0xf0] }
  0x50   : > { %v2873_v9 = vor.u32 %v3413_v2, %v2870_v3 }
  0x5c   : > { %1487 = vmatmul.bf16.gmra.mxu0 %v2789_v12  ;;  %v2877_v12 = vor.u32 %v3416_v5, %v2876_v4  ;;  %v2901_v4 = vor.u32 %v3423_v55, %v2900_v54  ;;  %v2905_v5 = vor.u32 %v3421_v57, %v2902_v58  ;;  %v3431_v57 = vld [vmem:[%s3853_s30 + $0x18c] sm:$0xf0] }
  0x5d   : > { %1656 = vmatmul.bf16.gmra.mxu1 %v2793_v13  ;;  %v2881_v13 = vor.u32 %v3414_v6, %v2878_v7 }
  0x5e   : > { %1825 = vmatmul.bf16.gmra.mxu2 %v2797_v14 }
  0x5f   : > { %1994 = vmatmul.bf16.gmra.mxu3 %v2801_v15 }
  0x6c   : > { %1492 = vmatmul.bf16.gmra.mxu0 %v2805_v24  ;;  %v3419_v24 = vld [vmem:[%s3853_s30 + $0x12c] sm:$0xf0] }
  0x6d   : > { %1661 = vmatmul.bf16.gmra.mxu1 %v2809_v25 }
  0x6e   : > { %1830 = vmatmul.bf16.gmra.mxu2 %v2813_v26  ;;  %v3417_v26 = vld [vmem:[%s3853_s30 + $0x124] sm:$0xf] }
  0x6f   : > { %1999 = vmatmul.bf16.gmra.mxu3 %v2817_v27  ;;  %v2886_v27 = vld [vmem:[%s3853_s30 + $0x130] sm:$0xf0] }
  0x7c   : > { %1497 = vmatmul.bf16.gmra.mxu0 %v2821_v36  ;;  %v2885_v36 = vor.u32 %v3419_v24, %v2884_v23  ;;  %v2916_v24 = vld [vmem:[%s3853_s30 + $0x160] sm:$0xf] }
  0x7d   : > { %1666 = vmatmul.bf16.gmra.mxu1 %v2825_v37  ;;  %v2889_v37 = vor.u32 %v3417_v26, %v2886_v27  ;;  %v3425_v27 = vld [vmem:[%s3853_s30 + $0x164] sm:$0xf] }
  0x7e   : > { %1835 = vmatmul.bf16.gmra.mxu2 %v2829_v38 }
  0x7f   : > { %2004 = vmatmul.bf16.gmra.mxu3 %v2833_v39 }
  0x8c   : > { %1502 = vmatmul.bf16.gmra.mxu0 %v2837_v48 }
  0x8d   : > { %1671 = vmatmul.bf16.gmra.mxu1 %v2841_v49 }
  0x8e   : > { %1840 = vmatmul.bf16.gmra.mxu2 %v2845_v50 }
  0x8f   : > { %2009 = vmatmul.bf16.gmra.mxu3 %v2849_v51 }
  0x9c   : > { %1507 = vmatmul.bf16.gmra.mxu0 %v2853_v60  ;;  %v3424_v60 = vld [vmem:[%s3853_s30 + $0x154] sm:$0xf0] }
  0x9d   : > { %1676 = vmatmul.bf16.gmra.mxu1 %v2857_v61  ;;  %v3422_v61 = vld [vmem:[%s3853_s30 + $0x14c] sm:$0xf] }
  0x9e   : > { %1845 = vmatmul.bf16.gmra.mxu2 %v2861_v62  ;;  %v2910_v62 = vld [vmem:[%s3853_s30 + $0x158] sm:$0xf0] }
  0x9f   : > { %2014 = vmatmul.bf16.gmra.mxu3 %v2865_v63 }
  0xa9   : > { %v1473_v10 = vpop.f32.mrf.mxu0 }
  0xaa   : > { %v1642_v11 = vpop.f32.mrf.mxu1 }
  0xab   : > { %v1643_v14 = vadd.f32 %v1642_v11, %v1473_v10  ;;  %v2913_v10 = vor.u32 %v3422_v61, %v2910_v62  ;;  %v2940_v61 = vld [vmem:[%s3853_s30 + $0x188] sm:$0xf]  ;;  %v3432_v62 = vld [vmem:[%s3853_s30 + $0x194] sm:$0xf0] }
  0xac   : > { %1512 = vmatmul.bf16.gmra.mxu0 %v2869_v8 }
  0xad   : > { %1681 = vmatmul.bf16.gmra.mxu1 %v2873_v9  ;;  %v2909_v9 = vor.u32 %v3424_v60, %v2908_v59  ;;  %v3429_v59 = vld [vmem:[%s3853_s30 + $0x184] sm:$0xf]  ;;  %v2934_v60 = vld [vmem:[%s3853_s30 + $0x190] sm:$0xf0] }
  0xae   : > { %1850 = vmatmul.bf16.gmra.mxu2 %v2877_v12 }
  0xaf   : > { %2019 = vmatmul.bf16.gmra.mxu3 %v2881_v13 }
  0xb1   : > { %v1811_v15 = vpop.f32.mrf.mxu2  ;;  %v1475_v19 = vpop.f32.mrf.mxu0 }
  0xb2   : > { %v1980_v16 = vpop.f32.mrf.mxu3  ;;  %v1812_v17 = vadd.f32 %v1811_v15, %v1643_v14  ;;  %v1644_v20 = vpop.f32.mrf.mxu1 }
  0xb3   : > { %v1645_v33 = vadd.f32 %v1644_v20, %v1475_v19 }
  0xb4   : > { %v1981_v21 = vadd.f32 %v1980_v16, %v1812_v17 }
  0xb6   : > { %v2339_v25 = vmul.f32 %v3948_v18, %v1981_v21 }
  0xb8   : > { %v2407_v32 = vadd.f32 %v3953_v22, %v2339_v25  ;;  %v3427_v25 = vld [vmem:[%s3853_s30 + $0x16c] sm:$0xf0] }
  0xb9   : > { %v1813_v34 = vpop.f32.mrf.mxu2  ;;  %v1478_v39 = vpop.f32.mrf.mxu0 }
  0xba   : > { %v1982_v35 = vpop.f32.mrf.mxu3  ;;  %3567 = vtanh.f32 %v2407_v32  ;;  %v1814_v38 = vadd.f32 %v1813_v34, %v1645_v33  ;;  %v1647_v40 = vpop.f32.mrf.mxu1  ;;  %v2926_v32 = vld [vmem:[%s3853_s30 + $0x178] sm:$0xf0] }
  0xbb   : > { %v1648_v45 = vadd.f32 %v1647_v40, %v1478_v39  ;;  %v2921_v39 = vor.u32 %v3425_v27, %v2918_v28  ;;  %v3435_v27 = vld [vmem:[%s3853_s30 + $0x1ac] sm:$0xf0] }
  0xbc   : > { %v1983_v43 = vadd.f32 %v1982_v35, %v1814_v38  ;;  %1517 = vmatmul.bf16.gmra.mxu0 %v2885_v36  ;;  %v2917_v38 = vor.u32 %v3427_v25, %v2916_v24 }
  0xbd   : > { %1686 = vmatmul.bf16.gmra.mxu1 %v2889_v37 }
  0xbe   : > { %v2340_v44 = vmul.f32 %v3948_v18, %v1983_v43  ;;  %1855 = vmatmul.bf16.gmra.mxu2 %v2893_v41  ;;  %v2925_v43 = vor.u32 %v3428_v30, %v2924_v29  ;;  %v3433_v29 = vld [vmem:[%s3853_s30 + $0x1a4] sm:$0xf]  ;;  %v2950_v30 = vld [vmem:[%s3853_s30 + $0x1b0] sm:$0xf0] }
  0xbf   : > { %2024 = vmatmul.bf16.gmra.mxu3 %v2897_v42 }
  0xc0   : > { %v3568_v46 = vpop.eup %3567  ;;  %v2408_v47 = vadd.f32 %v3953_v22, %v2340_v44  ;;  %v2929_v44 = vor.u32 %v3426_v31, %v2926_v32  ;;  %v2956_v31 = vld [vmem:[%s3853_s30 + $0x1a8] sm:$0xf]  ;;  %v3436_v32 = vld [vmem:[%s3853_s30 + $0x1b4] sm:$0xf0] }
  0xc1   : > { %2535 = vst [vmem:[%s3969_s29] sm:$0xff] %v3568_v46  ;;  %v1816_v48 = vpop.f32.mrf.mxu2  ;;  %v1480_v51 = vpop.f32.mrf.mxu0 }
  0xc2   : > { %v1985_v49 = vpop.f32.mrf.mxu3  ;;  %3569 = vtanh.f32 %v2408_v47  ;;  %v1817_v50 = vadd.f32 %v1816_v48, %v1648_v45  ;;  %v1649_v52 = vpop.f32.mrf.mxu1 }
  0xc3   : > { %v1650_v1 = vadd.f32 %v1649_v52, %v1480_v51 }
  0xc4   : > { %v1986_v53 = vadd.f32 %v1985_v49, %v1817_v50 }
  0xc6   : > { %v2341_v56 = vmul.f32 %v3948_v18, %v1986_v53 }
  0xc8   : > { %v3570_v63 = vpop.eup %3569  ;;  %v2409_v0 = vadd.f32 %v3953_v22, %v2341_v56  ;;  %v2932_v56 = vld [vmem:[%s3853_s30 + $0x180] sm:$0xf] }
  0xc9   : > { %2536 = vst [vmem:[%s3969_s29 + $0x8] sm:$0xff] %v3570_v63  ;;  %v1818_v2 = vpop.f32.mrf.mxu2  ;;  %v1483_v7 = vpop.f32.mrf.mxu0  ;;  %v3430_v63 = vld [vmem:[%s3853_s30 + $0x18c] sm:$0xf] }
  0xca   : > { %v1987_v3 = vpop.f32.mrf.mxu3  ;;  %3571 = vtanh.f32 %v2409_v0  ;;  %v1819_v6 = vadd.f32 %v1818_v2, %v1650_v1  ;;  %v1652_v8 = vpop.f32.mrf.mxu1  ;;  %v2942_v0 = vld [vmem:[%s3853_s30 + $0x198] sm:$0xf0] }
  0xcb   : > { %v1653_v13 = vadd.f32 %v1652_v8, %v1483_v7  ;;  %v2937_v7 = vor.u32 %v3429_v59, %v2934_v60  ;;  %v3439_v59 = vld [vmem:[%s3853_s30 + $0x1cc] sm:$0xf0] }
  0xcc   : > { %v1988_v11 = vadd.f32 %v1987_v3, %v1819_v6  ;;  %1522 = vmatmul.bf16.gmra.mxu0 %v2901_v4  ;;  %v2933_v6 = vor.u32 %v3431_v57, %v2932_v56 }
  0xcd   : > { %1691 = vmatmul.bf16.gmra.mxu1 %v2905_v5 }
  0xce   : > { %v2342_v12 = vmul.f32 %v3948_v18, %v1988_v11  ;;  %1860 = vmatmul.bf16.gmra.mxu2 %v2909_v9  ;;  %v2941_v11 = vor.u32 %v3432_v62, %v2940_v61  ;;  %v3437_v61 = vld [vmem:[%s3853_s30 + $0x1c4] sm:$0xf]  ;;  %v2966_v62 = vld [vmem:[%s3853_s30 + $0x1d0] sm:$0xf0] }
  0xcf   : > { %2029 = vmatmul.bf16.gmra.mxu3 %v2913_v10 }
  0xd0   : > { %v3572_v14 = vpop.eup %3571  ;;  %v2410_v15 = vadd.f32 %v3953_v22, %v2342_v12  ;;  %v2945_v12 = vor.u32 %v3430_v63, %v2942_v0  ;;  %v2972_v63 = vld [vmem:[%s3853_s30 + $0x1c8] sm:$0xf]  ;;  %v3440_v0 = vld [vmem:[%s3853_s30 + $0x1d4] sm:$0xf0] }
  0xd1   : > { %2537 = vst [vmem:[%s3969_s29 + $0x10] sm:$0xff] %v3572_v14  ;;  %v1821_v16 = vpop.f32.mrf.mxu2  ;;  %v1485_v20 = vpop.f32.mrf.mxu0 }
  0xd2   : > { %v1990_v17 = vpop.f32.mrf.mxu3  ;;  %3573 = vtanh.f32 %v2410_v15  ;;  %v1822_v19 = vadd.f32 %v1821_v16, %v1653_v13  ;;  %v1654_v21 = vpop.f32.mrf.mxu1 }
  0xd3   : > { %v1655_v35 = vadd.f32 %v1654_v21, %v1485_v20 }
  0xd4   : > { %v1991_v23 = vadd.f32 %v1990_v17, %v1822_v19 }
  0xd6   : > { %v2343_v26 = vmul.f32 %v3948_v18, %v1991_v23 }
  0xd8   : > { %v3574_v33 = vpop.eup %3573  ;;  %v2411_v34 = vadd.f32 %v3953_v22, %v2343_v26  ;;  %v2948_v26 = vld [vmem:[%s3853_s30 + $0x1a0] sm:$0xf] }
  0xd9   : > { %2538 = vst [vmem:[%s3969_s29 + $0x18] sm:$0xff] %v3574_v33  ;;  %v1823_v36 = vpop.f32.mrf.mxu2  ;;  %v1488_v41 = vpop.f32.mrf.mxu0  ;;  %v3434_v33 = vld [vmem:[%s3853_s30 + $0x1ac] sm:$0xf] }
  0xda   : > { %v1992_v37 = vpop.f32.mrf.mxu3  ;;  %3575 = vtanh.f32 %v2411_v34  ;;  %v1824_v40 = vadd.f32 %v1823_v36, %v1655_v35  ;;  %v1657_v42 = vpop.f32.mrf.mxu1  ;;  %v2958_v34 = vld [vmem:[%s3853_s30 + $0x1b8] sm:$0xf0] }
  0xdb   : > { %v1658_v47 = vadd.f32 %v1657_v42, %v1488_v41  ;;  %v2953_v41 = vor.u32 %v3433_v29, %v2950_v30  ;;  %v3443_v29 = vld [vmem:[%s3853_s30 + $0x1ec] sm:$0xf0] }
  0xdc   : > { %v1993_v45 = vadd.f32 %v1992_v37, %v1824_v40  ;;  %1527 = vmatmul.bf16.gmra.mxu0 %v2917_v38  ;;  %v2949_v40 = vor.u32 %v3435_v27, %v2948_v26 }
  0xdd   : > { %1696 = vmatmul.bf16.gmra.mxu1 %v2921_v39 }
  0xde   : > { %v2344_v46 = vmul.f32 %v3948_v18, %v1993_v45  ;;  %1865 = vmatmul.bf16.gmra.mxu2 %v2925_v43  ;;  %v2957_v45 = vor.u32 %v3436_v32, %v2956_v31  ;;  %v3441_v31 = vld [vmem:[%s3853_s30 + $0x1e4] sm:$0xf]  ;;  %v2982_v32 = vld [vmem:[%s3853_s30 + $0x1f0] sm:$0xf0] }
  0xdf   : > { %2034 = vmatmul.bf16.gmra.mxu3 %v2929_v44 }
  0xe0   : > { %v3576_v48 = vpop.eup %3575  ;;  %v2412_v49 = vadd.f32 %v3953_v22, %v2344_v46  ;;  %v2961_v46 = vor.u32 %v3434_v33, %v2958_v34  ;;  %v2988_v33 = vld [vmem:[%s3853_s30 + $0x1e8] sm:$0xf]  ;;  %v3444_v34 = vld [vmem:[%s3853_s30 + $0x1f4] sm:$0xf0] }
  0xe1   : > { %2539 = vst [vmem:[%s3969_s29 + $0x20] sm:$0xff] %v3576_v48  ;;  %v1826_v50 = vpop.f32.mrf.mxu2  ;;  %v1490_v53 = vpop.f32.mrf.mxu0 }
  0xe2   : > { %v1995_v51 = vpop.f32.mrf.mxu3  ;;  %3577 = vtanh.f32 %v2412_v49  ;;  %v1827_v52 = vadd.f32 %v1826_v50, %v1658_v47  ;;  %v1659_v54 = vpop.f32.mrf.mxu1 }
  0xe3   : > { %v1660_v3 = vadd.f32 %v1659_v54, %v1490_v53 }
  0xe4   : > { %v1996_v55 = vadd.f32 %v1995_v51, %v1827_v52 }
  0xe6   : > { %v2345_v58 = vmul.f32 %v3948_v18, %v1996_v55 }
  0xe8   : > { %v3578_v1 = vpop.eup %3577  ;;  %v2413_v2 = vadd.f32 %v3953_v22, %v2345_v58  ;;  %v2964_v58 = vld [vmem:[%s3853_s30 + $0x1c0] sm:$0xf] }
  0xe9   : > { %2540 = vst [vmem:[%s3969_s29 + $0x28] sm:$0xff] %v3578_v1  ;;  %v1828_v4 = vpop.f32.mrf.mxu2  ;;  %v1493_v9 = vpop.f32.mrf.mxu0  ;;  %v3438_v1 = vld [vmem:[%s3853_s30 + $0x1cc] sm:$0xf] }
  0xea   : > { %v1997_v5 = vpop.f32.mrf.mxu3  ;;  %3579 = vtanh.f32 %v2413_v2  ;;  %v1829_v8 = vadd.f32 %v1828_v4, %v1660_v3  ;;  %v1662_v10 = vpop.f32.mrf.mxu1  ;;  %v2974_v2 = vld [vmem:[%s3853_s30 + $0x1d8] sm:$0xf0] }
  0xeb   : > { %v1663_v15 = vadd.f32 %v1662_v10, %v1493_v9  ;;  %v2969_v9 = vor.u32 %v3437_v61, %v2966_v62  ;;  %v3447_v61 = vld [vmem:[%s3853_s30 + $0x20c] sm:$0xf0] }
  0xec   : > { %v1998_v13 = vadd.f32 %v1997_v5, %v1829_v8  ;;  %1532 = vmatmul.bf16.gmra.mxu0 %v2933_v6  ;;  %v2965_v8 = vor.u32 %v3439_v59, %v2964_v58 }
  0xed   : > { %1701 = vmatmul.bf16.gmra.mxu1 %v2937_v7 }
  0xee   : > { %v2346_v14 = vmul.f32 %v3948_v18, %v1998_v13  ;;  %1870 = vmatmul.bf16.gmra.mxu2 %v2941_v11  ;;  %v2973_v13 = vor.u32 %v3440_v0, %v2972_v63  ;;  %v3445_v63 = vld [vmem:[%s3853_s30 + $0x204] sm:$0xf]  ;;  %v2998_v0 = vld [vmem:[%s3853_s30 + $0x210] sm:$0xf0] }
  0xef   : > { %2039 = vmatmul.bf16.gmra.mxu3 %v2945_v12 }
  0xf0   : > { %v3580_v16 = vpop.eup %3579  ;;  %v2414_v17 = vadd.f32 %v3953_v22, %v2346_v14  ;;  %v2977_v14 = vor.u32 %v3438_v1, %v2974_v2  ;;  %v3004_v1 = vld [vmem:[%s3853_s30 + $0x208] sm:$0xf]  ;;  %v3448_v2 = vld [vmem:[%s3853_s30 + $0x214] sm:$0xf0] }
  0xf1   : > { %2541 = vst [vmem:[%s3969_s29 + $0x30] sm:$0xff] %v3580_v16  ;;  %v1831_v19 = vpop.f32.mrf.mxu2  ;;  %v1495_v23 = vpop.f32.mrf.mxu0 }
  0xf2   : > { %v2000_v20 = vpop.f32.mrf.mxu3  ;;  %3581 = vtanh.f32 %v2414_v17  ;;  %v1832_v21 = vadd.f32 %v1831_v19, %v1663_v15  ;;  %v1664_v24 = vpop.f32.mrf.mxu1 }
  0xf3   : > { %v1665_v37 = vadd.f32 %v1664_v24, %v1495_v23 }
  0xf4   : > { %v2001_v25 = vadd.f32 %v2000_v20, %v1832_v21 }
  0xf6   : > { %v2347_v28 = vmul.f32 %v3948_v18, %v2001_v25 }
  0xf8   : > { %v3582_v35 = vpop.eup %3581  ;;  %v2415_v36 = vadd.f32 %v3953_v22, %v2347_v28  ;;  %v2980_v28 = vld [vmem:[%s3853_s30 + $0x1e0] sm:$0xf] }
  0xf9   : > { %2542 = vst [vmem:[%s3969_s29 + $0x38] sm:$0xff] %v3582_v35  ;;  %v1833_v38 = vpop.f32.mrf.mxu2  ;;  %v1498_v43 = vpop.f32.mrf.mxu0  ;;  %v3442_v35 = vld [vmem:[%s3853_s30 + $0x1ec] sm:$0xf] }
  0xfa   : > { %v2002_v39 = vpop.f32.mrf.mxu3  ;;  %3583 = vtanh.f32 %v2415_v36  ;;  %v1834_v42 = vadd.f32 %v1833_v38, %v1665_v37  ;;  %v1667_v44 = vpop.f32.mrf.mxu1  ;;  %v2990_v36 = vld [vmem:[%s3853_s30 + $0x1f8] sm:$0xf0] }
  0xfb   : > { %v1668_v49 = vadd.f32 %v1667_v44, %v1498_v43  ;;  %v2985_v43 = vor.u32 %v3441_v31, %v2982_v32  ;;  %v3451_v31 = vld [vmem:[%s3853_s30 + $0x22c] sm:$0xf0] }
  0xfc   : > { %v2003_v47 = vadd.f32 %v2002_v39, %v1834_v42  ;;  %1537 = vmatmul.bf16.gmra.mxu0 %v2949_v40  ;;  %v2981_v42 = vor.u32 %v3443_v29, %v2980_v28 }
  0xfd   : > { %1706 = vmatmul.bf16.gmra.mxu1 %v2953_v41 }
  0xfe   : > { %v2348_v48 = vmul.f32 %v3948_v18, %v2003_v47  ;;  %1875 = vmatmul.bf16.gmra.mxu2 %v2957_v45  ;;  %v2989_v47 = vor.u32 %v3444_v34, %v2988_v33  ;;  %v3449_v33 = vld [vmem:[%s3853_s30 + $0x224] sm:$0xf]  ;;  %v3014_v34 = vld [vmem:[%s3853_s30 + $0x230] sm:$0xf0] }
  0xff   : > { %2044 = vmatmul.bf16.gmra.mxu3 %v2961_v46 }
 0x100   : > { %v3584_v50 = vpop.eup %3583  ;;  %v2416_v51 = vadd.f32 %v3953_v22, %v2348_v48  ;;  %v2993_v48 = vor.u32 %v3442_v35, %v2990_v36  ;;  %v3020_v35 = vld [vmem:[%s3853_s30 + $0x228] sm:$0xf]  ;;  %v3452_v36 = vld [vmem:[%s3853_s30 + $0x234] sm:$0xf0] }
 0x101   : > { %2543 = vst [vmem:[%s3969_s29 + $0x40] sm:$0xff] %v3584_v50  ;;  %v1836_v52 = vpop.f32.mrf.mxu2  ;;  %v1500_v55 = vpop.f32.mrf.mxu0 }
 0x102   : > { %v2005_v53 = vpop.f32.mrf.mxu3  ;;  %3585 = vtanh.f32 %v2416_v51  ;;  %v1837_v54 = vadd.f32 %v1836_v52, %v1668_v49  ;;  %v1669_v56 = vpop.f32.mrf.mxu1 }
 0x103   : > { %v1670_v5 = vadd.f32 %v1669_v56, %v1500_v55 }
 0x104   : > { %v2006_v57 = vadd.f32 %v2005_v53, %v1837_v54 }
 0x106   : > { %v2349_v60 = vmul.f32 %v3948_v18, %v2006_v57 }
 0x108   : > { %v3586_v3 = vpop.eup %3585  ;;  %v2417_v4 = vadd.f32 %v3953_v22, %v2349_v60  ;;  %v2996_v60 = vld [vmem:[%s3853_s30 + $0x200] sm:$0xf] }
 0x109   : > { %2544 = vst [vmem:[%s3969_s29 + $0x48] sm:$0xff] %v3586_v3  ;;  %v1838_v6 = vpop.f32.mrf.mxu2  ;;  %v1503_v11 = vpop.f32.mrf.mxu0  ;;  %v3446_v3 = vld [vmem:[%s3853_s30 + $0x20c] sm:$0xf] }
 0x10a   : > { %v2007_v7 = vpop.f32.mrf.mxu3  ;;  %3587 = vtanh.f32 %v2417_v4  ;;  %v1839_v10 = vadd.f32 %v1838_v6, %v1670_v5  ;;  %v1672_v12 = vpop.f32.mrf.mxu1  ;;  %v3006_v4 = vld [vmem:[%s3853_s30 + $0x218] sm:$0xf0] }
 0x10b   : > { %v1673_v17 = vadd.f32 %v1672_v12, %v1503_v11  ;;  %v3001_v11 = vor.u32 %v3445_v63, %v2998_v0  ;;  %v3455_v63 = vld [vmem:[%s3853_s30 + $0x24c] sm:$0xf0] }
 0x10c   : > { %v2008_v15 = vadd.f32 %v2007_v7, %v1839_v10  ;;  %1542 = vmatmul.bf16.gmra.mxu0 %v2965_v8  ;;  %v2997_v10 = vor.u32 %v3447_v61, %v2996_v60 }
 0x10d   : > { %1711 = vmatmul.bf16.gmra.mxu1 %v2969_v9 }
 0x10e   : > { %v2350_v16 = vmul.f32 %v3948_v18, %v2008_v15  ;;  %1880 = vmatmul.bf16.gmra.mxu2 %v2973_v13  ;;  %v3005_v15 = vor.u32 %v3448_v2, %v3004_v1  ;;  %v3453_v1 = vld [vmem:[%s3853_s30 + $0x244] sm:$0xf]  ;;  %v3030_v2 = vld [vmem:[%s3853_s30 + $0x250] sm:$0xf0] }
 0x10f   : > { %2049 = vmatmul.bf16.gmra.mxu3 %v2977_v14 }
 0x110   : > { %v3588_v19 = vpop.eup %3587  ;;  %v2418_v20 = vadd.f32 %v3953_v22, %v2350_v16  ;;  %v3009_v16 = vor.u32 %v3446_v3, %v3006_v4  ;;  %v3036_v3 = vld [vmem:[%s3853_s30 + $0x248] sm:$0xf]  ;;  %v3456_v4 = vld [vmem:[%s3853_s30 + $0x254] sm:$0xf0] }
 0x111   : > { %2545 = vst [vmem:[%s3969_s29 + $0x50] sm:$0xff] %v3588_v19  ;;  %v1841_v21 = vpop.f32.mrf.mxu2  ;;  %v1505_v25 = vpop.f32.mrf.mxu0 }
 0x112   : > { %v2010_v23 = vpop.f32.mrf.mxu3  ;;  %3589 = vtanh.f32 %v2418_v20  ;;  %v1842_v24 = vadd.f32 %v1841_v21, %v1673_v17  ;;  %v1674_v26 = vpop.f32.mrf.mxu1 }
 0x113   : > { %v1675_v39 = vadd.f32 %v1674_v26, %v1505_v25 }
 0x114   : > { %v2011_v27 = vadd.f32 %v2010_v23, %v1842_v24 }
 0x116   : > { %v2351_v30 = vmul.f32 %v3948_v18, %v2011_v27 }
 0x118   : > { %v3590_v37 = vpop.eup %3589  ;;  %v2419_v38 = vadd.f32 %v3953_v22, %v2351_v30  ;;  %v3012_v30 = vld [vmem:[%s3853_s30 + $0x220] sm:$0xf] }
 0x119   : > { %2546 = vst [vmem:[%s3969_s29 + $0x58] sm:$0xff] %v3590_v37  ;;  %v1843_v40 = vpop.f32.mrf.mxu2  ;;  %v1508_v45 = vpop.f32.mrf.mxu0  ;;  %v3450_v37 = vld [vmem:[%s3853_s30 + $0x22c] sm:$0xf] }
 0x11a   : > { %v2012_v41 = vpop.f32.mrf.mxu3  ;;  %3591 = vtanh.f32 %v2419_v38  ;;  %v1844_v44 = vadd.f32 %v1843_v40, %v1675_v39  ;;  %v1677_v46 = vpop.f32.mrf.mxu1  ;;  %v3022_v38 = vld [vmem:[%s3853_s30 + $0x238] sm:$0xf0] }
 0x11b   : > { %v1678_v51 = vadd.f32 %v1677_v46, %v1508_v45  ;;  %v3017_v45 = vor.u32 %v3449_v33, %v3014_v34  ;;  %v3459_v33 = vld [vmem:[%s3853_s30 + $0x26c] sm:$0xf0] }
 0x11c   : > { %v2013_v49 = vadd.f32 %v2012_v41, %v1844_v44  ;;  %1547 = vmatmul.bf16.gmra.mxu0 %v2981_v42  ;;  %v3013_v44 = vor.u32 %v3451_v31, %v3012_v30 }
 0x11d   : > { %1716 = vmatmul.bf16.gmra.mxu1 %v2985_v43 }
 0x11e   : > { %v2352_v50 = vmul.f32 %v3948_v18, %v2013_v49  ;;  %1885 = vmatmul.bf16.gmra.mxu2 %v2989_v47  ;;  %v3021_v49 = vor.u32 %v3452_v36, %v3020_v35  ;;  %v3457_v35 = vld [vmem:[%s3853_s30 + $0x264] sm:$0xf]  ;;  %v3046_v36 = vld [vmem:[%s3853_s30 + $0x270] sm:$0xf0] }
 0x11f   : > { %2054 = vmatmul.bf16.gmra.mxu3 %v2993_v48 }
 0x120   : > { %v3592_v52 = vpop.eup %3591  ;;  %v2420_v53 = vadd.f32 %v3953_v22, %v2352_v50  ;;  %v3025_v50 = vor.u32 %v3450_v37, %v3022_v38  ;;  %v3052_v37 = vld [vmem:[%s3853_s30 + $0x268] sm:$0xf]  ;;  %v3460_v38 = vld [vmem:[%s3853_s30 + $0x274] sm:$0xf0] }
 0x121   : > { %2547 = vst [vmem:[%s3969_s29 + $0x60] sm:$0xff] %v3592_v52  ;;  %v1846_v54 = vpop.f32.mrf.mxu2  ;;  %v1510_v57 = vpop.f32.mrf.mxu0 }
 0x122   : > { %v2015_v55 = vpop.f32.mrf.mxu3  ;;  %3593 = vtanh.f32 %v2420_v53  ;;  %v1847_v56 = vadd.f32 %v1846_v54, %v1678_v51  ;;  %v1679_v58 = vpop.f32.mrf.mxu1 }
 0x123   : > { %v1680_v7 = vadd.f32 %v1679_v58, %v1510_v57 }
 0x124   : > { %v2016_v59 = vadd.f32 %v2015_v55, %v1847_v56 }
 0x126   : > { %v2353_v62 = vmul.f32 %v3948_v18, %v2016_v59 }
 0x128   : > { %v3594_v5 = vpop.eup %3593  ;;  %v2421_v6 = vadd.f32 %v3953_v22, %v2353_v62  ;;  %v3028_v62 = vld [vmem:[%s3853_s30 + $0x240] sm:$0xf] }
 0x129   : > { %2548 = vst [vmem:[%s3969_s29 + $0x68] sm:$0xff] %v3594_v5  ;;  %v1848_v8 = vpop.f32.mrf.mxu2  ;;  %v1513_v13 = vpop.f32.mrf.mxu0  ;;  %v3454_v5 = vld [vmem:[%s3853_s30 + $0x24c] sm:$0xf] }
 0x12a   : > { %v2017_v9 = vpop.f32.mrf.mxu3  ;;  %3595 = vtanh.f32 %v2421_v6  ;;  %v1849_v12 = vadd.f32 %v1848_v8, %v1680_v7  ;;  %v1682_v14 = vpop.f32.mrf.mxu1  ;;  %v3038_v6 = vld [vmem:[%s3853_s30 + $0x258] sm:$0xf0] }
 0x12b   : > { %v1683_v20 = vadd.f32 %v1682_v14, %v1513_v13  ;;  %v3033_v13 = vor.u32 %v3453_v1, %v3030_v2  ;;  %v3463_v1 = vld [vmem:[%s3853_s30 + $0x28c] sm:$0xf0] }
 0x12c   : > { %v2018_v17 = vadd.f32 %v2017_v9, %v1849_v12  ;;  %1552 = vmatmul.bf16.gmra.mxu0 %v2997_v10  ;;  %v3029_v12 = vor.u32 %v3455_v63, %v3028_v62 }
 0x12d   : > { %1721 = vmatmul.bf16.gmra.mxu1 %v3001_v11 }
 0x12e   : > { %v2354_v19 = vmul.f32 %v3948_v18, %v2018_v17  ;;  %1890 = vmatmul.bf16.gmra.mxu2 %v3005_v15  ;;  %v3037_v17 = vor.u32 %v3456_v4, %v3036_v3  ;;  %v3461_v3 = vld [vmem:[%s3853_s30 + $0x284] sm:$0xf]  ;;  %v3062_v4 = vld [vmem:[%s3853_s30 + $0x290] sm:$0xf0] }
 0x12f   : > { %2059 = vmatmul.bf16.gmra.mxu3 %v3009_v16 }
 0x130   : > { %v3596_v21 = vpop.eup %3595  ;;  %v2422_v23 = vadd.f32 %v3953_v22, %v2354_v19  ;;  %v3041_v19 = vor.u32 %v3454_v5, %v3038_v6  ;;  %v3068_v5 = vld [vmem:[%s3853_s30 + $0x288] sm:$0xf]  ;;  %v3464_v6 = vld [vmem:[%s3853_s30 + $0x294] sm:$0xf0] }
 0x131   : > { %2549 = vst [vmem:[%s3969_s29 + $0x70] sm:$0xff] %v3596_v21  ;;  %v1851_v24 = vpop.f32.mrf.mxu2  ;;  %v1515_v27 = vpop.f32.mrf.mxu0 }
 0x132   : > { %v2020_v25 = vpop.f32.mrf.mxu3  ;;  %3597 = vtanh.f32 %v2422_v23  ;;  %v1852_v26 = vadd.f32 %v1851_v24, %v1683_v20  ;;  %v1684_v28 = vpop.f32.mrf.mxu1 }
 0x133   : > { %v1685_v41 = vadd.f32 %v1684_v28, %v1515_v27 }
 0x134   : > { %v2021_v29 = vadd.f32 %v2020_v25, %v1852_v26 }
 0x136   : > { %v2355_v32 = vmul.f32 %v3948_v18, %v2021_v29 }
 0x138   : > { %v3598_v39 = vpop.eup %3597  ;;  %v2423_v40 = vadd.f32 %v3953_v22, %v2355_v32  ;;  %v3044_v32 = vld [vmem:[%s3853_s30 + $0x260] sm:$0xf] }
 0x139   : > { %2550 = vst [vmem:[%s3969_s29 + $0x78] sm:$0xff] %v3598_v39  ;;  %v1853_v42 = vpop.f32.mrf.mxu2  ;;  %v1518_v47 = vpop.f32.mrf.mxu0  ;;  %v3458_v39 = vld [vmem:[%s3853_s30 + $0x26c] sm:$0xf] }
 0x13a   : > { %v2022_v43 = vpop.f32.mrf.mxu3  ;;  %3599 = vtanh.f32 %v2423_v40  ;;  %v1854_v46 = vadd.f32 %v1853_v42, %v1685_v41  ;;  %v1687_v48 = vpop.f32.mrf.mxu1  ;;  %v3054_v40 = vld [vmem:[%s3853_s30 + $0x278] sm:$0xf0] }
 0x13b   : > { %v1688_v53 = vadd.f32 %v1687_v48, %v1518_v47  ;;  %v3049_v47 = vor.u32 %v3457_v35, %v3046_v36  ;;  %v3467_v35 = vld [vmem:[%s3853_s30 + $0x2ac] sm:$0xf0] }
 0x13c   : > { %v2023_v51 = vadd.f32 %v2022_v43, %v1854_v46  ;;  %1557 = vmatmul.bf16.gmra.mxu0 %v3013_v44  ;;  %v3045_v46 = vor.u32 %v3459_v33, %v3044_v32 }
 0x13d   : > { %1726 = vmatmul.bf16.gmra.mxu1 %v3017_v45 }
 0x13e   : > { %v2356_v52 = vmul.f32 %v3948_v18, %v2023_v51  ;;  %1895 = vmatmul.bf16.gmra.mxu2 %v3021_v49  ;;  %v3053_v51 = vor.u32 %v3460_v38, %v3052_v37  ;;  %v3465_v37 = vld [vmem:[%s3853_s30 + $0x2a4] sm:$0xf]  ;;  %v3078_v38 = vld [vmem:[%s3853_s30 + $0x2b0] sm:$0xf0] }
 0x13f   : > { %2064 = vmatmul.bf16.gmra.mxu3 %v3025_v50 }
 0x140   : > { %v3600_v54 = vpop.eup %3599  ;;  %v2424_v55 = vadd.f32 %v3953_v22, %v2356_v52  ;;  %v3057_v52 = vor.u32 %v3458_v39, %v3054_v40  ;;  %v3084_v39 = vld [vmem:[%s3853_s30 + $0x2a8] sm:$0xf]  ;;  %v3468_v40 = vld [vmem:[%s3853_s30 + $0x2b4] sm:$0xf0] }
 0x141   : > { %2551 = vst [vmem:[%s3969_s29 + $0x80] sm:$0xff] %v3600_v54  ;;  %v1856_v56 = vpop.f32.mrf.mxu2  ;;  %v1520_v59 = vpop.f32.mrf.mxu0 }
 0x142   : > { %v2025_v57 = vpop.f32.mrf.mxu3  ;;  %3601 = vtanh.f32 %v2424_v55  ;;  %v1857_v58 = vadd.f32 %v1856_v56, %v1688_v53  ;;  %v1689_v60 = vpop.f32.mrf.mxu1 }
 0x143   : > { %v1690_v9 = vadd.f32 %v1689_v60, %v1520_v59 }
 0x144   : > { %v2026_v61 = vadd.f32 %v2025_v57, %v1857_v58 }
 0x146   : > { %v2357_v0 = vmul.f32 %v3948_v18, %v2026_v61 }
 0x148   : > { %v3602_v7 = vpop.eup %3601  ;;  %v2425_v8 = vadd.f32 %v3953_v22, %v2357_v0  ;;  %v3060_v0 = vld [vmem:[%s3853_s30 + $0x280] sm:$0xf] }
 0x149   : > { %2552 = vst [vmem:[%s3969_s29 + $0x88] sm:$0xff] %v3602_v7  ;;  %v1858_v10 = vpop.f32.mrf.mxu2  ;;  %v1523_v15 = vpop.f32.mrf.mxu0  ;;  %v3462_v7 = vld [vmem:[%s3853_s30 + $0x28c] sm:$0xf] }
 0x14a   : > { %v2027_v11 = vpop.f32.mrf.mxu3  ;;  %3603 = vtanh.f32 %v2425_v8  ;;  %v1859_v14 = vadd.f32 %v1858_v10, %v1690_v9  ;;  %v1692_v16 = vpop.f32.mrf.mxu1  ;;  %v3070_v8 = vld [vmem:[%s3853_s30 + $0x298] sm:$0xf0] }
 0x14b   : > { %v1693_v23 = vadd.f32 %v1692_v16, %v1523_v15  ;;  %v3065_v15 = vor.u32 %v3461_v3, %v3062_v4  ;;  %v4152_v3 = vld [vmem:[%s4368_s2] ss:$0 sm:$0xff] }
 0x14c   : > { %v2028_v20 = vadd.f32 %v2027_v11, %v1859_v14  ;;  %1562 = vmatmul.bf16.gmra.mxu0 %v3029_v12  ;;  %v3061_v14 = vor.u32 %v3463_v1, %v3060_v0  ;;  %v3092_v1 = vld [vmem:[%s3853_s30 + $0x2c0] sm:$0xf] }
 0x14d   : > { %1731 = vmatmul.bf16.gmra.mxu1 %v3033_v13 }
 0x14e   : > { %v2358_v21 = vmul.f32 %v3948_v18, %v2028_v20  ;;  %1900 = vmatmul.bf16.gmra.mxu2 %v3037_v17  ;;  %v3069_v20 = vor.u32 %v3464_v6, %v3068_v5  ;;  %v3469_v5 = vld [vmem:[%s3853_s30 + $0x2c4] sm:$0xf]  ;;  %v3094_v6 = vld [vmem:[%s3853_s30 + $0x2d0] sm:$0xf0] }
 0x14f   : > { %2069 = vmatmul.bf16.gmra.mxu3 %v3041_v19 }
 0x150   : > { %v3604_v24 = vpop.eup %3603  ;;  %v2426_v25 = vadd.f32 %v3953_v22, %v2358_v21  ;;  %v3073_v21 = vor.u32 %v3462_v7, %v3070_v8  ;;  %v3100_v7 = vld [vmem:[%s3853_s30 + $0x2c8] sm:$0xf]  ;;  %v3472_v8 = vld [vmem:[%s3853_s30 + $0x2d4] sm:$0xf0] }
 0x151   : > { %2553 = vst [vmem:[%s3969_s29 + $0x90] sm:$0xff] %v3604_v24  ;;  %v1861_v26 = vpop.f32.mrf.mxu2  ;;  %v1525_v29 = vpop.f32.mrf.mxu0 }
 0x152   : > { %v2030_v27 = vpop.f32.mrf.mxu3  ;;  %3605 = vtanh.f32 %v2426_v25  ;;  %v1862_v28 = vadd.f32 %v1861_v26, %v1693_v23  ;;  %v1694_v30 = vpop.f32.mrf.mxu1 }
 0x153   : > { %v1695_v43 = vadd.f32 %v1694_v30, %v1525_v29 }
 0x154   : > { %v2031_v31 = vadd.f32 %v2030_v27, %v1862_v28 }
 0x156   : > { %v2359_v34 = vmul.f32 %v3948_v18, %v2031_v31 }
 0x158   : > { %v3606_v41 = vpop.eup %3605  ;;  %v2427_v42 = vadd.f32 %v3953_v22, %v2359_v34  ;;  %v3076_v34 = vld [vmem:[%s3853_s30 + $0x2a0] sm:$0xf] }
 0x159   : > { %2554 = vst [vmem:[%s3969_s29 + $0x98] sm:$0xff] %v3606_v41  ;;  %v1863_v44 = vpop.f32.mrf.mxu2  ;;  %v1528_v49 = vpop.f32.mrf.mxu0  ;;  %v3466_v41 = vld [vmem:[%s3853_s30 + $0x2ac] sm:$0xf] }
 0x15a   : > { %v2032_v45 = vpop.f32.mrf.mxu3  ;;  %3607 = vtanh.f32 %v2427_v42  ;;  %v1864_v48 = vadd.f32 %v1863_v44, %v1695_v43  ;;  %v1697_v50 = vpop.f32.mrf.mxu1  ;;  %v3086_v42 = vld [vmem:[%s3853_s30 + $0x2b8] sm:$0xf0] }
 0x15b   : > { %v1698_v55 = vadd.f32 %v1697_v50, %v1528_v49  ;;  %v3081_v49 = vor.u32 %v3465_v37, %v3078_v38  ;;  %v3475_v37 = vld [vmem:[%s3853_s30 + $0x2ec] sm:$0xf0] }
 0x15c   : > { %v2033_v53 = vadd.f32 %v2032_v45, %v1864_v48  ;;  %1567 = vmatmul.bf16.gmra.mxu0 %v3045_v46  ;;  %v3077_v48 = vor.u32 %v3467_v35, %v3076_v34 }
 0x15d   : > { %1736 = vmatmul.bf16.gmra.mxu1 %v3049_v47 }
 0x15e   : > { %v2360_v54 = vmul.f32 %v3948_v18, %v2033_v53  ;;  %1905 = vmatmul.bf16.gmra.mxu2 %v3053_v51  ;;  %v3085_v53 = vor.u32 %v3468_v40, %v3084_v39  ;;  %v3473_v39 = vld [vmem:[%s3853_s30 + $0x2e4] sm:$0xf]  ;;  %v3110_v40 = vld [vmem:[%s3853_s30 + $0x2f0] sm:$0xf0] }
 0x15f   : > { %2074 = vmatmul.bf16.gmra.mxu3 %v3057_v52 }
 0x160   : > { %v3608_v56 = vpop.eup %3607  ;;  %v2428_v57 = vadd.f32 %v3953_v22, %v2360_v54  ;;  %v3089_v54 = vor.u32 %v3466_v41, %v3086_v42  ;;  %v3116_v41 = vld [vmem:[%s3853_s30 + $0x2e8] sm:$0xf]  ;;  %v3476_v42 = vld [vmem:[%s3853_s30 + $0x2f4] sm:$0xf0] }
 0x161   : > { %2555 = vst [vmem:[%s3969_s29 + $0xa0] sm:$0xff] %v3608_v56  ;;  %v1866_v58 = vpop.f32.mrf.mxu2  ;;  %v1530_v61 = vpop.f32.mrf.mxu0 }
 0x162   : > { %v2035_v59 = vpop.f32.mrf.mxu3  ;;  %3609 = vtanh.f32 %v2428_v57  ;;  %v1867_v60 = vadd.f32 %v1866_v58, %v1698_v55  ;;  %v1699_v62 = vpop.f32.mrf.mxu1  ;;  %v4143_v58 = vld [vmem:[%s4369_s3] ss:$0 sm:$0xff] }
 0x163   : > { %v1700_v11 = vadd.f32 %v1699_v62, %v1530_v61 }
 0x164   : > { %v2036_v63 = vadd.f32 %v2035_v59, %v1867_v60 }
 0x166   : > { %v2361_v2 = vmul.f32 %v3948_v18, %v2036_v63 }
 0x168   : > { %v3610_v9 = vpop.eup %3609  ;;  %v2429_v10 = vadd.f32 %v3953_v22, %v2361_v2  ;;  %v3471_v2 = vld [vmem:[%s3853_s30 + $0x2cc] sm:$0xf0] }
 0x169   : > { %2556 = vst [vmem:[%s3969_s29 + $0xa8] sm:$0xff] %v3610_v9  ;;  %v1868_v12 = vpop.f32.mrf.mxu2  ;;  %v1533_v17 = vpop.f32.mrf.mxu0  ;;  %v3470_v9 = vld [vmem:[%s3853_s30 + $0x2cc] sm:$0xf] }
 0x16a   : > { %v2037_v13 = vpop.f32.mrf.mxu3  ;;  %3611 = vtanh.f32 %v2429_v10  ;;  %v1869_v16 = vadd.f32 %v1868_v12, %v1700_v11  ;;  %v1702_v19 = vpop.f32.mrf.mxu1  ;;  %v3102_v10 = vld [vmem:[%s3853_s30 + $0x2d8] sm:$0xf0] }
 0x16b   : > { %v1703_v25 = vadd.f32 %v1702_v19, %v1533_v17  ;;  %v3097_v17 = vor.u32 %v3469_v5, %v3094_v6  ;;  %v3479_v5 = vld [vmem:[%s3853_s30 + $0x30c] sm:$0xf0] }
 0x16c   : > { %v2038_v23 = vadd.f32 %v2037_v13, %v1869_v16  ;;  %1572 = vmatmul.bf16.gmra.mxu0 %v3061_v14  ;;  %v3093_v16 = vor.u32 %v3471_v2, %v3092_v1 }
 0x16d   : > { %1741 = vmatmul.bf16.gmra.mxu1 %v3065_v15 }
 0x16e   : > { %v2362_v24 = vmul.f32 %v3948_v18, %v2038_v23  ;;  %1910 = vmatmul.bf16.gmra.mxu2 %v3069_v20  ;;  %v3101_v23 = vor.u32 %v3472_v8, %v3100_v7  ;;  %v3477_v7 = vld [vmem:[%s3853_s30 + $0x304] sm:$0xf]  ;;  %v3126_v8 = vld [vmem:[%s3853_s30 + $0x310] sm:$0xf0] }
 0x16f   : > { %2079 = vmatmul.bf16.gmra.mxu3 %v3073_v21 }
 0x170   : > { %v3612_v26 = vpop.eup %3611  ;;  %v2430_v27 = vadd.f32 %v3953_v22, %v2362_v24  ;;  %v3105_v24 = vor.u32 %v3470_v9, %v3102_v10  ;;  %v3132_v9 = vld [vmem:[%s3853_s30 + $0x308] sm:$0xf]  ;;  %v3480_v10 = vld [vmem:[%s3853_s30 + $0x314] sm:$0xf0] }
 0x171   : > { %2557 = vst [vmem:[%s3969_s29 + $0xb0] sm:$0xff] %v3612_v26  ;;  %v1871_v28 = vpop.f32.mrf.mxu2  ;;  %v1535_v31 = vpop.f32.mrf.mxu0 }
 0x172   : > { %v2040_v29 = vpop.f32.mrf.mxu3  ;;  %3613 = vtanh.f32 %v2430_v27  ;;  %v1872_v30 = vadd.f32 %v1871_v28, %v1703_v25  ;;  %v1704_v32 = vpop.f32.mrf.mxu1 }
 0x173   : > { %v1705_v45 = vadd.f32 %v1704_v32, %v1535_v31 }
 0x174   : > { %v2041_v33 = vadd.f32 %v2040_v29, %v1872_v30 }
 0x176   : > { %v2363_v36 = vmul.f32 %v3948_v18, %v2041_v33 }
 0x178   : > { %v3614_v43 = vpop.eup %3613  ;;  %v2431_v44 = vadd.f32 %v3953_v22, %v2363_v36  ;;  %v3108_v36 = vld [vmem:[%s3853_s30 + $0x2e0] sm:$0xf] }
 0x179   : > { %2558 = vst [vmem:[%s3969_s29 + $0xb8] sm:$0xff] %v3614_v43  ;;  %v1873_v46 = vpop.f32.mrf.mxu2  ;;  %v1538_v51 = vpop.f32.mrf.mxu0  ;;  %v3474_v43 = vld [vmem:[%s3853_s30 + $0x2ec] sm:$0xf] }
 0x17a   : > { %v2042_v47 = vpop.f32.mrf.mxu3  ;;  %3615 = vtanh.f32 %v2431_v44  ;;  %v1874_v50 = vadd.f32 %v1873_v46, %v1705_v45  ;;  %v1707_v52 = vpop.f32.mrf.mxu1  ;;  %v3118_v44 = vld [vmem:[%s3853_s30 + $0x2f8] sm:$0xf0] }
 0x17b   : > { %v1708_v22 = vadd.f32 %v1707_v52, %v1538_v51  ;;  %v3113_v51 = vor.u32 %v3473_v39, %v3110_v40  ;;  %v3483_v39 = vld [vmem:[%s3853_s30 + $0x32c] sm:$0xf0] }
 0x17c   : > { %v2043_v55 = vadd.f32 %v2042_v47, %v1874_v50  ;;  %1577 = vmatmul.bf16.gmra.mxu0 %v3077_v48  ;;  %v3109_v50 = vor.u32 %v3475_v37, %v3108_v36 }
 0x17d   : > { %1746 = vmatmul.bf16.gmra.mxu1 %v3081_v49 }
 0x17e   : > { %v2364_v56 = vmul.f32 %v3948_v18, %v2043_v55  ;;  %1915 = vmatmul.bf16.gmra.mxu2 %v3085_v53  ;;  %v3117_v55 = vor.u32 %v3476_v42, %v3116_v41  ;;  %v3481_v41 = vld [vmem:[%s3853_s30 + $0x324] sm:$0xf]  ;;  %v3142_v42 = vld [vmem:[%s3853_s30 + $0x330] sm:$0xf0] }
 0x17f   : > { %2084 = vmatmul.bf16.gmra.mxu3 %v3089_v54 }
 0x180   : > { %v3616_v57 = vpop.eup %3615  ;;  %v2432_v59 = vadd.f32 %v4143_v58, %v2364_v56  ;;  %v3121_v56 = vor.u32 %v3474_v43, %v3118_v44  ;;  %v3148_v43 = vld [vmem:[%s3853_s30 + $0x328] sm:$0xf]  ;;  %v3484_v44 = vld [vmem:[%s3853_s30 + $0x334] sm:$0xf0] }
 0x181   : > { %2559 = vst [vmem:[%s3969_s29 + $0xc0] sm:$0xff] %v3616_v57  ;;  %v1876_v60 = vpop.f32.mrf.mxu2  ;;  %v1540_v62 = vpop.f32.mrf.mxu0 }
 0x182   : > { %v2045_v18 = vpop.f32.mrf.mxu3  ;;  %3617 = vtanh.f32 %v2432_v59  ;;  %v1877_v61 = vadd.f32 %v1876_v60, %v1708_v22  ;;  %v1709_v63 = vpop.f32.mrf.mxu1 }
 0x183   : > { %v1710_v13 = vadd.f32 %v1709_v63, %v1540_v62 }
 0x184   : > { %v2046_v0 = vadd.f32 %v2045_v18, %v1877_v61 }
 0x186   : > { %v2365_v4 = vmul.f32 %v4152_v3, %v2046_v0 }
 0x188   : > { %v3618_v11 = vpop.eup %3617  ;;  %v2433_v12 = vadd.f32 %v4143_v58, %v2365_v4  ;;  %v3124_v4 = vld [vmem:[%s3853_s30 + $0x300] sm:$0xf] }
 0x189   : > { %2560 = vst [vmem:[%s3969_s29 + $0xc8] sm:$0xff] %v3618_v11  ;;  %v1878_v14 = vpop.f32.mrf.mxu2  ;;  %v1543_v20 = vpop.f32.mrf.mxu0  ;;  %v3478_v11 = vld [vmem:[%s3853_s30 + $0x30c] sm:$0xf] }
 0x18a   : > { %v2047_v15 = vpop.f32.mrf.mxu3  ;;  %3619 = vtanh.f32 %v2433_v12  ;;  %v1879_v19 = vadd.f32 %v1878_v14, %v1710_v13  ;;  %v1712_v21 = vpop.f32.mrf.mxu1  ;;  %v3134_v12 = vld [vmem:[%s3853_s30 + $0x318] sm:$0xf0] }
 0x18b   : > { %v1713_v27 = vadd.f32 %v1712_v21, %v1543_v20  ;;  %v3129_v20 = vor.u32 %v3477_v7, %v3126_v8  ;;  %v3487_v7 = vld [vmem:[%s3853_s30 + $0x34c] sm:$0xf0] }
 0x18c   : > { %v2048_v25 = vadd.f32 %v2047_v15, %v1879_v19  ;;  %1582 = vmatmul.bf16.gmra.mxu0 %v3093_v16  ;;  %v3125_v19 = vor.u32 %v3479_v5, %v3124_v4 }
 0x18d   : > { %1751 = vmatmul.bf16.gmra.mxu1 %v3097_v17 }
 0x18e   : > { %v2366_v26 = vmul.f32 %v4152_v3, %v2048_v25  ;;  %1920 = vmatmul.bf16.gmra.mxu2 %v3101_v23  ;;  %v3133_v25 = vor.u32 %v3480_v10, %v3132_v9  ;;  %v3485_v9 = vld [vmem:[%s3853_s30 + $0x344] sm:$0xf]  ;;  %v3158_v10 = vld [vmem:[%s3853_s30 + $0x350] sm:$0xf0] }
 0x18f   : > { %2089 = vmatmul.bf16.gmra.mxu3 %v3105_v24 }
 0x190   : > { %v3620_v28 = vpop.eup %3619  ;;  %v2434_v29 = vadd.f32 %v4143_v58, %v2366_v26  ;;  %v3137_v26 = vor.u32 %v3478_v11, %v3134_v12  ;;  %v3164_v11 = vld [vmem:[%s3853_s30 + $0x348] sm:$0xf]  ;;  %v3488_v12 = vld [vmem:[%s3853_s30 + $0x354] sm:$0xf0] }
 0x191   : > { %2561 = vst [vmem:[%s3969_s29 + $0xd0] sm:$0xff] %v3620_v28  ;;  %v1881_v30 = vpop.f32.mrf.mxu2  ;;  %v1545_v33 = vpop.f32.mrf.mxu0 }
 0x192   : > { %v2050_v31 = vpop.f32.mrf.mxu3  ;;  %3621 = vtanh.f32 %v2434_v29  ;;  %v1882_v32 = vadd.f32 %v1881_v30, %v1713_v27  ;;  %v1714_v34 = vpop.f32.mrf.mxu1 }
 0x193   : > { %v1715_v47 = vadd.f32 %v1714_v34, %v1545_v33 }
 0x194   : > { %v2051_v35 = vadd.f32 %v2050_v31, %v1882_v32 }
 0x196   : > { %v2367_v38 = vmul.f32 %v4152_v3, %v2051_v35 }
 0x198   : > { %v3622_v45 = vpop.eup %3621  ;;  %v2435_v46 = vadd.f32 %v4143_v58, %v2367_v38  ;;  %v3140_v38 = vld [vmem:[%s3853_s30 + $0x320] sm:$0xf] }
 0x199   : > { %2562 = vst [vmem:[%s3969_s29 + $0xd8] sm:$0xff] %v3622_v45  ;;  %v1883_v48 = vpop.f32.mrf.mxu2  ;;  %v1548_v53 = vpop.f32.mrf.mxu0  ;;  %v3482_v45 = vld [vmem:[%s3853_s30 + $0x32c] sm:$0xf] }
 0x19a   : > { %v2052_v49 = vpop.f32.mrf.mxu3  ;;  %3623 = vtanh.f32 %v2435_v46  ;;  %v1884_v52 = vadd.f32 %v1883_v48, %v1715_v47  ;;  %v1717_v54 = vpop.f32.mrf.mxu1  ;;  %v3150_v46 = vld [vmem:[%s3853_s30 + $0x338] sm:$0xf0] }
 0x19b   : > { %v1718_v59 = vadd.f32 %v1717_v54, %v1548_v53  ;;  %v3145_v53 = vor.u32 %v3481_v41, %v3142_v42  ;;  %v3491_v41 = vld [vmem:[%s3853_s30 + $0x36c] sm:$0xf0] }
 0x19c   : > { %v2053_v22 = vadd.f32 %v2052_v49, %v1884_v52  ;;  %1587 = vmatmul.bf16.gmra.mxu0 %v3109_v50  ;;  %v3141_v52 = vor.u32 %v3483_v39, %v3140_v38 }
 0x19d   : > { %1756 = vmatmul.bf16.gmra.mxu1 %v3113_v51 }
 0x19e   : > { %v2368_v57 = vmul.f32 %v4152_v3, %v2053_v22  ;;  %1925 = vmatmul.bf16.gmra.mxu2 %v3117_v55  ;;  %v3149_v22 = vor.u32 %v3484_v44, %v3148_v43  ;;  %v3489_v43 = vld [vmem:[%s3853_s30 + $0x364] sm:$0xf]  ;;  %v3174_v44 = vld [vmem:[%s3853_s30 + $0x370] sm:$0xf0] }
 0x19f   : > { %2094 = vmatmul.bf16.gmra.mxu3 %v3121_v56 }
 0x1a0   : > { %v3624_v60 = vpop.eup %3623  ;;  %v2436_v18 = vadd.f32 %v4143_v58, %v2368_v57  ;;  %v3153_v57 = vor.u32 %v3482_v45, %v3150_v46  ;;  %v3180_v45 = vld [vmem:[%s3853_s30 + $0x368] sm:$0xf]  ;;  %v3492_v46 = vld [vmem:[%s3853_s30 + $0x374] sm:$0xf0] }
 0x1a1   : > { %2563 = vst [vmem:[%s3969_s29 + $0xe0] sm:$0xff] %v3624_v60  ;;  %v1886_v61 = vpop.f32.mrf.mxu2  ;;  %v1550_v0 = vpop.f32.mrf.mxu0 }
 0x1a2   : > { %v2055_v62 = vpop.f32.mrf.mxu3  ;;  %3625 = vtanh.f32 %v2436_v18  ;;  %v1887_v63 = vadd.f32 %v1886_v61, %v1718_v59  ;;  %v1719_v1 = vpop.f32.mrf.mxu1 }
 0x1a3   : > { %v1720_v15 = vadd.f32 %v1719_v1, %v1550_v0 }
 0x1a4   : > { %v2056_v2 = vadd.f32 %v2055_v62, %v1887_v63 }
 0x1a6   : > { %v2369_v6 = vmul.f32 %v4152_v3, %v2056_v2 }
 0x1a8   : > { %v3626_v13 = vpop.eup %3625  ;;  %v2437_v14 = vadd.f32 %v4143_v58, %v2369_v6  ;;  %v3156_v6 = vld [vmem:[%s3853_s30 + $0x340] sm:$0xf] }
 0x1a9   : > { %2564 = vst [vmem:[%s3969_s29 + $0xe8] sm:$0xff] %v3626_v13  ;;  %v1888_v16 = vpop.f32.mrf.mxu2  ;;  %v1553_v23 = vpop.f32.mrf.mxu0  ;;  %v3486_v13 = vld [vmem:[%s3853_s30 + $0x34c] sm:$0xf] }
 0x1aa   : > { %v2057_v17 = vpop.f32.mrf.mxu3  ;;  %3627 = vtanh.f32 %v2437_v14  ;;  %v1889_v21 = vadd.f32 %v1888_v16, %v1720_v15  ;;  %v1722_v24 = vpop.f32.mrf.mxu1  ;;  %v3166_v14 = vld [vmem:[%s3853_s30 + $0x358] sm:$0xf0] }
 0x1ab   : > { %v1723_v29 = vadd.f32 %v1722_v24, %v1553_v23  ;;  %v3161_v23 = vor.u32 %v3485_v9, %v3158_v10  ;;  %v3495_v9 = vld [vmem:[%s3853_s30 + $0x38c] sm:$0xf0] }
 0x1ac   : > { %v2058_v27 = vadd.f32 %v2057_v17, %v1889_v21  ;;  %1592 = vmatmul.bf16.gmra.mxu0 %v3125_v19  ;;  %v3157_v21 = vor.u32 %v3487_v7, %v3156_v6 }
 0x1ad   : > { %1761 = vmatmul.bf16.gmra.mxu1 %v3129_v20 }
 0x1ae   : > { %v2370_v28 = vmul.f32 %v4152_v3, %v2058_v27  ;;  %1930 = vmatmul.bf16.gmra.mxu2 %v3133_v25  ;;  %v3165_v27 = vor.u32 %v3488_v12, %v3164_v11  ;;  %v3493_v11 = vld [vmem:[%s3853_s30 + $0x384] sm:$0xf]  ;;  %v3190_v12 = vld [vmem:[%s3853_s30 + $0x390] sm:$0xf0] }
 0x1af   : > { %2099 = vmatmul.bf16.gmra.mxu3 %v3137_v26 }
 0x1b0   : > { %v3628_v30 = vpop.eup %3627  ;;  %v2438_v31 = vadd.f32 %v4143_v58, %v2370_v28  ;;  %v3169_v28 = vor.u32 %v3486_v13, %v3166_v14  ;;  %v3196_v13 = vld [vmem:[%s3853_s30 + $0x388] sm:$0xf]  ;;  %v3496_v14 = vld [vmem:[%s3853_s30 + $0x394] sm:$0xf0] }
 0x1b1   : > { %2565 = vst [vmem:[%s3969_s29 + $0xf0] sm:$0xff] %v3628_v30  ;;  %v1891_v32 = vpop.f32.mrf.mxu2  ;;  %v1555_v35 = vpop.f32.mrf.mxu0 }
 0x1b2   : > { %v2060_v33 = vpop.f32.mrf.mxu3  ;;  %3629 = vtanh.f32 %v2438_v31  ;;  %v1892_v34 = vadd.f32 %v1891_v32, %v1723_v29  ;;  %v1724_v36 = vpop.f32.mrf.mxu1 }
 0x1b3   : > { %v1725_v49 = vadd.f32 %v1724_v36, %v1555_v35 }
 0x1b4   : > { %v2061_v37 = vadd.f32 %v2060_v33, %v1892_v34 }
 0x1b6   : > { %v2371_v40 = vmul.f32 %v4152_v3, %v2061_v37 }
 0x1b8   : > { %v3630_v47 = vpop.eup %3629  ;;  %v2439_v48 = vadd.f32 %v4143_v58, %v2371_v40  ;;  %v3172_v40 = vld [vmem:[%s3853_s30 + $0x360] sm:$0xf] }
 0x1b9   : > { %2566 = vst [vmem:[%s3969_s29 + $0xf8] sm:$0xff] %v3630_v47  ;;  %v1893_v50 = vpop.f32.mrf.mxu2  ;;  %v1558_v55 = vpop.f32.mrf.mxu0  ;;  %v3490_v47 = vld [vmem:[%s3853_s30 + $0x36c] sm:$0xf] }
 0x1ba   : > { %v2062_v51 = vpop.f32.mrf.mxu3  ;;  %3631 = vtanh.f32 %v2439_v48  ;;  %v1894_v54 = vadd.f32 %v1893_v50, %v1725_v49  ;;  %v1727_v56 = vpop.f32.mrf.mxu1  ;;  %v3182_v48 = vld [vmem:[%s3853_s30 + $0x378] sm:$0xf0] }
 0x1bb   : > { %v1728_v18 = vadd.f32 %v1727_v56, %v1558_v55  ;;  %v3177_v55 = vor.u32 %v3489_v43, %v3174_v44  ;;  %v3499_v43 = vld [vmem:[%s3853_s30 + $0x3ac] sm:$0xf0] }
 0x1bc   : > { %v2063_v59 = vadd.f32 %v2062_v51, %v1894_v54  ;;  %1597 = vmatmul.bf16.gmra.mxu0 %v3141_v52  ;;  %v3173_v54 = vor.u32 %v3491_v41, %v3172_v40 }
 0x1bd   : > { %1766 = vmatmul.bf16.gmra.mxu1 %v3145_v53 }
 0x1be   : > { %v2372_v60 = vmul.f32 %v4152_v3, %v2063_v59  ;;  %1935 = vmatmul.bf16.gmra.mxu2 %v3149_v22  ;;  %v3181_v59 = vor.u32 %v3492_v46, %v3180_v45  ;;  %v3497_v45 = vld [vmem:[%s3853_s30 + $0x3a4] sm:$0xf]  ;;  %v3206_v46 = vld [vmem:[%s3853_s30 + $0x3b0] sm:$0xf0] }
 0x1bf   : > { %2104 = vmatmul.bf16.gmra.mxu3 %v3153_v57 }
 0x1c0   : > { %v3632_v61 = vpop.eup %3631  ;;  %v2440_v62 = vadd.f32 %v4143_v58, %v2372_v60  ;;  %v3185_v60 = vor.u32 %v3490_v47, %v3182_v48  ;;  %v3212_v47 = vld [vmem:[%s3853_s30 + $0x3a8] sm:$0xf]  ;;  %v3500_v48 = vld [vmem:[%s3853_s30 + $0x3b4] sm:$0xf0] }
 0x1c1   : > { %2567 = vst [vmem:[%s3969_s29 + $0x100] sm:$0xff] %v3632_v61  ;;  %v1896_v63 = vpop.f32.mrf.mxu2  ;;  %v1560_v2 = vpop.f32.mrf.mxu0 }
 0x1c2   : > { %v2065_v0 = vpop.f32.mrf.mxu3  ;;  %3633 = vtanh.f32 %v2440_v62  ;;  %v1897_v1 = vadd.f32 %v1896_v63, %v1728_v18  ;;  %v1729_v4 = vpop.f32.mrf.mxu1 }
 0x1c3   : > { %v1730_v17 = vadd.f32 %v1729_v4, %v1560_v2 }
 0x1c4   : > { %v2066_v5 = vadd.f32 %v2065_v0, %v1897_v1 }
 0x1c6   : > { %v2373_v8 = vmul.f32 %v4152_v3, %v2066_v5 }
 0x1c8   : > { %v3634_v15 = vpop.eup %3633  ;;  %v2441_v16 = vadd.f32 %v4143_v58, %v2373_v8  ;;  %v3188_v8 = vld [vmem:[%s3853_s30 + $0x380] sm:$0xf] }
 0x1c9   : > { %2568 = vst [vmem:[%s3969_s29 + $0x108] sm:$0xff] %v3634_v15  ;;  %v1898_v19 = vpop.f32.mrf.mxu2  ;;  %v1563_v25 = vpop.f32.mrf.mxu0  ;;  %v3494_v15 = vld [vmem:[%s3853_s30 + $0x38c] sm:$0xf] }
 0x1ca   : > { %v2067_v20 = vpop.f32.mrf.mxu3  ;;  %3635 = vtanh.f32 %v2441_v16  ;;  %v1899_v24 = vadd.f32 %v1898_v19, %v1730_v17  ;;  %v1732_v26 = vpop.f32.mrf.mxu1  ;;  %v3198_v16 = vld [vmem:[%s3853_s30 + $0x398] sm:$0xf0] }
 0x1cb   : > { %v1733_v31 = vadd.f32 %v1732_v26, %v1563_v25  ;;  %v3193_v25 = vor.u32 %v3493_v11, %v3190_v12  ;;  %v3503_v11 = vld [vmem:[%s3853_s30 + $0x3cc] sm:$0xf0] }
 0x1cc   : > { %v2068_v29 = vadd.f32 %v2067_v20, %v1899_v24  ;;  %1602 = vmatmul.bf16.gmra.mxu0 %v3157_v21  ;;  %v3189_v24 = vor.u32 %v3495_v9, %v3188_v8 }
 0x1cd   : > { %1771 = vmatmul.bf16.gmra.mxu1 %v3161_v23 }
 0x1ce   : > { %v2374_v30 = vmul.f32 %v4152_v3, %v2068_v29  ;;  %1940 = vmatmul.bf16.gmra.mxu2 %v3165_v27  ;;  %v3197_v29 = vor.u32 %v3496_v14, %v3196_v13  ;;  %v3501_v13 = vld [vmem:[%s3853_s30 + $0x3c4] sm:$0xf]  ;;  %v3222_v14 = vld [vmem:[%s3853_s30 + $0x3d0] sm:$0xf0] }
 0x1cf   : > { %2109 = vmatmul.bf16.gmra.mxu3 %v3169_v28 }
 0x1d0   : > { %v3636_v32 = vpop.eup %3635  ;;  %v2442_v33 = vadd.f32 %v4143_v58, %v2374_v30  ;;  %v3201_v30 = vor.u32 %v3494_v15, %v3198_v16  ;;  %v3228_v15 = vld [vmem:[%s3853_s30 + $0x3c8] sm:$0xf]  ;;  %v3504_v16 = vld [vmem:[%s3853_s30 + $0x3d4] sm:$0xf0] }
 0x1d1   : > { %2569 = vst [vmem:[%s3969_s29 + $0x110] sm:$0xff] %v3636_v32  ;;  %v1901_v34 = vpop.f32.mrf.mxu2  ;;  %v1565_v37 = vpop.f32.mrf.mxu0 }
 0x1d2   : > { %v2070_v35 = vpop.f32.mrf.mxu3  ;;  %3637 = vtanh.f32 %v2442_v33  ;;  %v1902_v36 = vadd.f32 %v1901_v34, %v1733_v31  ;;  %v1734_v38 = vpop.f32.mrf.mxu1 }
 0x1d3   : > { %v1735_v51 = vadd.f32 %v1734_v38, %v1565_v37 }
 0x1d4   : > { %v2071_v39 = vadd.f32 %v2070_v35, %v1902_v36 }
 0x1d6   : > { %v2375_v42 = vmul.f32 %v4152_v3, %v2071_v39 }
 0x1d8   : > { %v3638_v49 = vpop.eup %3637  ;;  %v2443_v50 = vadd.f32 %v4143_v58, %v2375_v42  ;;  %v3204_v42 = vld [vmem:[%s3853_s30 + $0x3a0] sm:$0xf] }
 0x1d9   : > { %2570 = vst [vmem:[%s3969_s29 + $0x118] sm:$0xff] %v3638_v49  ;;  %v1903_v52 = vpop.f32.mrf.mxu2  ;;  %v1568_v22 = vpop.f32.mrf.mxu0  ;;  %v3498_v49 = vld [vmem:[%s3853_s30 + $0x3ac] sm:$0xf] }
 0x1da   : > { %v2072_v53 = vpop.f32.mrf.mxu3  ;;  %3639 = vtanh.f32 %v2443_v50  ;;  %v1904_v56 = vadd.f32 %v1903_v52, %v1735_v51  ;;  %v1737_v57 = vpop.f32.mrf.mxu1  ;;  %v3214_v50 = vld [vmem:[%s3853_s30 + $0x3b8] sm:$0xf0] }
 0x1db   : > { %v1738_v62 = vadd.f32 %v1737_v57, %v1568_v22  ;;  %v3209_v22 = vor.u32 %v3497_v45, %v3206_v46  ;;  %v3507_v45 = vld [vmem:[%s3853_s30 + $0x3ec] sm:$0xf0] }
 0x1dc   : > { %v2073_v18 = vadd.f32 %v2072_v53, %v1904_v56  ;;  %1607 = vmatmul.bf16.gmra.mxu0 %v3173_v54  ;;  %v3205_v56 = vor.u32 %v3499_v43, %v3204_v42 }
 0x1dd   : > { %1776 = vmatmul.bf16.gmra.mxu1 %v3177_v55 }
 0x1de   : > { %v2376_v61 = vmul.f32 %v4152_v3, %v2073_v18  ;;  %1945 = vmatmul.bf16.gmra.mxu2 %v3181_v59  ;;  %v3213_v18 = vor.u32 %v3500_v48, %v3212_v47  ;;  %v3505_v47 = vld [vmem:[%s3853_s30 + $0x3e4] sm:$0xf]  ;;  %v3238_v48 = vld [vmem:[%s3853_s30 + $0x3f0] sm:$0xf0] }
 0x1df   : > { %2114 = vmatmul.bf16.gmra.mxu3 %v3185_v60 }
 0x1e0   : > { %v3640_v63 = vpop.eup %3639  ;;  %v2444_v0 = vadd.f32 %v4143_v58, %v2376_v61  ;;  %v3217_v61 = vor.u32 %v3498_v49, %v3214_v50  ;;  %v3244_v49 = vld [vmem:[%s3853_s30 + $0x3e8] sm:$0xf]  ;;  %v3508_v50 = vld [vmem:[%s3853_s30 + $0x3f4] sm:$0xf0] }
 0x1e1   : > { %2571 = vst [vmem:[%s3969_s29 + $0x120] sm:$0xff] %v3640_v63  ;;  %v1906_v1 = vpop.f32.mrf.mxu2  ;;  %v1570_v5 = vpop.f32.mrf.mxu0 }
 0x1e2   : > { %v2075_v2 = vpop.f32.mrf.mxu3  ;;  %3641 = vtanh.f32 %v2444_v0  ;;  %v1907_v4 = vadd.f32 %v1906_v1, %v1738_v62  ;;  %v1739_v6 = vpop.f32.mrf.mxu1 }
 0x1e3   : > { %v1740_v20 = vadd.f32 %v1739_v6, %v1570_v5 }
 0x1e4   : > { %v2076_v7 = vadd.f32 %v2075_v2, %v1907_v4 }
 0x1e6   : > { %v2377_v10 = vmul.f32 %v4152_v3, %v2076_v7 }
 0x1e8   : > { %v3642_v17 = vpop.eup %3641  ;;  %v2445_v19 = vadd.f32 %v4143_v58, %v2377_v10  ;;  %v3220_v10 = vld [vmem:[%s3853_s30 + $0x3c0] sm:$0xf] }
 0x1e9   : > { %2572 = vst [vmem:[%s3969_s29 + $0x128] sm:$0xff] %v3642_v17  ;;  %v1908_v21 = vpop.f32.mrf.mxu2  ;;  %v1573_v27 = vpop.f32.mrf.mxu0  ;;  %v3502_v17 = vld [vmem:[%s3853_s30 + $0x3cc] sm:$0xf] }
 0x1ea   : > { %v2077_v23 = vpop.f32.mrf.mxu3  ;;  %3643 = vtanh.f32 %v2445_v19  ;;  %v1909_v26 = vadd.f32 %v1908_v21, %v1740_v20  ;;  %v1742_v28 = vpop.f32.mrf.mxu1  ;;  %v3230_v19 = vld [vmem:[%s3853_s30 + $0x3d8] sm:$0xf0] }
 0x1eb   : > { %v1743_v33 = vadd.f32 %v1742_v28, %v1573_v27  ;;  %v3225_v27 = vor.u32 %v3501_v13, %v3222_v14 }
 0x1ec   : > { %v2078_v31 = vadd.f32 %v2077_v23, %v1909_v26  ;;  %1612 = vmatmul.bf16.gmra.mxu0 %v3189_v24  ;;  %v3221_v26 = vor.u32 %v3503_v11, %v3220_v10 }
 0x1ed   : > { %1781 = vmatmul.bf16.gmra.mxu1 %v3193_v25 }
 0x1ee   : > { %v2378_v32 = vmul.f32 %v4152_v3, %v2078_v31  ;;  %1950 = vmatmul.bf16.gmra.mxu2 %v3197_v29  ;;  %v3229_v31 = vor.u32 %v3504_v16, %v3228_v15 }
 0x1ef   : > { %2119 = vmatmul.bf16.gmra.mxu3 %v3201_v30 }
 0x1f0   : > { %v3644_v34 = vpop.eup %3643  ;;  %v2446_v35 = vadd.f32 %v4143_v58, %v2378_v32  ;;  %v3233_v32 = vor.u32 %v3502_v17, %v3230_v19 }
 0x1f1   : > { %2573 = vst [vmem:[%s3969_s29 + $0x130] sm:$0xff] %v3644_v34  ;;  %v1911_v36 = vpop.f32.mrf.mxu2  ;;  %v1575_v39 = vpop.f32.mrf.mxu0 }
 0x1f2   : > { %v2080_v37 = vpop.f32.mrf.mxu3  ;;  %3645 = vtanh.f32 %v2446_v35  ;;  %v1912_v38 = vadd.f32 %v1911_v36, %v1743_v33  ;;  %v1744_v40 = vpop.f32.mrf.mxu1 }
 0x1f3   : > { %v1745_v53 = vadd.f32 %v1744_v40, %v1575_v39 }
 0x1f4   : > { %v2081_v41 = vadd.f32 %v2080_v37, %v1912_v38 }
 0x1f6   : > { %v2379_v44 = vmul.f32 %v4152_v3, %v2081_v41 }
 0x1f8   : > { %v3646_v51 = vpop.eup %3645  ;;  %v2447_v52 = vadd.f32 %v4143_v58, %v2379_v44  ;;  %v3236_v44 = vld [vmem:[%s3853_s30 + $0x3e0] sm:$0xf] }
 0x1f9   : > { %2574 = vst [vmem:[%s3969_s29 + $0x138] sm:$0xff] %v3646_v51  ;;  %v1913_v54 = vpop.f32.mrf.mxu2  ;;  %v1578_v59 = vpop.f32.mrf.mxu0  ;;  %v3506_v51 = vld [vmem:[%s3853_s30 + $0x3ec] sm:$0xf] }
 0x1fa   : > { %v2082_v55 = vpop.f32.mrf.mxu3  ;;  %3647 = vtanh.f32 %v2447_v52  ;;  %v1914_v57 = vadd.f32 %v1913_v54, %v1745_v53  ;;  %v1747_v60 = vpop.f32.mrf.mxu1  ;;  %v3246_v52 = vld [vmem:[%s3853_s30 + $0x3f8] sm:$0xf0] }
 0x1fb   : > { %v1748_v0 = vadd.f32 %v1747_v60, %v1578_v59  ;;  %v3241_v59 = vor.u32 %v3505_v47, %v3238_v48 }
 0x1fc   : > { %v2083_v62 = vadd.f32 %v2082_v55, %v1914_v57  ;;  %1617 = vmatmul.bf16.gmra.mxu0 %v3205_v56  ;;  %v3237_v57 = vor.u32 %v3507_v45, %v3236_v44 }
 0x1fd   : > { %1786 = vmatmul.bf16.gmra.mxu1 %v3209_v22 }
 0x1fe   : > { %v2380_v63 = vmul.f32 %v4152_v3, %v2083_v62  ;;  %1955 = vmatmul.bf16.gmra.mxu2 %v3213_v18  ;;  %v3245_v62 = vor.u32 %v3508_v50, %v3244_v49 }
 0x1ff   : > { %2124 = vmatmul.bf16.gmra.mxu3 %v3217_v61 }
 0x200   : > { %v3648_v1 = vpop.eup %3647  ;;  %v2448_v2 = vadd.f32 %v4143_v58, %v2380_v63  ;;  %v3249_v63 = vor.u32 %v3506_v51, %v3246_v52 }
 0x201   : > { %2575 = vst [vmem:[%s3969_s29 + $0x140] sm:$0xff] %v3648_v1  ;;  %v1916_v4 = vpop.f32.mrf.mxu2  ;;  %v1580_v7 = vpop.f32.mrf.mxu0 }
 0x202   : > { %v2085_v5 = vpop.f32.mrf.mxu3  ;;  %3649 = vtanh.f32 %v2448_v2  ;;  %v1917_v6 = vadd.f32 %v1916_v4, %v1748_v0  ;;  %v1749_v8 = vpop.f32.mrf.mxu1 }
 0x203   : > { %v1750_v23 = vadd.f32 %v1749_v8, %v1580_v7 }
 0x204   : > { %v2086_v9 = vadd.f32 %v2085_v5, %v1917_v6 }
 0x206   : > { %v2381_v12 = vmul.f32 %v4152_v3, %v2086_v9 }
 0x208   : > { %v3650_v20 = vpop.eup %3649  ;;  %v2449_v21 = vadd.f32 %v4143_v58, %v2381_v12 }
 0x209   : > { %2576 = vst [vmem:[%s3969_s29 + $0x148] sm:$0xff] %v3650_v20  ;;  %v1918_v24 = vpop.f32.mrf.mxu2  ;;  %v1583_v29 = vpop.f32.mrf.mxu0 }
 0x20a   : > { %v2087_v25 = vpop.f32.mrf.mxu3  ;;  %3651 = vtanh.f32 %v2449_v21  ;;  %v1919_v28 = vadd.f32 %v1918_v24, %v1750_v23  ;;  %v1752_v30 = vpop.f32.mrf.mxu1 }
 0x20b   : > { %v1753_v35 = vadd.f32 %v1752_v30, %v1583_v29 }
 0x20c   : > { %v2088_v33 = vadd.f32 %v2087_v25, %v1919_v28  ;;  %1622 = vmatmul.bf16.gmra.mxu0 %v3221_v26 }
 0x20d   : > { %1791 = vmatmul.bf16.gmra.mxu1 %v3225_v27 }
 0x20e   : > { %v2382_v34 = vmul.f32 %v4152_v3, %v2088_v33  ;;  %1960 = vmatmul.bf16.gmra.mxu2 %v3229_v31 }
 0x20f   : > { %2129 = vmatmul.bf16.gmra.mxu3 %v3233_v32 }
 0x210   : > { %v3652_v36 = vpop.eup %3651  ;;  %v2450_v37 = vadd.f32 %v4143_v58, %v2382_v34 }
 0x211   : > { %2577 = vst [vmem:[%s3969_s29 + $0x150] sm:$0xff] %v3652_v36  ;;  %v1921_v38 = vpop.f32.mrf.mxu2  ;;  %v1585_v41 = vpop.f32.mrf.mxu0 }
 0x212   : > { %v2090_v39 = vpop.f32.mrf.mxu3  ;;  %3653 = vtanh.f32 %v2450_v37  ;;  %v1922_v40 = vadd.f32 %v1921_v38, %v1753_v35  ;;  %v1754_v42 = vpop.f32.mrf.mxu1 }
 0x213   : > { %v1755_v55 = vadd.f32 %v1754_v42, %v1585_v41 }
 0x214   : > { %v2091_v43 = vadd.f32 %v2090_v39, %v1922_v40 }
 0x216   : > { %v2383_v46 = vmul.f32 %v4152_v3, %v2091_v43 }
 0x218   : > { %v3654_v53 = vpop.eup %3653  ;;  %v2451_v54 = vadd.f32 %v4143_v58, %v2383_v46 }
 0x219   : > { %2578 = vst [vmem:[%s3969_s29 + $0x158] sm:$0xff] %v3654_v53  ;;  %v1923_v56 = vpop.f32.mrf.mxu2  ;;  %v1588_v18 = vpop.f32.mrf.mxu0 }
 0x21a   : > { %v2092_v22 = vpop.f32.mrf.mxu3  ;;  %3655 = vtanh.f32 %v2451_v54  ;;  %v1924_v60 = vadd.f32 %v1923_v56, %v1755_v55  ;;  %v1757_v61 = vpop.f32.mrf.mxu1 }
 0x21b   : > { %v1758_v2 = vadd.f32 %v1757_v61, %v1588_v18 }
 0x21c   : > { %v2093_v0 = vadd.f32 %v2092_v22, %v1924_v60  ;;  %1627 = vmatmul.bf16.gmra.mxu0 %v3237_v57 }
 0x21d   : > { %1796 = vmatmul.bf16.gmra.mxu1 %v3241_v59 }
 0x21e   : > { %v2384_v1 = vmul.f32 %v4152_v3, %v2093_v0  ;;  %1965 = vmatmul.bf16.gmra.mxu2 %v3245_v62 }
 0x21f   : > { %2134 = vmatmul.bf16.gmra.mxu3 %v3249_v63 }
 0x220   : > { %v3656_v4 = vpop.eup %3655  ;;  %v2452_v5 = vadd.f32 %v4143_v58, %v2384_v1 }
 0x221   : > { %2579 = vst [vmem:[%s3969_s29 + $0x160] sm:$0xff] %v3656_v4  ;;  %v1926_v6 = vpop.f32.mrf.mxu2  ;;  %v1590_v9 = vpop.f32.mrf.mxu0 }
 0x222   : > { %v2095_v7 = vpop.f32.mrf.mxu3  ;;  %3657 = vtanh.f32 %v2452_v5  ;;  %v1927_v8 = vadd.f32 %v1926_v6, %v1758_v2  ;;  %v1759_v10 = vpop.f32.mrf.mxu1 }
 0x223   : > { %v1760_v15 = vadd.f32 %v1759_v10, %v1590_v9 }
 0x224   : > { %v2096_v11 = vadd.f32 %v2095_v7, %v1927_v8 }
 0x226   : > { %v2385_v12 = vmul.f32 %v4152_v3, %v2096_v11 }
 0x228   : > { %v3658_v13 = vpop.eup %3657  ;;  %v2453_v14 = vadd.f32 %v4143_v58, %v2385_v12 }
 0x229   : > { %2580 = vst [vmem:[%s3969_s29 + $0x168] sm:$0xff] %v3658_v13  ;;  %v1928_v16 = vpop.f32.mrf.mxu2  ;;  %v1593_v20 = vpop.f32.mrf.mxu0 }
 0x22a   : > { %v2097_v17 = vpop.f32.mrf.mxu3  ;;  %3659 = vtanh.f32 %v2453_v14  ;;  %v1929_v19 = vadd.f32 %v1928_v16, %v1760_v15  ;;  %v1762_v21 = vpop.f32.mrf.mxu1 }
 0x22b   : > { %v1763_v25 = vadd.f32 %v1762_v21, %v1593_v20 }
 0x22c   : > { %v2098_v23 = vadd.f32 %v2097_v17, %v1929_v19 }
 0x22e   : > { %v2386_v24 = vmul.f32 %v4152_v3, %v2098_v23 }
 0x230   : > { %v3660_v26 = vpop.eup %3659  ;;  %v2454_v27 = vadd.f32 %v4143_v58, %v2386_v24 }
 0x231   : > { %2581 = vst [vmem:[%s3969_s29 + $0x170] sm:$0xff] %v3660_v26  ;;  %v1931_v28 = vpop.f32.mrf.mxu2  ;;  %v1595_v31 = vpop.f32.mrf.mxu0 }
 0x232   : > { %v2100_v29 = vpop.f32.mrf.mxu3  ;;  %3661 = vtanh.f32 %v2454_v27  ;;  %v1932_v30 = vadd.f32 %v1931_v28, %v1763_v25  ;;  %v1764_v32 = vpop.f32.mrf.mxu1 }
 0x233   : > { %v1765_v37 = vadd.f32 %v1764_v32, %v1595_v31 }
 0x234   : > { %v2101_v33 = vadd.f32 %v2100_v29, %v1932_v30 }
 0x236   : > { %v2387_v34 = vmul.f32 %v4152_v3, %v2101_v33 }
 0x238   : > { %v3662_v35 = vpop.eup %3661  ;;  %v2455_v36 = vadd.f32 %v4143_v58, %v2387_v34 }
 0x239   : > { %2582 = vst [vmem:[%s3969_s29 + $0x178] sm:$0xff] %v3662_v35  ;;  %v1933_v38 = vpop.f32.mrf.mxu2  ;;  %v1598_v41 = vpop.f32.mrf.mxu0 }
 0x23a   : > { %v2102_v39 = vpop.f32.mrf.mxu3  ;;  %3663 = vtanh.f32 %v2455_v36  ;;  %v1934_v40 = vadd.f32 %v1933_v38, %v1765_v37  ;;  %v1767_v42 = vpop.f32.mrf.mxu1 }
 0x23b   : > { %v1768_v45 = vadd.f32 %v1767_v42, %v1598_v41 }
 0x23c   : > { %v2103_v43 = vadd.f32 %v2102_v39, %v1934_v40 }
 0x23e   : > { %v2388_v44 = vmul.f32 %v4152_v3, %v2103_v43 }
 0x240   : > { %v3664_v46 = vpop.eup %3663  ;;  %v2456_v47 = vadd.f32 %v4143_v58, %v2388_v44 }
 0x241   : > { %2583 = vst [vmem:[%s3969_s29 + $0x180] sm:$0xff] %v3664_v46  ;;  %v1936_v48 = vpop.f32.mrf.mxu2  ;;  %v1600_v51 = vpop.f32.mrf.mxu0 }
 0x242   : > { %v2105_v49 = vpop.f32.mrf.mxu3  ;;  %3665 = vtanh.f32 %v2456_v47  ;;  %v1937_v50 = vadd.f32 %v1936_v48, %v1768_v45  ;;  %v1769_v52 = vpop.f32.mrf.mxu1  ;;  %v4323_v45 = vld [vmem:[%s4369_s3] ss:$0 sm:$0xff] }
 0x243   : > { %v1770_v22 = vadd.f32 %v1769_v52, %v1600_v51 }
 0x244   : > { %v2106_v53 = vadd.f32 %v2105_v49, %v1937_v50 }
 0x246   : > { %v2389_v54 = vmul.f32 %v4152_v3, %v2106_v53 }
 0x248   : > { %v3666_v55 = vpop.eup %3665  ;;  %v2457_v56 = vadd.f32 %v4143_v58, %v2389_v54 }
 0x249   : > { %2584 = vst [vmem:[%s3969_s29 + $0x188] sm:$0xff] %v3666_v55  ;;  %v1938_v57 = vpop.f32.mrf.mxu2  ;;  %v1603_v18 = vpop.f32.mrf.mxu0 }
 0x24a   : > { %v2107_v59 = vpop.f32.mrf.mxu3  ;;  %3667 = vtanh.f32 %v2457_v56  ;;  %v1939_v60 = vadd.f32 %v1938_v57, %v1770_v22  ;;  %v1772_v61 = vpop.f32.mrf.mxu1 }
 0x24b   : > { %v1773_v0 = vadd.f32 %v1772_v61, %v1603_v18 }
 0x24c   : > { %v2108_v62 = vadd.f32 %v2107_v59, %v1939_v60 }
 0x24e   : > { %v2390_v63 = vmul.f32 %v4152_v3, %v2108_v62 }
 0x250   : > { %v3668_v1 = vpop.eup %3667  ;;  %v2458_v2 = vadd.f32 %v4143_v58, %v2390_v63 }
 0x251   : > { %2585 = vst [vmem:[%s3969_s29 + $0x190] sm:$0xff] %v3668_v1  ;;  %v1941_v4 = vpop.f32.mrf.mxu2  ;;  %v1605_v7 = vpop.f32.mrf.mxu0 }
 0x252   : > { %v2110_v5 = vpop.f32.mrf.mxu3  ;;  %3669 = vtanh.f32 %v2458_v2  ;;  %v1942_v6 = vadd.f32 %v1941_v4, %v1773_v0  ;;  %v1774_v8 = vpop.f32.mrf.mxu1 }
 0x253   : > { %v1775_v13 = vadd.f32 %v1774_v8, %v1605_v7 }
 0x254   : > { %v2111_v9 = vadd.f32 %v2110_v5, %v1942_v6 }
 0x256   : > { %v2391_v10 = vmul.f32 %v4152_v3, %v2111_v9 }
 0x258   : > { %v3670_v11 = vpop.eup %3669  ;;  %v2459_v12 = vadd.f32 %v4143_v58, %v2391_v10 }
 0x259   : > { %2586 = vst [vmem:[%s3969_s29 + $0x198] sm:$0xff] %v3670_v11  ;;  %v1943_v14 = vpop.f32.mrf.mxu2  ;;  %v1608_v17 = vpop.f32.mrf.mxu0 }
 0x25a   : > { %v2112_v15 = vpop.f32.mrf.mxu3  ;;  %3671 = vtanh.f32 %v2459_v12  ;;  %v1944_v16 = vadd.f32 %v1943_v14, %v1775_v13  ;;  %v1777_v19 = vpop.f32.mrf.mxu1 }
 0x25b   : > { %v1778_v23 = vadd.f32 %v1777_v19, %v1608_v17 }
 0x25c   : > { %v2113_v20 = vadd.f32 %v2112_v15, %v1944_v16 }
 0x25e   : > { %v2392_v21 = vmul.f32 %v4152_v3, %v2113_v20 }
 0x260   : > { %v3672_v24 = vpop.eup %3671  ;;  %v2460_v25 = vadd.f32 %v4143_v58, %v2392_v21 }
 0x261   : > { %2587 = vst [vmem:[%s3969_s29 + $0x1a0] sm:$0xff] %v3672_v24  ;;  %v1946_v26 = vpop.f32.mrf.mxu2  ;;  %v1610_v29 = vpop.f32.mrf.mxu0 }
 0x262   : > { %v2115_v27 = vpop.f32.mrf.mxu3  ;;  %3673 = vtanh.f32 %v2460_v25  ;;  %v1947_v28 = vadd.f32 %v1946_v26, %v1778_v23  ;;  %v1779_v30 = vpop.f32.mrf.mxu1 }
 0x263   : > { %v1780_v35 = vadd.f32 %v1779_v30, %v1610_v29 }
 0x264   : > { %v2116_v31 = vadd.f32 %v2115_v27, %v1947_v28 }
 0x266   : > { %v2393_v32 = vmul.f32 %v4152_v3, %v2116_v31 }
 0x268   : > { %v3674_v33 = vpop.eup %3673  ;;  %v2461_v34 = vadd.f32 %v4143_v58, %v2393_v32 }
 0x269   : > { %2588 = vst [vmem:[%s3969_s29 + $0x1a8] sm:$0xff] %v3674_v33  ;;  %v1948_v36 = vpop.f32.mrf.mxu2  ;;  %v1613_v39 = vpop.f32.mrf.mxu0 }
 0x26a   : > { %v2117_v37 = vpop.f32.mrf.mxu3  ;;  %3675 = vtanh.f32 %v2461_v34  ;;  %v1949_v38 = vadd.f32 %v1948_v36, %v1780_v35  ;;  %v1782_v40 = vpop.f32.mrf.mxu1 }
 0x26b   : > { %v1783_v43 = vadd.f32 %v1782_v40, %v1613_v39 }
 0x26c   : > { %v2118_v41 = vadd.f32 %v2117_v37, %v1949_v38 }
 0x26e   : > { %v2394_v42 = vmul.f32 %v4152_v3, %v2118_v41  ;;  %v4330_v3 = vld [vmem:[%s4368_s2] ss:$0 sm:$0xff] }
 0x270   : > { %v3676_v44 = vpop.eup %3675  ;;  %v2462_v58 = vadd.f32 %v4323_v45, %v2394_v42 }
 0x271   : > { %2589 = vst [vmem:[%s3969_s29 + $0x1b0] sm:$0xff] %v3676_v44  ;;  %v1951_v46 = vpop.f32.mrf.mxu2  ;;  %v1615_v49 = vpop.f32.mrf.mxu0 }
 0x272   : > { %v2120_v47 = vpop.f32.mrf.mxu3  ;;  %3677 = vtanh.f32 %v2462_v58  ;;  %v1952_v48 = vadd.f32 %v1951_v46, %v1783_v43  ;;  %v1784_v50 = vpop.f32.mrf.mxu1 }
 0x273   : > { %v1785_v55 = vadd.f32 %v1784_v50, %v1615_v49 }
 0x274   : > { %v2121_v51 = vadd.f32 %v2120_v47, %v1952_v48 }
 0x276   : > { %v2395_v52 = vmul.f32 %v4330_v3, %v2121_v51 }
 0x278   : > { %v3678_v53 = vpop.eup %3677  ;;  %v2463_v54 = vadd.f32 %v4323_v45, %v2395_v52 }
 0x279   : > { %2590 = vst [vmem:[%s3969_s29 + $0x1b8] sm:$0xff] %v3678_v53  ;;  %v1953_v56 = vpop.f32.mrf.mxu2  ;;  %v1618_v59 = vpop.f32.mrf.mxu0 }
 0x27a   : > { %v2122_v22 = vpop.f32.mrf.mxu3  ;;  %3679 = vtanh.f32 %v2463_v54  ;;  %v1954_v57 = vadd.f32 %v1953_v56, %v1785_v55  ;;  %v1787_v60 = vpop.f32.mrf.mxu1 }
 0x27b   : > { %v1788_v62 = vadd.f32 %v1787_v60, %v1618_v59 }
 0x27c   : > { %v2123_v18 = vadd.f32 %v2122_v22, %v1954_v57 }
 0x27e   : > { %v2396_v61 = vmul.f32 %v4330_v3, %v2123_v18 }
 0x280   : > { %v3680_v63 = vpop.eup %3679  ;;  %v2464_v0 = vadd.f32 %v4323_v45, %v2396_v61 }
 0x281   : > { %2591 = vst [vmem:[%s3969_s29 + $0x1c0] sm:$0xff] %v3680_v63  ;;  %v1956_v1 = vpop.f32.mrf.mxu2  ;;  %v1620_v5 = vpop.f32.mrf.mxu0 }
 0x282   : > { %v2125_v2 = vpop.f32.mrf.mxu3  ;;  %3681 = vtanh.f32 %v2464_v0  ;;  %v1957_v4 = vadd.f32 %v1956_v1, %v1788_v62  ;;  %v1789_v6 = vpop.f32.mrf.mxu1 }
 0x283   : > { %v1790_v11 = vadd.f32 %v1789_v6, %v1620_v5 }
 0x284   : > { %v2126_v7 = vadd.f32 %v2125_v2, %v1957_v4 }
 0x286   : > { %v2397_v8 = vmul.f32 %v4330_v3, %v2126_v7 }
 0x288   : > { %v3682_v9 = vpop.eup %3681  ;;  %v2465_v10 = vadd.f32 %v4323_v45, %v2397_v8 }
 0x289   : > { %2592 = vst [vmem:[%s3969_s29 + $0x1c8] sm:$0xff] %v3682_v9  ;;  %v1958_v12 = vpop.f32.mrf.mxu2  ;;  %v1623_v15 = vpop.f32.mrf.mxu0 }
 0x28a   : > { %v2127_v13 = vpop.f32.mrf.mxu3  ;;  %3683 = vtanh.f32 %v2465_v10  ;;  %v1959_v14 = vadd.f32 %v1958_v12, %v1790_v11  ;;  %v1792_v16 = vpop.f32.mrf.mxu1 }
 0x28b   : > { %v1793_v20 = vadd.f32 %v1792_v16, %v1623_v15 }
 0x28c   : > { %v2128_v17 = vadd.f32 %v2127_v13, %v1959_v14 }
 0x28e   : > { %v2398_v19 = vmul.f32 %v4330_v3, %v2128_v17 }
 0x290   : > { %v3684_v21 = vpop.eup %3683  ;;  %v2466_v23 = vadd.f32 %v4323_v45, %v2398_v19 }
 0x291   : > { %2593 = vst [vmem:[%s3969_s29 + $0x1d0] sm:$0xff] %v3684_v21  ;;  %v1961_v24 = vpop.f32.mrf.mxu2  ;;  %v1625_v27 = vpop.f32.mrf.mxu0 }
 0x292   : > { %v2130_v25 = vpop.f32.mrf.mxu3  ;;  %3685 = vtanh.f32 %v2466_v23  ;;  %v1962_v26 = vadd.f32 %v1961_v24, %v1793_v20  ;;  %v1794_v28 = vpop.f32.mrf.mxu1 }
 0x293   : > { %v1795_v33 = vadd.f32 %v1794_v28, %v1625_v27 }
 0x294   : > { %v2131_v29 = vadd.f32 %v2130_v25, %v1962_v26 }
 0x296   : > { %v2399_v30 = vmul.f32 %v4330_v3, %v2131_v29 }
 0x298   : > { %v3686_v31 = vpop.eup %3685  ;;  %v2467_v32 = vadd.f32 %v4323_v45, %v2399_v30 }
 0x299   : > { %2594 = vst [vmem:[%s3969_s29 + $0x1d8] sm:$0xff] %v3686_v31  ;;  %v1963_v34 = vpop.f32.mrf.mxu2  ;;  %v1628_v37 = vpop.f32.mrf.mxu0 }
 0x29a   : > { %v2132_v35 = vpop.f32.mrf.mxu3  ;;  %3687 = vtanh.f32 %v2467_v32  ;;  %v1964_v36 = vadd.f32 %v1963_v34, %v1795_v33  ;;  %v1797_v38 = vpop.f32.mrf.mxu1 }
 0x29b   : > { %v1798_v41 = vadd.f32 %v1797_v38, %v1628_v37 }
 0x29c   : > { %v2133_v39 = vadd.f32 %v2132_v35, %v1964_v36 }
 0x29e   : > { %v2400_v40 = vmul.f32 %v4330_v3, %v2133_v39 }
 0x2a0   : > { %v3688_v42 = vpop.eup %3687  ;;  %v2468_v43 = vadd.f32 %v4323_v45, %v2400_v40 }
 0x2a1   : > { %2595 = vst [vmem:[%s3969_s29 + $0x1e0] sm:$0xff] %v3688_v42  ;;  %v1966_v44 = vpop.f32.mrf.mxu2  ;;  %v1630_v48 = vpop.f32.mrf.mxu0 }
 0x2a2   : > { %v2135_v58 = vpop.f32.mrf.mxu3  ;;  %3689 = vtanh.f32 %v2468_v43  ;;  %v1967_v46 = vadd.f32 %v1966_v44, %v1798_v41  ;;  %v1799_v49 = vpop.f32.mrf.mxu1 }
 0x2a3   : > { %v1800_v53 = vadd.f32 %v1799_v49, %v1630_v48 }
 0x2a4   : > { %v2136_v47 = vadd.f32 %v2135_v58, %v1967_v46 }
 0x2a6   : > { %v2401_v50 = vmul.f32 %v4330_v3, %v2136_v47 }
 0x2a8   : > { %v3690_v51 = vpop.eup %3689  ;;  %v2469_v52 = vadd.f32 %v4323_v45, %v2401_v50 }
 0x2a9   : > { %2596 = vst [vmem:[%s3969_s29 + $0x1e8] sm:$0xff] %v3690_v51  ;;  %v1968_v54 = vpop.f32.mrf.mxu2 }
 0x2aa   : > { %3691 = vtanh.f32 %v2469_v52  ;;  %v1969_v55 = vadd.f32 %v1968_v54, %v1800_v53  ;;  %v2137_v56 = vpop.f32.mrf.mxu3 }
 0x2ac   : > { %v2138_v22 = vadd.f32 %v2137_v56, %v1969_v55 }
 0x2ae   : > { %v2402_v57 = vmul.f32 %v4330_v3, %v2138_v22 }
 0x2b0   : > { %v3692_v59 = vpop.eup %3691  ;;  %v2470_v60 = vadd.f32 %v4323_v45, %v2402_v57 }
 0x2b1   : > { %2597 = vst [vmem:[%s3969_s29 + $0x1f0] sm:$0xff] %v3692_v59 }
 0x2b2   : > { %3693 = vtanh.f32 %v2470_v60 }
 0x2b8   : > { %v3694_v18 = vpop.eup %3693 }
 0x2b9   : > { %2598 = vst [vmem:[%s3969_s29 + $0x1f8] sm:$0xff] %v3694_v18 }
 0x2ba PF: > { %s14_s17 = sadd.s32 1, %s3721_s17   ;;  %s4371_s15 = smov %s3717_s16 }
 0x2bb   : > { %p11_p5 = scmp.ge.s32.totalorder %s14_s17, 6   ;;  %s4372_s16 = smov %s4374_s18 }
 0x2bd   :  { %13 = sbr.rel (!%p11_p5) target bundleno = 2 (0x2), region = 83 }

</bundles_post_ra>
